<compile_context>
chip_gen: v6e
topology: v6e:2x2x1
jax: 0.10.0
libtpu: 0.0.40
codegen_flags: <defaults>
</compile_context>

<pallas_src>
import jax
import jax.numpy as jnp
from jax.experimental import pallas as pl
from jax.experimental.pallas import tpu as pltpu


def _valuenet_kernel(x_ref, w1_ref, shift_ref, w2_ref, b2_ref, o_ref):
    # x_ref:     (TB, C*HW)    f32   NCHW channel-major flattened inputs
    # w1_ref:    (C*HW, OC*HW) bf16  (scale * W_conv) kron I_HW, transposed
    # shift_ref: (1, OC*HW)    f32   folded BN shift (repeated per spatial pos)
    # w2_ref:    (OC*HW, HW)   bf16  Linear weight, transposed
    # b2_ref:    (1, HW)       f32   Linear bias
    # o_ref:     (TB, HW)      f32
    x = x_ref[...].astype(jnp.bfloat16)

    # 1x1 conv + folded BN scale as one MXU matmul: M=TB, K=C*HW, N=OC*HW.
    h = jnp.dot(x, w1_ref[...], preferred_element_type=jnp.float32)

    # Folded BN shift + ReLU (VPU, f32).
    h = jnp.maximum(h + shift_ref[...], 0.0)

    # Linear over the channel-major flattened conv output: M=TB, K=OC*HW, N=HW.
    y = jnp.dot(h.astype(jnp.bfloat16), w2_ref[...],
                preferred_element_type=jnp.float32)

    o_ref[...] = jnp.tanh(y + b2_ref[...])


def value_net_forward(x_nchw, kernel_params, *, batch_tile=256):
    """x_nchw: (N, 128, bs, bs) float32. Returns (N, bs*bs) float32."""
    w1eT, shift_row, w2T, b2_row = kernel_params
    n, c, bs1, bs2 = x_nchw.shape
    hw = bs1 * bs2
    chw = c * hw
    ochw = shift_row.shape[1]
    assert w1eT.shape == (chw, ochw) and w2T.shape == (ochw, hw)

    # Free view: PyTorch NCHW flatten (channel-major). No host-side transpose,
    # so x is read from HBM exactly once (memory-bound kernel).
    x2d = x_nchw.reshape(n, chw)

    if n >= batch_tile:
        tb = batch_tile
        n_pad = pl.cdiv(n, tb) * tb
        if n_pad != n:
            x2d = jnp.pad(x2d, ((0, n_pad - n), (0, 0)))
    else:
        # Tiny batch: single grid step over the whole batch (per review).
        tb = n
        n_pad = n

    grid = (n_pad // tb,)

    out = pl.pallas_call(
        _valuenet_kernel,
        out_shape=jax.ShapeDtypeStruct((n_pad, hw), jnp.float32),
        grid=grid,
        in_specs=[
            pl.BlockSpec((tb, chw), lambda t: (t, 0)),    # x tile (lane-dense K=8192)
            pl.BlockSpec((chw, ochw), lambda t: (0, 0)),  # resident conv-as-matmul weight
            pl.BlockSpec((1, ochw), lambda t: (0, 0)),    # folded BN shift
            pl.BlockSpec((ochw, hw), lambda t: (0, 0)),   # resident linear weight
            pl.BlockSpec((1, hw), lambda t: (0, 0)),      # linear bias
        ],
        out_specs=pl.BlockSpec((tb, hw), lambda t: (t, 0)),
        compiler_params=pltpu.CompilerParams(
            dimension_semantics=("parallel",),            # shards across v7x's 2 TCs
            vmem_limit_bytes=48 * 1024 * 1024,            # TB=256 needs ~30 MiB; v7x-safe
        ),
    )(x2d, w1eT, shift_row, w2T, b2_row)

    return out[:n]


def make_torch_params(key, boardsize):
    """Deterministic synthetic parameters matching the PyTorch module's shapes."""
    hw = boardsize * boardsize
    in_ch, out_ch = 128, 4
    k_conv, k_g, k_b, k_m, k_v, k_w2, k_b2 = jax.random.split(key, 7)

    # Conv2d(128, 4, 1, bias=False): weight (4, 128, 1, 1) -> (4, 128)
    conv_w = jax.random.normal(k_conv, (out_ch, in_ch), jnp.float32) * 0.05

    # BatchNorm2d(4), inference (running-stats) fold.
    gamma = 1.0 + 0.1 * jax.random.normal(k_g, (out_ch,), jnp.float32)
    beta = 0.1 * jax.random.normal(k_b, (out_ch,), jnp.float32)
    running_mean = 0.1 * jax.random.normal(k_m, (out_ch,), jnp.float32)
    running_var = jnp.abs(jax.random.normal(k_v, (out_ch,), jnp.float32)) + 0.5
    eps = 1e-5
    scale = gamma / jnp.sqrt(running_var + eps)       # (4,)
    shift = beta - running_mean * scale               # (4,)

    # Linear(4*hw, hw): weight (hw, 4*hw), bias (hw,)
    lin_w = jax.random.normal(k_w2, (hw, out_ch * hw), jnp.float32) / jnp.sqrt(out_ch * hw)
    lin_b = 0.01 * jax.random.normal(k_b2, (hw,), jnp.float32)

    return dict(conv_w=conv_w, scale=scale, shift=shift, lin_w=lin_w, lin_b=lin_b,
                hw=hw, out_ch=out_ch, in_ch=in_ch)


def pack_kernel_params(p):
    """Host-side folding / layout prep (one time)."""
    hw, oc = p["hw"], p["out_ch"]
    # Fold BN scale into the conv weight (free, host-side).
    w1s = p["scale"][:, None] * p["conv_w"]                            # (OC, C)
    # 1x1 conv over NCHW-flattened input == matmul against (w1s kron I_HW)^T:
    #   h[n, c*HW+p] = sum_k w1s[c,k] * x[n, k*HW+p]
    w1eT = jnp.kron(w1s, jnp.eye(hw, dtype=jnp.float32)).T             # (C*HW, OC*HW)
    shift_row = jnp.repeat(p["shift"], hw).reshape(1, oc * hw)         # (1, OC*HW)
    w2T = p["lin_w"].T                                                 # (OC*HW, HW)
    b2_row = p["lin_b"].reshape(1, hw)                                 # (1, HW)
    return (w1eT.astype(jnp.bfloat16), shift_row,
            w2T.astype(jnp.bfloat16), b2_row)


def reference_forward(x_nchw, p):
    """Pure-JAX f32 reference of the same math."""
    n, c, bs1, bs2 = x_nchw.shape
    hw = bs1 * bs2
    x = x_nchw.reshape(n, c, hw)
    h = jnp.einsum("oc,ncp->nop", p["conv_w"], x)
    h = h * p["scale"][None, :, None] + p["shift"][None, :, None]
    h = jnp.maximum(h, 0.0)
    flat = h.reshape(n, p["out_ch"] * hw)
    return jnp.tanh(flat @ p["lin_w"].T + p["lin_b"])


if __name__ == "__main__":
    boardsize = 8
    batch = 2
    key = jax.random.PRNGKey(0)
    k_x, k_p = jax.random.split(key)

    # PyTorch conv input is NCHW: (N, 128, boardsize, boardsize)
    x = jax.random.normal(k_x, (batch, 128, boardsize, boardsize), jnp.float32)
    torch_params = make_torch_params(k_p, boardsize)
    kernel_params = pack_kernel_params(torch_params)

    out = value_net_forward(x, kernel_params)
    out = jax.block_until_ready(out)

    ref = reference_forward(x, torch_params)
    assert out.shape == (batch, boardsize * boardsize)
    # bf16 matmul operands (f32 accumulation) -> slightly loosened tolerance.
    max_err = float(jnp.max(jnp.abs(out - ref)))
    assert jnp.allclose(out, ref, atol=2e-2, rtol=2e-2), max_err

    print("KERNEL_OK")
</pallas_src>

<mosaic_0001>
module attributes {stable_mosaic.version = 11 : i64} {
  func.func @_valuenet_kernel(%arg0: i32, %arg1: memref<2x8192xf32, #tpu.memory_space<vmem>>, %arg2: memref<8192x256xbf16, #tpu.memory_space<vmem>>, %arg3: memref<1x256xf32, #tpu.memory_space<vmem>>, %arg4: memref<256x64xbf16, #tpu.memory_space<vmem>>, %arg5: memref<1x64xf32, #tpu.memory_space<vmem>>, %arg6: memref<2x64xf32, #tpu.memory_space<vmem>>) attributes {dimension_semantics = [#tpu.dimension_semantics<parallel>], iteration_bounds = array<i64: 1>, scalar_prefetch = 0 : i64, scratch_operands = 0 : i64, tpu.core_type = #tpu.core_type<tc>, window_params = [{transform_indices = @transform_0, window_bounds = array<i64: 2, 8192>}, {pipeline_mode = #tpu.pipeline_mode<synchronous>, transform_indices = @transform_1, window_bounds = array<i64: 8192, 256>}, {pipeline_mode = #tpu.pipeline_mode<synchronous>, transform_indices = @transform_2, window_bounds = array<i64: 1, 256>}, {pipeline_mode = #tpu.pipeline_mode<synchronous>, transform_indices = @transform_3, window_bounds = array<i64: 256, 64>}, {pipeline_mode = #tpu.pipeline_mode<synchronous>, transform_indices = @transform_4, window_bounds = array<i64: 1, 64>}, {transform_indices = @transform_5, window_bounds = array<i64: 2, 64>}]} {
    %c0 = arith.constant 0 : index
    %c0_0 = arith.constant 0 : index
    %0 = vector.load %arg1[%c0, %c0_0] : memref<2x8192xf32, #tpu.memory_space<vmem>>, vector<2x8192xf32>
    %1 = arith.truncf %0 : vector<2x8192xf32> to vector<2x8192xbf16>
    %c0_1 = arith.constant 0 : index
    %c0_2 = arith.constant 0 : index
    %2 = vector.load %arg2[%c0_1, %c0_2] : memref<8192x256xbf16, #tpu.memory_space<vmem>>, vector<8192x256xbf16>
    %cst = arith.constant dense<0.000000e+00> : vector<2x256xf32>
    %3 = tpu.matmul %1, %2, %cst {dimension_numbers = #tpu.dot_dimension_numbers<[1], [0], [0], [1], [0, 0, 1, 1], [], []>} : vector<2x8192xbf16>, vector<8192x256xbf16>, vector<2x256xf32> -> vector<2x256xf32>
    %c0_3 = arith.constant 0 : index
    %c0_4 = arith.constant 0 : index
    %4 = vector.load %arg3[%c0_3, %c0_4] : memref<1x256xf32, #tpu.memory_space<vmem>>, vector<1x256xf32>
    %5 = vector.broadcast %4 : vector<1x256xf32> to vector<2x256xf32>
    %6 = arith.addf %3, %5 : vector<2x256xf32>
    %cst_5 = arith.constant 0.000000e+00 : f32
    %7 = vector.broadcast %cst_5 : f32 to vector<2x256xf32>
    %8 = arith.maximumf %6, %7 : vector<2x256xf32>
    %9 = arith.truncf %8 : vector<2x256xf32> to vector<2x256xbf16>
    %c0_6 = arith.constant 0 : index
    %c0_7 = arith.constant 0 : index
    %10 = vector.load %arg4[%c0_6, %c0_7] : memref<256x64xbf16, #tpu.memory_space<vmem>>, vector<256x64xbf16>
    %cst_8 = arith.constant dense<0.000000e+00> : vector<2x64xf32>
    %11 = tpu.matmul %9, %10, %cst_8 {dimension_numbers = #tpu.dot_dimension_numbers<[1], [0], [0], [1], [0, 0, 1, 1], [], []>} : vector<2x256xbf16>, vector<256x64xbf16>, vector<2x64xf32> -> vector<2x64xf32>
    %c0_9 = arith.constant 0 : index
    %c0_10 = arith.constant 0 : index
    %12 = vector.load %arg5[%c0_9, %c0_10] : memref<1x64xf32, #tpu.memory_space<vmem>>, vector<1x64xf32>
    %13 = vector.broadcast %12 : vector<1x64xf32> to vector<2x64xf32>
    %14 = arith.addf %11, %13 : vector<2x64xf32>
    %15 = math.tanh %14 : vector<2x64xf32>
    %c0_11 = arith.constant 0 : index
    %c0_12 = arith.constant 0 : index
    %16 = vector.load %arg6[%c0_11, %c0_12] : memref<2x64xf32, #tpu.memory_space<vmem>>, vector<2x64xf32>
    tpu.vector_store %arg6[%c0_11, %c0_12], %15 {strides = array<i32>} : memref<2x64xf32, #tpu.memory_space<vmem>>, vector<2x64xf32>,
    return
  }
  func.func @transform_0(%arg0: i32) -> (i32, i32) {
    %c0_i32 = arith.constant 0 : i32
    %c0_i32_0 = arith.constant 0 : i32
    return %arg0, %c0_i32 : i32, i32
  }
  func.func @transform_1(%arg0: i32) -> (i32, i32) {
    %c0_i32 = arith.constant 0 : i32
    %c0_i32_0 = arith.constant 0 : i32
    %c0_i32_1 = arith.constant 0 : i32
    return %c0_i32, %c0_i32_0 : i32, i32
  }
  func.func @transform_2(%arg0: i32) -> (i32, i32) {
    %c0_i32 = arith.constant 0 : i32
    %c0_i32_0 = arith.constant 0 : i32
    %c0_i32_1 = arith.constant 0 : i32
    return %c0_i32, %c0_i32_0 : i32, i32
  }
  func.func @transform_3(%arg0: i32) -> (i32, i32) {
    %c0_i32 = arith.constant 0 : i32
    %c0_i32_0 = arith.constant 0 : i32
    %c0_i32_1 = arith.constant 0 : i32
    return %c0_i32, %c0_i32_0 : i32, i32
  }
  func.func @transform_4(%arg0: i32) -> (i32, i32) {
    %c0_i32 = arith.constant 0 : i32
    %c0_i32_0 = arith.constant 0 : i32
    %c0_i32_1 = arith.constant 0 : i32
    return %c0_i32, %c0_i32_0 : i32, i32
  }
  func.func @transform_5(%arg0: i32) -> (i32, i32) {
    %c0_i32 = arith.constant 0 : i32
    %c0_i32_0 = arith.constant 0 : i32
    return %arg0, %c0_i32 : i32, i32
  }
}

</mosaic_0001>

<bundles_post_ra>
// kernel: tpu_custom_call.1
= control target key start
LH: loop header
LB: loop body
LE: loop exit
PB: predicated region body
PF: predicated region fallthrough
CT: control target
= control target key end

     0   :  { %10 = vsyncpa [#allocation3], 0  ;;  %s11311_s0 = inlined_call_operand.hbm [shape: f32[2,8192], index: 0, kind: input, shape index: {}]   ;;  %s11312_s1 = inlined_call_operand.hbm [shape: bf16[8192,256], index: 1, kind: input, shape index: {}]   ;;  %s11313_s2 = inlined_call_operand.hbm [shape: f32[1,256], index: 2, kind: input, shape index: {}]   ;;  %s11314_s3 = inlined_call_operand.vmem [shape: bf16[256,64], index: 3, kind: input, shape index: {}]   ;;  %s11315_s4 = inlined_call_operand.hbm [shape: f32[1,64], index: 4, kind: input, shape index: {}]   ;;  %s11316_s5 = inlined_call_operand.hbm [shape: f32[2,64], index: 5, kind: output, shape index: {}]  }
   0x1   :  { %11 = vsyncpa [#allocation6], 0 }
   0x2   :  { %12 = vsyncpa [#allocation9], 0 }
   0x3   :  { %13 = vsyncpa [#allocation4], 0  ;;  %s10919_s18 = smov [#allocation5]  }
   0x4   :  { %s29_s19 = sshll.u32 %s10919_s18, 4  ;;  %s30_s19 = int_to_ptr.vmem [resolvable:$true] %s29_s19 }
   0x5   :  { %s10819_s20 = scalar_lea.vmem %s30_s19, 131072  ;;  %p10824_p1 = scmp.lt.s32.totalorder %s30_s19, %s30_s19 }
   0x6   :  { %p10820_p0 = scmp.ne.s32.totalorder %s30_s19, %s10819_s20  ;;  %p10825_p2 = scmp.lt.s32.totalorder %s10819_s20, %s10819_s20 }
   0x8   :  { %p10826_p3 = por %p10825_p2, %p10824_p1 }
   0xa   :  { %p10827_p4 = pnand %p10826_p3, %p10820_p0 }
   0xc   :  { %10830 = shalt.err (!%p10827_p4)
}
   0xd   :  { %s10920_s21 = smov 128   ;;  %s10921_s22 = smov 8  }
   0xe   :  { %35 = dma.hbm_to_vmem [thread:$0]  %s11312_s1, 131072, %s30_s19, [#allocation6], %s10920_s21, %s10920_s21, %s10921_s22  }
   0xf   :  { %s10922_s25 = smov [#allocation2]   ;;  %s10923_s27 = smov [#allocation7]  }
  0x10   :  { %s20_s26 = sshll.u32 %s10922_s25, 4  ;;  %s42_s28 = sshll.u32 %s10923_s27, 4  ;;  %s21_s26 = int_to_ptr.vmem [resolvable:$true] %s20_s26  ;;  %s43_s28 = int_to_ptr.vmem [resolvable:$true] %s42_s28 }
  0x11   :  { %s10839_s29 = scalar_lea.vmem %s21_s26, 2048  ;;  %p10844_p6 = scmp.lt.s32.totalorder %s21_s26, %s21_s26 }
  0x12   :  { %p10840_p5 = scmp.ne.s32.totalorder %s21_s26, %s10839_s29  ;;  %p10845_p7 = scmp.lt.s32.totalorder %s10839_s29, %s10839_s29 }
  0x14   :  { %p10846_p8 = por %p10845_p7, %p10844_p6 }
  0x16   :  { %p10847_p9 = pnand %p10846_p8, %p10840_p5 }
  0x18   :  { %10850 = shalt.err (!%p10847_p9)
}
  0x19   :  { %23 = dma.hbm_to_vmem [thread:$0]  %s11311_s0, 2048, %s21_s26, [#allocation3]  }
  0x1a   :  { %s10859_s7 = scalar_lea.vmem %s43_s28, 32  ;;  %p10864_p11 = scmp.lt.s32.totalorder %s43_s28, %s43_s28 }
  0x1b   :  { %p10860_p10 = scmp.ne.s32.totalorder %s43_s28, %s10859_s7  ;;  %p10865_p12 = scmp.lt.s32.totalorder %s10859_s7, %s10859_s7 }
  0x1d   :  { %p10866_p13 = por %p10865_p12, %p10864_p11 }
  0x1f   :  { %p10867_p0 = pnand %p10866_p13, %p10860_p10 }
  0x21   :  { %10870 = shalt.err (!%p10867_p0)
}
  0x22   :  { %45 = dma.hbm_to_vmem [thread:$0]  %s11313_s2, 32, %s43_s28, [#allocation6]  }
  0x23   :  { %s10924_s9 = smov [#allocation8]  }
  0x24   :  { %s54_s10 = sshll.u32 %s10924_s9, 4  ;;  %s55_s10 = int_to_ptr.vmem [resolvable:$true] %s54_s10 }
  0x25   :  { %s10879_s11 = scalar_lea.vmem %s55_s10, 16  ;;  %s10883_s12 = scalar_lea.vmem %s55_s10, 32 }
  0x26   :  { %p10880_p1 = scmp.ne.s32.totalorder %s55_s10, %s10879_s11  ;;  %p10884_p2 = scmp.lt.s32.totalorder %s55_s10, %s55_s10 }
  0x27   :  { %p10885_p3 = scmp.lt.s32.totalorder %s10883_s12, %s10879_s11 }
  0x29   :  { %p10886_p4 = por %p10885_p3, %p10884_p2 }
  0x2b   :  { %p10887_p5 = pnand %p10886_p4, %p10880_p1 }
  0x2d   :  { %10890 = shalt.err (!%p10887_p5)
}
  0x2e   :  { %57 = dma.hbm_to_vmem [thread:$0]  %s11315_s4, 16, %s55_s10, [#allocation9]  }
  0x2f   :  { %10911 = dma.done.wait [#allocation3], 2048  }
  0x30   :  { %10912 = vsyncadd [#allocation3], 4294965248 }
  0x31   :  { %10913 = dma.done.wait [#allocation6], 131104  }
  0x32   :  { %10914 = vsyncadd [#allocation6], 4294836192 }
  0x33   :  { %10915 = dma.done.wait [#allocation9], 16  }
  0x34   :  { %10916 = vsyncadd [#allocation9], 4294967280  ;;  %v9241_v0 = vld [vmem:[#allocation5 + $0x74] ss:$8 sps:$4 sm:$0xff]   ;;  %v9245_v2 = vld [vmem:[#allocation5 + $0x70] ss:$8 sps:$4 sm:$0xff]   ;;  %v107_v38 = vlaneseq }
  0x35   :  { %v9243_v1 = vld [vmem:[#allocation5 + $0x174] ss:$8 sps:$4 sm:$0xff]   ;;  %6659 = vmatprep.subr.bf16.mxu0 %v9241_v0  ;;  %v9246_v3 = vld [vmem:[#allocation5 + $0x170] ss:$8 sps:$4 sm:$0xff]   ;;  %v9247_v4 = vld [vmem:[#allocation5 + $0x64] ss:$8 sps:$4 sm:$0xff]  }
  0x36   :  { %6700 = vmatprep.subr.bf16.mxu1 %v9243_v1  ;;  %6660 = vmatpush1.bf16.msra.mxu0 %v9245_v2  ;;  %v9249_v5 = vld [vmem:[#allocation5 + $0x164] ss:$8 sps:$4 sm:$0xff]   ;;  %v9251_v6 = vld [vmem:[#allocation5 + $0x60] ss:$8 sps:$4 sm:$0xff]   ;;  %v9253_v8 = vld [vmem:[#allocation5 + $0x54] ss:$8 sps:$4 sm:$0xff]  }
  0x37   :  { %6701 = vmatpush1.bf16.msra.mxu1 %v9246_v3  ;;  %6661 = vmatprep.subr.bf16.mxu0 %v9247_v4  ;;  %v9252_v7 = vld [vmem:[#allocation5 + $0x160] ss:$8 sps:$4 sm:$0xff]   ;;  %v9255_v9 = vld [vmem:[#allocation5 + $0x154] ss:$8 sps:$4 sm:$0xff]   ;;  %v9257_v10 = vld [vmem:[#allocation5 + $0x50] ss:$8 sps:$4 sm:$0xff]  }
  0x38   :  { %6702 = vmatprep.subr.bf16.mxu1 %v9249_v5  ;;  %v9258_v11 = vld [vmem:[#allocation5 + $0x150] ss:$8 sps:$4 sm:$0xff]   ;;  %v9259_v12 = vld [vmem:[#allocation5 + $0x44] ss:$8 sps:$4 sm:$0xff]   ;;  %v9263_v14 = vld [vmem:[#allocation5 + $0x40] ss:$8 sps:$4 sm:$0xff]  }
  0x39   :  { %v9261_v13 = vld [vmem:[#allocation5 + $0x144] ss:$8 sps:$4 sm:$0xff]   ;;  %v9264_v15 = vld [vmem:[#allocation5 + $0x140] ss:$8 sps:$4 sm:$0xff]   ;;  %v9265_v16 = vld [vmem:[#allocation5 + $0x34] ss:$8 sps:$4 sm:$0xff]  }
  0x3a   :  { %6662 = vmatpush1.bf16.msra.mxu0 %v9251_v6  ;;  %v9267_v17 = vld [vmem:[#allocation5 + $0x134] ss:$8 sps:$4 sm:$0xff]   ;;  %v9269_v18 = vld [vmem:[#allocation5 + $0x30] ss:$8 sps:$4 sm:$0xff]   ;;  %v9271_v20 = vld [vmem:[#allocation5 + $0x24] ss:$8 sps:$4 sm:$0xff]  }
  0x3b   :  { %6703 = vmatpush1.bf16.msra.mxu1 %v9252_v7  ;;  %6663 = vmatprep.subr.bf16.mxu0 %v9253_v8  ;;  %v9270_v19 = vld [vmem:[#allocation5 + $0x130] ss:$8 sps:$4 sm:$0xff]   ;;  %v9273_v21 = vld [vmem:[#allocation5 + $0x124] ss:$8 sps:$4 sm:$0xff]   ;;  %v9275_v22 = vld [vmem:[#allocation5 + $0x20] ss:$8 sps:$4 sm:$0xff]  }
  0x3c   :  { %6704 = vmatprep.subr.bf16.mxu1 %v9255_v9  ;;  %v9276_v23 = vld [vmem:[#allocation5 + $0x120] ss:$8 sps:$4 sm:$0xff]   ;;  %v9277_v24 = vld [vmem:[#allocation5 + $0x14] ss:$8 sps:$4 sm:$0xff]   ;;  %v9281_v26 = vld [vmem:[#allocation5 + $0x10] ss:$8 sps:$4 sm:$0xff]  }
  0x3d   :  { %v9279_v25 = vld [vmem:[#allocation5 + $0x114] ss:$8 sps:$4 sm:$0xff]   ;;  %v9282_v27 = vld [vmem:[#allocation5 + $0x110] ss:$8 sps:$4 sm:$0xff]   ;;  %v9283_v28 = vld [vmem:[#allocation5 + $0x4] ss:$8 sps:$4 sm:$0xff]  }
  0x3e   :  { %6664 = vmatpush1.bf16.msra.mxu0 %v9257_v10  ;;  %v9285_v29 = vld [vmem:[#allocation5 + $0x104] ss:$8 sps:$4 sm:$0xff]   ;;  %v9287_v30 = vld [vmem:[#allocation5] ss:$8 sps:$4 sm:$0xff]   ;;  %v9289_v32 = vld [vmem:[#allocation5 + $0xf4] ss:$8 sps:$4 sm:$0xff]  }
  0x3f   :  { %6705 = vmatpush1.bf16.msra.mxu1 %v9258_v11  ;;  %6665 = vmatprep.subr.bf16.mxu0 %v9259_v12  ;;  %v9288_v31 = vld [vmem:[#allocation5 + $0x100] ss:$8 sps:$4 sm:$0xff]   ;;  %v9291_v33 = vld [vmem:[#allocation5 + $0x1f4] ss:$8 sps:$4 sm:$0xff]   ;;  %v9293_v34 = vld [vmem:[#allocation5 + $0xf0] ss:$8 sps:$4 sm:$0xff]  }
  0x40   :  { %6706 = vmatprep.subr.bf16.mxu1 %v9261_v13  ;;  %v9294_v35 = vld [vmem:[#allocation5 + $0x1f0] ss:$8 sps:$4 sm:$0xff]   ;;  %v10925_v36 = vmov 1983009808   ;;  %v9295_v39 = vld [vmem:[#allocation5 + $0xe4] ss:$8 sps:$4 sm:$0xff]  }
  0x41   :  { %v105_v37 = vunpack.c.l.s4 %v10925_v36  ;;  %v9297_v40 = vld [vmem:[#allocation5 + $0x1e4] ss:$8 sps:$4 sm:$0xff]   ;;  %v9299_v41 = vld [vmem:[#allocation5 + $0xe0] ss:$8 sps:$4 sm:$0xff]   ;;  %v10969_v43 = vshrl.u32 %v107_v38, 7  ;;  %vm8151_vm0 = vcmask 517120  }
  0x42   :  { %6666 = vmatpush1.bf16.msra.mxu0 %v9263_v14  ;;  %v9300_v44 = vld [vmem:[#allocation5 + $0x1e0] ss:$8 sps:$4 sm:$0xff]   ;;  %v9301_v45 = vld [vmem:[#allocation5 + $0xd4] ss:$8 sps:$4 sm:$0xff]   ;;  %v9305_v47 = vld [vmem:[#allocation5 + $0xd0] ss:$8 sps:$4 sm:$0xff]  }
  0x43   :  { %6707 = vmatpush1.bf16.msra.mxu1 %v9264_v15  ;;  %6667 = vmatprep.subr.bf16.mxu0 %v9265_v16  ;;  %v106_v42 = vunpack.c.0.s8 %v105_v37  ;;  %v9303_v46 = vld [vmem:[#allocation5 + $0x1d4] ss:$8 sps:$4 sm:$0xff]   ;;  %v9306_v48 = vld [vmem:[#allocation5 + $0x1d0] ss:$8 sps:$4 sm:$0xff]   ;;  %v9307_v50 = vld [vmem:[#allocation5 + $0xc4] ss:$8 sps:$4 sm:$0xff]  }
  0x44   :  { %6708 = vmatprep.subr.bf16.mxu1 %v9267_v17  ;;  %v9309_v51 = vld [vmem:[#allocation5 + $0x1c4] ss:$8 sps:$4 sm:$0xff]   ;;  %v9311_v53 = vld [vmem:[#allocation5 + $0xc0] ss:$8 sps:$4 sm:$0xff]   ;;  %v9313_v57 = vld [vmem:[#allocation5 + $0xb4] ss:$8 sps:$4 sm:$0xff]  }
  0x45   :  { %v10972_v49 = vsub.s32 %v106_v42, %v10969_v43  ;;  %v71_v52 = vld [vmem:[#allocation2] sm:$0xff]  ;;  %v9315_v58 = vld [vmem:[#allocation5 + $0x1b4] ss:$8 sps:$4 sm:$0xff]   ;;  %v9317_v61 = vld [vmem:[#allocation5 + $0xb0] ss:$8 sps:$4 sm:$0xff]  }
  0x46   :  { %6668 = vmatpush1.bf16.msra.mxu0 %v9269_v18  ;;  %v103_v55 = vcombine.high %v71_v52, %v71_v52  ;;  %v9312_v56 = vld [vmem:[#allocation5 + $0x1c0] ss:$8 sps:$4 sm:$0xff]   ;;  %v9318_v0 = vld [vmem:[#allocation5 + $0x1b0] ss:$8 sps:$4 sm:$0xff]   ;;  %v9319_v1 = vld [vmem:[#allocation5 + $0xa4] ss:$8 sps:$4 sm:$0xff]  }
  0x47   :  { %6709 = vmatpush1.bf16.msra.mxu1 %v9270_v19  ;;  %6669 = vmatprep.subr.bf16.mxu0 %v9271_v20  ;;  %v110_v54 = vrot.slane %v71_v52, %v10972_v49  ;;  %v9321_v2 = vld [vmem:[#allocation5 + $0x1a4] ss:$8 sps:$4 sm:$0xff]   ;;  %v9323_v4 = vld [vmem:[#allocation5 + $0xa0] ss:$8 sps:$4 sm:$0xff]   ;;  %v9325_v6 = vld [vmem:[#allocation5 + $0x94] ss:$8 sps:$4 sm:$0xff]  }
  0x48   :  { %6710 = vmatprep.subr.bf16.mxu1 %v9273_v21  ;;  %v117_v60 = vrot.slane %v103_v55, %v10972_v49  ;;  %v9324_v5 = vld [vmem:[#allocation5 + $0x1a0] ss:$8 sps:$4 sm:$0xff]   ;;  %v9327_v7 = vld [vmem:[#allocation5 + $0x194] ss:$8 sps:$4 sm:$0xff]   ;;  %v9329_v8 = vld [vmem:[#allocation5 + $0x90] ss:$8 sps:$4 sm:$0xff]  }
  0x49   :  { %v118_v59 = vcombine.high %v110_v54, %v110_v54  ;;  %v9330_v9 = vld [vmem:[#allocation5 + $0x190] ss:$8 sps:$4 sm:$0xff]   ;;  %v9331_v10 = vld [vmem:[#allocation5 + $0x84] ss:$8 sps:$4 sm:$0xff]   ;;  %v9335_v12 = vld [vmem:[#allocation5 + $0x80] ss:$8 sps:$4 sm:$0xff]   ;;  %v439_v16 = vpack.c.bf16 %v110_v54, %v110_v54 }
  0x4a   :  { %6670 = vmatpush1.bf16.msra.mxu0 %v9275_v22  ;;  %v119_v63 = vcombine.high %v117_v60, %v117_v60  ;;  %v9333_v11 = vld [vmem:[#allocation5 + $0x184] ss:$8 sps:$4 sm:$0xff]   ;;  %v9336_v13 = vld [vmem:[#allocation5 + $0x180] ss:$8 sps:$4 sm:$0xff]   ;;  %v9340_v14 = vld [vmem:[#allocation5 + $0x274] ss:$8 sps:$4 sm:$0xff]   ;;  %v441_v17 = vpack.c.bf16 %v117_v60, %v117_v60 }
  0x4b   :  { %6711 = vmatpush1.bf16.msra.mxu1 %v9276_v23  ;;  %6671 = vmatprep.subr.bf16.mxu0 %v9277_v24  ;;  %v440_v62 = vpack.c.bf16 %v118_v59, %v118_v59  ;;  %v9343_v15 = vld [vmem:[#allocation5 + $0x374] ss:$8 sps:$4 sm:$0xff]   ;;  %v9338_v18 = vld [vmem:[#allocation5 + $0x270] ss:$8 sps:$4 sm:$0xff]   ;;  %v9346_v20 = vld [vmem:[#allocation5 + $0x264] ss:$8 sps:$4 sm:$0xff]  }
  0x4c   :  { %6712 = vmatprep.subr.bf16.mxu1 %v9279_v25  ;;  %v442_v3 = vpack.c.bf16 %v119_v63, %v119_v63  ;;  %v9341_v19 = vld [vmem:[#allocation5 + $0x370] ss:$8 sps:$4 sm:$0xff]   ;;  %v9349_v21 = vld [vmem:[#allocation5 + $0x364] ss:$8 sps:$4 sm:$0xff]   ;;  %v9344_v22 = vld [vmem:[#allocation5 + $0x260] ss:$8 sps:$4 sm:$0xff]  }
  0x4d   :  { %6691 = vmatprep.mubr.bf16.mxu0 %v440_v62  ;;  %v9347_v23 = vld [vmem:[#allocation5 + $0x360] ss:$8 sps:$4 sm:$0xff]   ;;  %v9352_v24 = vld [vmem:[#allocation5 + $0x254] ss:$8 sps:$4 sm:$0xff]   ;;  %v9370_v36 = vld [vmem:[#allocation5 + $0x224] ss:$8 sps:$4 sm:$0xff]  }
  0x4e   :  { %6672 = vmatpush1.bf16.msra.mxu0 %v9281_v26  ;;  %6732 = vmatprep.mubr.bf16.mxu1 %v442_v3  ;;  %v9355_v25 = vld [vmem:[#allocation5 + $0x354] ss:$8 sps:$4 sm:$0xff]   ;;  %v9350_v26 = vld [vmem:[#allocation5 + $0x250] ss:$8 sps:$4 sm:$0xff]   ;;  %v9373_v37 = vld [vmem:[#allocation5 + $0x324] ss:$8 sps:$4 sm:$0xff]  }
  0x4f   :  { %6713 = vmatpush1.bf16.msra.mxu1 %v9282_v27  ;;  %6673 = vmatprep.subr.bf16.mxu0 %v9283_v28  ;;  %v9353_v27 = vld [vmem:[#allocation5 + $0x350] ss:$8 sps:$4 sm:$0xff]   ;;  %v9358_v28 = vld [vmem:[#allocation5 + $0x244] ss:$8 sps:$4 sm:$0xff]   ;;  %v9368_v38 = vld [vmem:[#allocation5 + $0x220] ss:$8 sps:$4 sm:$0xff]  }
  0x50   :  { %6714 = vmatprep.subr.bf16.mxu1 %v9285_v29  ;;  %v9361_v29 = vld [vmem:[#allocation5 + $0x344] ss:$8 sps:$4 sm:$0xff]   ;;  %v9380_v55 = vld [vmem:[#allocation5 + $0x200] ss:$8 sps:$4 sm:$0xff]   ;;  %v9391_v59 = vld [vmem:[#allocation5 + $0x3f4] ss:$8 sps:$4 sm:$0xff]  }
  0x51   :  { %v72_v42 = vld [vmem:[#allocation2 + $0x8] sm:$0xff]  ;;  %v9386_v60 = vld [vmem:[#allocation5 + $0x2f0] ss:$8 sps:$4 sm:$0xff]   ;;  %v9403_v3 = vld [vmem:[#allocation5 + $0x3d4] ss:$8 sps:$4 sm:$0xff]  }
  0x52   :  { %6674 = vmatpush1.bf16.msra.mxu0 %v9287_v30  ;;  %v9356_v30 = vld [vmem:[#allocation5 + $0x240] ss:$8 sps:$4 sm:$0xff]   ;;  %v9385_v52 = vld [vmem:[#allocation5 + $0x304] ss:$8 sps:$4 sm:$0xff]  }
  0x53   :  { %6715 = vmatpush1.bf16.msra.mxu1 %v9288_v31  ;;  %6675 = vmatprep.subr.bf16.mxu0 %v9289_v32  ;;  %v9359_v31 = vld [vmem:[#allocation5 + $0x340] ss:$8 sps:$4 sm:$0xff]   ;;  %v9364_v32 = vld [vmem:[#allocation5 + $0x234] ss:$8 sps:$4 sm:$0xff]   ;;  %v9394_v62 = vld [vmem:[#allocation5 + $0x2e4] ss:$8 sps:$4 sm:$0xff]  }
  0x54   :  { %6716 = vmatprep.subr.bf16.mxu1 %v9291_v33  ;;  %v9367_v33 = vld [vmem:[#allocation5 + $0x334] ss:$8 sps:$4 sm:$0xff]   ;;  %v9397_v63 = vld [vmem:[#allocation5 + $0x3e4] ss:$8 sps:$4 sm:$0xff]  }
  0x56   :  { %6676 = vmatpush2.bf16.msra.mxu0 %v9293_v34  ;;  %v9362_v34 = vld [vmem:[#allocation5 + $0x230] ss:$8 sps:$4 sm:$0xff]  }
  0x57   :  { %6717 = vmatpush2.bf16.msra.mxu1 %v9294_v35  ;;  %6677 = vmatprep.subr.bf16.mxu0 %v9295_v39  ;;  %v9365_v35 = vld [vmem:[#allocation5 + $0x330] ss:$8 sps:$4 sm:$0xff]   ;;  %v9371_v39 = vld [vmem:[#allocation5 + $0x320] ss:$8 sps:$4 sm:$0xff]  }
  0x58   :  { %6718 = vmatprep.subr.bf16.mxu1 %v9297_v40  ;;  %v9376_v40 = vld [vmem:[#allocation5 + $0x214] ss:$8 sps:$4 sm:$0xff]  }
  0x5a   :  { %6678 = vmatpush2.bf16.msra.mxu0 %v9299_v41  ;;  %v9379_v41 = vld [vmem:[#allocation5 + $0x314] ss:$8 sps:$4 sm:$0xff]  }
  0x5b   :  { %6719 = vmatpush2.bf16.msra.mxu1 %v9300_v44  ;;  %6679 = vmatprep.subr.bf16.mxu0 %v9301_v45  ;;  %v10977_v44 = vrot.slane %v72_v42, %v10972_v49  ;;  %v120_v45 = vcombine.high %v72_v42, %v72_v42  ;;  %v9452_v42 = vld [vmem:[#allocation5 + $0x554] ss:$8 sps:$4 sm:$0xff]  }
  0x5c   :  { %6720 = vmatprep.subr.bf16.mxu1 %v9303_v46  ;;  %v9374_v46 = vld [vmem:[#allocation5 + $0x210] ss:$8 sps:$4 sm:$0xff]  }
  0x5e   :  { %6680 = vmatpush2.bf16.msra.mxu0 %v9305_v47  ;;  %v9377_v47 = vld [vmem:[#allocation5 + $0x310] ss:$8 sps:$4 sm:$0xff]  }
  0x5f   :  { %6721 = vmatpush2.bf16.msra.mxu1 %v9306_v48  ;;  %6681 = vmatprep.subr.bf16.mxu0 %v9307_v50  ;;  %v135_v48 = vcombine.high %v10977_v44, %v10977_v44  ;;  %v10982_v50 = vrot.slane %v120_v45, %v10972_v49 }
  0x60   :  { %6722 = vmatprep.subr.bf16.mxu1 %v9309_v51  ;;  %v9382_v51 = vld [vmem:[#allocation5 + $0x204] ss:$8 sps:$4 sm:$0xff]  }
  0x61   :  { %v136_v54 = vcombine.high %v10982_v50, %v10982_v50 }
  0x62   :  { %6682 = vmatpush2.bf16.msra.mxu0 %v9311_v53  ;;  %v444_v53 = vpack.c.bf16 %v135_v48, %v135_v48  ;;  %v9450_v48 = vld [vmem:[#allocation5 + $0x550] ss:$8 sps:$4 sm:$0xff]  }
  0x63   :  { %6723 = vmatpush2.bf16.msra.mxu1 %v9312_v56  ;;  %6683 = vmatprep.subr.bf16.mxu0 %v9313_v57  ;;  %v9383_v56 = vld [vmem:[#allocation5 + $0x300] ss:$8 sps:$4 sm:$0xff]   ;;  %v446_v57 = vpack.c.bf16 %v136_v54, %v136_v54  ;;  %v9461_v54 = vld [vmem:[#allocation5 + $0x434] ss:$8 sps:$4 sm:$0xff]  }
  0x64   :  { %6724 = vmatprep.subr.bf16.mxu1 %v9315_v58  ;;  %v9388_v58 = vld [vmem:[#allocation5 + $0x2f4] ss:$8 sps:$4 sm:$0xff]  }
  0x66   :  { %6684 = vmatpush2.bf16.msra.mxu0 %v9317_v61  ;;  %v9389_v61 = vld [vmem:[#allocation5 + $0x3f0] ss:$8 sps:$4 sm:$0xff]  }
  0x67   :  { %6725 = vmatpush2.bf16.msra.mxu1 %v9318_v0  ;;  %6685 = vmatprep.subr.bf16.mxu0 %v9319_v1  ;;  %v9392_v0 = vld [vmem:[#allocation5 + $0x2e0] ss:$8 sps:$4 sm:$0xff]  }
  0x68   :  { %6726 = vmatprep.subr.bf16.mxu1 %v9321_v2  ;;  %v9395_v1 = vld [vmem:[#allocation5 + $0x3e0] ss:$8 sps:$4 sm:$0xff]   ;;  %v9400_v2 = vld [vmem:[#allocation5 + $0x2d4] ss:$8 sps:$4 sm:$0xff]  }
  0x6a   :  { %6686 = vmatpush2.bf16.msra.mxu0 %v9323_v4  ;;  %v9398_v4 = vld [vmem:[#allocation5 + $0x2d0] ss:$8 sps:$4 sm:$0xff]  }
  0x6b   :  { %6727 = vmatpush2.bf16.msra.mxu1 %v9324_v5  ;;  %6687 = vmatprep.subr.bf16.mxu0 %v9325_v6  ;;  %v9401_v5 = vld [vmem:[#allocation5 + $0x3d0] ss:$8 sps:$4 sm:$0xff]   ;;  %v9406_v6 = vld [vmem:[#allocation5 + $0x2c4] ss:$8 sps:$4 sm:$0xff]  }
  0x6c   :  { %6728 = vmatprep.subr.bf16.mxu1 %v9327_v7  ;;  %v9409_v7 = vld [vmem:[#allocation5 + $0x3c4] ss:$8 sps:$4 sm:$0xff]  }
  0x6e   :  { %6688 = vmatpush2.bf16.msra.mxu0 %v9329_v8  ;;  %v9404_v8 = vld [vmem:[#allocation5 + $0x2c0] ss:$8 sps:$4 sm:$0xff]  }
  0x6f   :  { %6729 = vmatpush2.bf16.msra.mxu1 %v9330_v9  ;;  %6689 = vmatprep.subr.bf16.mxu0 %v9331_v10  ;;  %v9407_v9 = vld [vmem:[#allocation5 + $0x3c0] ss:$8 sps:$4 sm:$0xff]   ;;  %v9412_v10 = vld [vmem:[#allocation5 + $0x2b4] ss:$8 sps:$4 sm:$0xff]  }
  0x70   :  { %6730 = vmatprep.subr.bf16.mxu1 %v9333_v11  ;;  %v9415_v11 = vld [vmem:[#allocation5 + $0x3b4] ss:$8 sps:$4 sm:$0xff]  }
  0x72   :  { %6690 = vmatpush2.bf16.msra.mxu0 %v9335_v12  ;;  %v9410_v12 = vld [vmem:[#allocation5 + $0x2b0] ss:$8 sps:$4 sm:$0xff]  }
  0x73   :  { %6731 = vmatpush2.bf16.msra.mxu1 %v9336_v13  ;;  %6741 = vmatprep.subr.bf16.mxu0 %v9340_v14  ;;  %v9413_v13 = vld [vmem:[#allocation5 + $0x3b0] ss:$8 sps:$4 sm:$0xff]   ;;  %v9418_v14 = vld [vmem:[#allocation5 + $0x2a4] ss:$8 sps:$4 sm:$0xff]  }
  0x74   :  { %6782 = vmatprep.subr.bf16.mxu1 %v9343_v15  ;;  %v9421_v15 = vld [vmem:[#allocation5 + $0x3a4] ss:$8 sps:$4 sm:$0xff]  }
  0x75   :  { %6692 = vmatmul.mubr.bf16.vlgmr.msra.gmra.mxu0 %v439_v16  ;;  %v9416_v16 = vld [vmem:[#allocation5 + $0x2a0] ss:$8 sps:$4 sm:$0xff]  }
  0x76   :  { %6733 = vmatmul.mubr.bf16.vlgmr.msra.gmra.mxu1 %v441_v17  ;;  %6742 = vmatpush1.bf16.msra.mxu0 %v9338_v18  ;;  %v9419_v17 = vld [vmem:[#allocation5 + $0x3a0] ss:$8 sps:$4 sm:$0xff]   ;;  %v9424_v18 = vld [vmem:[#allocation5 + $0x294] ss:$8 sps:$4 sm:$0xff]  }
  0x77   :  { %6783 = vmatpush1.bf16.msra.mxu1 %v9341_v19  ;;  %6743 = vmatprep.subr.bf16.mxu0 %v9346_v20  ;;  %v9427_v19 = vld [vmem:[#allocation5 + $0x394] ss:$8 sps:$4 sm:$0xff]   ;;  %v9422_v20 = vld [vmem:[#allocation5 + $0x290] ss:$8 sps:$4 sm:$0xff]  }
  0x78   :  { %6784 = vmatprep.subr.bf16.mxu1 %v9349_v21  ;;  %6773 = vmatprep.mubr.bf16.mxu0 %v444_v53  ;;  %v9425_v21 = vld [vmem:[#allocation5 + $0x390] ss:$8 sps:$4 sm:$0xff]   ;;  %v9456_v53 = vld [vmem:[#allocation5 + $0x540] ss:$8 sps:$4 sm:$0xff]  }
  0x79   :  { %6814 = vmatprep.mubr.bf16.mxu1 %v446_v57  ;;  %v9462_v57 = vld [vmem:[#allocation5 + $0x530] ss:$8 sps:$4 sm:$0xff]  }
  0x7a   :  { %6744 = vmatpush1.bf16.msra.mxu0 %v9344_v22  ;;  %v9430_v22 = vld [vmem:[#allocation5 + $0x284] ss:$8 sps:$4 sm:$0xff]  }
  0x7b   :  { %6785 = vmatpush1.bf16.msra.mxu1 %v9347_v23  ;;  %6745 = vmatprep.subr.bf16.mxu0 %v9352_v24  ;;  %v9433_v23 = vld [vmem:[#allocation5 + $0x384] ss:$8 sps:$4 sm:$0xff]   ;;  %v9428_v24 = vld [vmem:[#allocation5 + $0x280] ss:$8 sps:$4 sm:$0xff]  }
  0x7c   :  { %6786 = vmatprep.subr.bf16.mxu1 %v9355_v25  ;;  %v9431_v25 = vld [vmem:[#allocation5 + $0x380] ss:$8 sps:$4 sm:$0xff]  }
  0x7e   :  { %6746 = vmatpush1.bf16.msra.mxu0 %v9350_v26  ;;  %v9437_v26 = vld [vmem:[#allocation5 + $0x474] ss:$8 sps:$4 sm:$0xff]  }
  0x7f   :  { %6787 = vmatpush1.bf16.msra.mxu1 %v9353_v27  ;;  %6747 = vmatprep.subr.bf16.mxu0 %v9358_v28  ;;  %v9440_v27 = vld [vmem:[#allocation5 + $0x574] ss:$8 sps:$4 sm:$0xff]   ;;  %v443_v28 = vpack.c.bf16 %v10977_v44, %v10977_v44 }
  0x80   :  { %6788 = vmatprep.subr.bf16.mxu1 %v9361_v29  ;;  %v445_v29 = vpack.c.bf16 %v10982_v50, %v10982_v50  ;;  %v9455_v50 = vld [vmem:[#allocation5 + $0x444] ss:$8 sps:$4 sm:$0xff]  }
  0x82   :  { %6748 = vmatpush1.bf16.msra.mxu0 %v9356_v30  ;;  %v9435_v30 = vld [vmem:[#allocation5 + $0x470] ss:$8 sps:$4 sm:$0xff]  }
  0x83   :  { %6789 = vmatpush1.bf16.msra.mxu1 %v9359_v31  ;;  %6749 = vmatprep.subr.bf16.mxu0 %v9364_v32  ;;  %v9438_v31 = vld [vmem:[#allocation5 + $0x570] ss:$8 sps:$4 sm:$0xff]   ;;  %v9443_v32 = vld [vmem:[#allocation5 + $0x464] ss:$8 sps:$4 sm:$0xff]  }
  0x84   :  { %6790 = vmatprep.subr.bf16.mxu1 %v9367_v33  ;;  %v73_v33 = vld [vmem:[#allocation2 + $0x10] sm:$0xff] }
  0x86   :  { %6750 = vmatpush1.bf16.msra.mxu0 %v9362_v34  ;;  %v9446_v34 = vld [vmem:[#allocation5 + $0x564] ss:$8 sps:$4 sm:$0xff]  }
  0x87   :  { %6791 = vmatpush1.bf16.msra.mxu1 %v9365_v35  ;;  %6751 = vmatprep.subr.bf16.mxu0 %v9370_v36  ;;  %v10991_v35 = vrot.slane %v73_v33, %v10972_v49  ;;  %v137_v36 = vcombine.high %v73_v33, %v73_v33 }
  0x88   :  { %6792 = vmatprep.subr.bf16.mxu1 %v9373_v37  ;;  %v9441_v37 = vld [vmem:[#allocation5 + $0x460] ss:$8 sps:$4 sm:$0xff]  }
  0x8a   :  { %6752 = vmatpush1.bf16.msra.mxu0 %v9368_v38  ;;  %v152_v38 = vcombine.high %v10991_v35, %v10991_v35 }
  0x8b   :  { %6793 = vmatpush1.bf16.msra.mxu1 %v9371_v39  ;;  %6753 = vmatprep.subr.bf16.mxu0 %v9376_v40  ;;  %v10996_v39 = vrot.slane %v137_v36, %v10972_v49  ;;  %v9444_v40 = vld [vmem:[#allocation5 + $0x560] ss:$8 sps:$4 sm:$0xff]   ;;  %v9522_v36 = vld [vmem:[#allocation5 + $0x590] ss:$8 sps:$4 sm:$0xff]  }
  0x8c   :  { %6794 = vmatprep.subr.bf16.mxu1 %v9379_v41  ;;  %v9449_v41 = vld [vmem:[#allocation5 + $0x454] ss:$8 sps:$4 sm:$0xff]   ;;  %v448_v44 = vpack.c.bf16 %v152_v38, %v152_v38  ;;  %v9530_v38 = vld [vmem:[#allocation5 + $0x584] ss:$8 sps:$4 sm:$0xff]  }
  0x8d   :  { %v153_v45 = vcombine.high %v10996_v39, %v10996_v39 }
  0x8e   :  { %6754 = vmatpush1.bf16.msra.mxu0 %v9374_v46  ;;  %v9447_v46 = vld [vmem:[#allocation5 + $0x450] ss:$8 sps:$4 sm:$0xff]  }
  0x8f   :  { %6795 = vmatpush1.bf16.msra.mxu1 %v9377_v47  ;;  %6755 = vmatprep.subr.bf16.mxu0 %v9382_v51  ;;  %v450_v47 = vpack.c.bf16 %v153_v45, %v153_v45  ;;  %v9458_v51 = vld [vmem:[#allocation5 + $0x544] ss:$8 sps:$4 sm:$0xff]   ;;  %v9534_v45 = vld [vmem:[#allocation5 + $0x674] ss:$8 sps:$4 sm:$0xff]  }
  0x90   :  { %6796 = vmatprep.subr.bf16.mxu1 %v9385_v52  ;;  %v9453_v52 = vld [vmem:[#allocation5 + $0x440] ss:$8 sps:$4 sm:$0xff]  }
  0x92   :  { %6756 = vmatpush1.bf16.msra.mxu0 %v9380_v55  ;;  %v9464_v55 = vld [vmem:[#allocation5 + $0x534] ss:$8 sps:$4 sm:$0xff]  }
  0x93   :  { %6797 = vmatpush1.bf16.msra.mxu1 %v9383_v56  ;;  %6757 = vmatprep.subr.bf16.mxu0 %v9388_v58  ;;  %v9459_v56 = vld [vmem:[#allocation5 + $0x430] ss:$8 sps:$4 sm:$0xff]   ;;  %v9467_v58 = vld [vmem:[#allocation5 + $0x424] ss:$8 sps:$4 sm:$0xff]  }
  0x94   :  { %6798 = vmatprep.subr.bf16.mxu1 %v9391_v59  ;;  %v9470_v59 = vld [vmem:[#allocation5 + $0x524] ss:$8 sps:$4 sm:$0xff]  }
  0x96   :  { %6758 = vmatpush2.bf16.msra.mxu0 %v9386_v60  ;;  %v9465_v60 = vld [vmem:[#allocation5 + $0x420] ss:$8 sps:$4 sm:$0xff]  }
  0x97   :  { %6799 = vmatpush2.bf16.msra.mxu1 %v9389_v61  ;;  %6759 = vmatprep.subr.bf16.mxu0 %v9394_v62  ;;  %v9468_v61 = vld [vmem:[#allocation5 + $0x520] ss:$8 sps:$4 sm:$0xff]   ;;  %v9473_v62 = vld [vmem:[#allocation5 + $0x414] ss:$8 sps:$4 sm:$0xff]  }
  0x98   :  { %6800 = vmatprep.subr.bf16.mxu1 %v9397_v63  ;;  %v9476_v63 = vld [vmem:[#allocation5 + $0x514] ss:$8 sps:$4 sm:$0xff]  }
  0x9a   :  { %6760 = vmatpush2.bf16.msra.mxu0 %v9392_v0  ;;  %v9471_v0 = vld [vmem:[#allocation5 + $0x410] ss:$8 sps:$4 sm:$0xff]  }
  0x9b   :  { %6801 = vmatpush2.bf16.msra.mxu1 %v9395_v1  ;;  %6761 = vmatprep.subr.bf16.mxu0 %v9400_v2  ;;  %v9474_v1 = vld [vmem:[#allocation5 + $0x510] ss:$8 sps:$4 sm:$0xff]   ;;  %v9479_v2 = vld [vmem:[#allocation5 + $0x404] ss:$8 sps:$4 sm:$0xff]  }
  0x9c   :  { %6802 = vmatprep.subr.bf16.mxu1 %v9403_v3  ;;  %v9482_v3 = vld [vmem:[#allocation5 + $0x504] ss:$8 sps:$4 sm:$0xff]  }
  0x9e   :  { %6762 = vmatpush2.bf16.msra.mxu0 %v9398_v4  ;;  %v9477_v4 = vld [vmem:[#allocation5 + $0x400] ss:$8 sps:$4 sm:$0xff]  }
  0x9f   :  { %6803 = vmatpush2.bf16.msra.mxu1 %v9401_v5  ;;  %6763 = vmatprep.subr.bf16.mxu0 %v9406_v6  ;;  %v9480_v5 = vld [vmem:[#allocation5 + $0x500] ss:$8 sps:$4 sm:$0xff]   ;;  %v9485_v6 = vld [vmem:[#allocation5 + $0x4f4] ss:$8 sps:$4 sm:$0xff]  }
  0xa0   :  { %6804 = vmatprep.subr.bf16.mxu1 %v9409_v7  ;;  %v9488_v7 = vld [vmem:[#allocation5 + $0x5f4] ss:$8 sps:$4 sm:$0xff]  }
  0xa2   :  { %6764 = vmatpush2.bf16.msra.mxu0 %v9404_v8  ;;  %v9483_v8 = vld [vmem:[#allocation5 + $0x4f0] ss:$8 sps:$4 sm:$0xff]  }
  0xa3   :  { %6805 = vmatpush2.bf16.msra.mxu1 %v9407_v9  ;;  %6765 = vmatprep.subr.bf16.mxu0 %v9412_v10  ;;  %v9486_v9 = vld [vmem:[#allocation5 + $0x5f0] ss:$8 sps:$4 sm:$0xff]   ;;  %v9491_v10 = vld [vmem:[#allocation5 + $0x4e4] ss:$8 sps:$4 sm:$0xff]  }
  0xa4   :  { %6806 = vmatprep.subr.bf16.mxu1 %v9415_v11  ;;  %v9494_v11 = vld [vmem:[#allocation5 + $0x5e4] ss:$8 sps:$4 sm:$0xff]  }
  0xa6   :  { %6766 = vmatpush2.bf16.msra.mxu0 %v9410_v12  ;;  %v9489_v12 = vld [vmem:[#allocation5 + $0x4e0] ss:$8 sps:$4 sm:$0xff]  }
  0xa7   :  { %6807 = vmatpush2.bf16.msra.mxu1 %v9413_v13  ;;  %6767 = vmatprep.subr.bf16.mxu0 %v9418_v14  ;;  %v9492_v13 = vld [vmem:[#allocation5 + $0x5e0] ss:$8 sps:$4 sm:$0xff]   ;;  %v9497_v14 = vld [vmem:[#allocation5 + $0x4d4] ss:$8 sps:$4 sm:$0xff]  }
  0xa8   :  { %6808 = vmatprep.subr.bf16.mxu1 %v9421_v15  ;;  %v9500_v15 = vld [vmem:[#allocation5 + $0x5d4] ss:$8 sps:$4 sm:$0xff]  }
  0xaa   :  { %6768 = vmatpush2.bf16.msra.mxu0 %v9416_v16  ;;  %v9495_v16 = vld [vmem:[#allocation5 + $0x4d0] ss:$8 sps:$4 sm:$0xff]  }
  0xab   :  { %6809 = vmatpush2.bf16.msra.mxu1 %v9419_v17  ;;  %6769 = vmatprep.subr.bf16.mxu0 %v9424_v18  ;;  %v9498_v17 = vld [vmem:[#allocation5 + $0x5d0] ss:$8 sps:$4 sm:$0xff]   ;;  %v9503_v18 = vld [vmem:[#allocation5 + $0x4c4] ss:$8 sps:$4 sm:$0xff]  }
  0xac   :  { %6810 = vmatprep.subr.bf16.mxu1 %v9427_v19  ;;  %v9506_v19 = vld [vmem:[#allocation5 + $0x5c4] ss:$8 sps:$4 sm:$0xff]  }
  0xae   :  { %6770 = vmatpush2.bf16.msra.mxu0 %v9422_v20  ;;  %v9501_v20 = vld [vmem:[#allocation5 + $0x4c0] ss:$8 sps:$4 sm:$0xff]  }
  0xaf   :  { %6811 = vmatpush2.bf16.msra.mxu1 %v9425_v21  ;;  %6771 = vmatprep.subr.bf16.mxu0 %v9430_v22  ;;  %v9504_v21 = vld [vmem:[#allocation5 + $0x5c0] ss:$8 sps:$4 sm:$0xff]   ;;  %v9509_v22 = vld [vmem:[#allocation5 + $0x4b4] ss:$8 sps:$4 sm:$0xff]  }
  0xb0   :  { %6812 = vmatprep.subr.bf16.mxu1 %v9433_v23  ;;  %v9512_v23 = vld [vmem:[#allocation5 + $0x5b4] ss:$8 sps:$4 sm:$0xff]  }
  0xb2   :  { %6772 = vmatpush2.bf16.msra.mxu0 %v9428_v24  ;;  %v9507_v24 = vld [vmem:[#allocation5 + $0x4b0] ss:$8 sps:$4 sm:$0xff]  }
  0xb3   :  { %6813 = vmatpush2.bf16.msra.mxu1 %v9431_v25  ;;  %6823 = vmatprep.subr.bf16.mxu0 %v9437_v26  ;;  %v9510_v25 = vld [vmem:[#allocation5 + $0x5b0] ss:$8 sps:$4 sm:$0xff]   ;;  %v9515_v26 = vld [vmem:[#allocation5 + $0x4a4] ss:$8 sps:$4 sm:$0xff]  }
  0xb4   :  { %6864 = vmatprep.subr.bf16.mxu1 %v9440_v27  ;;  %v9518_v27 = vld [vmem:[#allocation5 + $0x5a4] ss:$8 sps:$4 sm:$0xff]  }
  0xb5   :  { %6774 = vmatmul.mubr.bf16.vlgmr.msra.gmra.mxu0 %v443_v28  ;;  %v9513_v28 = vld [vmem:[#allocation5 + $0x4a0] ss:$8 sps:$4 sm:$0xff]  }
  0xb6   :  { %6815 = vmatmul.mubr.bf16.vlgmr.msra.gmra.mxu1 %v445_v29  ;;  %6824 = vmatpush1.bf16.msra.mxu0 %v9435_v30  ;;  %v74_v29 = vld [vmem:[#allocation2 + $0x18] sm:$0xff]  ;;  %v9516_v30 = vld [vmem:[#allocation5 + $0x5a0] ss:$8 sps:$4 sm:$0xff]  }
  0xb7   :  { %6865 = vmatpush1.bf16.msra.mxu1 %v9438_v31  ;;  %6825 = vmatprep.subr.bf16.mxu0 %v9443_v32  ;;  %v9521_v31 = vld [vmem:[#allocation5 + $0x494] ss:$8 sps:$4 sm:$0xff]   ;;  %v154_v33 = vcombine.high %v74_v29, %v74_v29 }
  0xb8   :  { %6866 = vmatprep.subr.bf16.mxu1 %v9446_v34  ;;  %6855 = vmatprep.mubr.bf16.mxu0 %v448_v44  ;;  %v9524_v32 = vld [vmem:[#allocation5 + $0x594] ss:$8 sps:$4 sm:$0xff]   ;;  %v9519_v34 = vld [vmem:[#allocation5 + $0x490] ss:$8 sps:$4 sm:$0xff]   ;;  %v9528_v44 = vld [vmem:[#allocation5 + $0x580] ss:$8 sps:$4 sm:$0xff]  }
  0xb9   :  { %6896 = vmatprep.mubr.bf16.mxu1 %v450_v47 }
  0xba   :  { %6826 = vmatpush1.bf16.msra.mxu0 %v9441_v37  ;;  %v9527_v37 = vld [vmem:[#allocation5 + $0x484] ss:$8 sps:$4 sm:$0xff]  }
  0xbb   :  { %6867 = vmatpush1.bf16.msra.mxu1 %v9444_v40  ;;  %6827 = vmatprep.subr.bf16.mxu0 %v9449_v41  ;;  %v11001_v40 = vrot.slane %v74_v29, %v10972_v49  ;;  %v11004_v41 = vrot.slane %v154_v33, %v10972_v49  ;;  %v9595_v29 = vld [vmem:[#allocation5 + $0x7d0] ss:$8 sps:$4 sm:$0xff]   ;;  %v9601_v33 = vld [vmem:[#allocation5 + $0x7c0] ss:$8 sps:$4 sm:$0xff]  }
  0xbc   :  { %6868 = vmatprep.subr.bf16.mxu1 %v9452_v42  ;;  %v9525_v42 = vld [vmem:[#allocation5 + $0x480] ss:$8 sps:$4 sm:$0xff]  }
  0xbd   :  { %v169_v47 = vcombine.high %v11001_v40, %v11001_v40 }
  0xbe   :  { %6828 = vmatpush1.bf16.msra.mxu0 %v9447_v46  ;;  %v9537_v46 = vld [vmem:[#allocation5 + $0x774] ss:$8 sps:$4 sm:$0xff]  }
  0xbf   :  { %6869 = vmatpush1.bf16.msra.mxu1 %v9450_v48  ;;  %6829 = vmatprep.subr.bf16.mxu0 %v9455_v50  ;;  %v170_v48 = vcombine.high %v11004_v41, %v11004_v41  ;;  %v447_v50 = vpack.c.bf16 %v10991_v35, %v10991_v35  ;;  %v9546_v35 = vld [vmem:[#allocation5 + $0x654] ss:$8 sps:$4 sm:$0xff]  }
  0xc0   :  { %6870 = vmatprep.subr.bf16.mxu1 %v9458_v51  ;;  %v449_v51 = vpack.c.bf16 %v10996_v39, %v10996_v39  ;;  %v9549_v39 = vld [vmem:[#allocation5 + $0x754] ss:$8 sps:$4 sm:$0xff]  }
  0xc2   :  { %6830 = vmatpush1.bf16.msra.mxu0 %v9453_v52  ;;  %v9532_v52 = vld [vmem:[#allocation5 + $0x670] ss:$8 sps:$4 sm:$0xff]  }
  0xc3   :  { %6871 = vmatpush1.bf16.msra.mxu1 %v9456_v53  ;;  %6831 = vmatprep.subr.bf16.mxu0 %v9461_v54  ;;  %v9535_v53 = vld [vmem:[#allocation5 + $0x770] ss:$8 sps:$4 sm:$0xff]   ;;  %v9540_v54 = vld [vmem:[#allocation5 + $0x664] ss:$8 sps:$4 sm:$0xff]  }
  0xc4   :  { %6872 = vmatprep.subr.bf16.mxu1 %v9464_v55  ;;  %v9543_v55 = vld [vmem:[#allocation5 + $0x764] ss:$8 sps:$4 sm:$0xff]  }
  0xc6   :  { %6832 = vmatpush1.bf16.msra.mxu0 %v9459_v56  ;;  %v452_v56 = vpack.c.bf16 %v169_v47, %v169_v47  ;;  %v9613_v47 = vld [vmem:[#allocation5 + $0x7a0] ss:$8 sps:$4 sm:$0xff]  }
  0xc7   :  { %6873 = vmatpush1.bf16.msra.mxu1 %v9462_v57  ;;  %6833 = vmatprep.subr.bf16.mxu0 %v9467_v58  ;;  %v454_v57 = vpack.c.bf16 %v170_v48, %v170_v48  ;;  %v9538_v58 = vld [vmem:[#allocation5 + $0x660] ss:$8 sps:$4 sm:$0xff]   ;;  %v9618_v48 = vld [vmem:[#allocation5 + $0x694] ss:$8 sps:$4 sm:$0xff]  }
  0xc8   :  { %6874 = vmatprep.subr.bf16.mxu1 %v9470_v59  ;;  %v9541_v59 = vld [vmem:[#allocation5 + $0x760] ss:$8 sps:$4 sm:$0xff]  }
  0xca   :  { %6834 = vmatpush1.bf16.msra.mxu0 %v9465_v60  ;;  %v9544_v60 = vld [vmem:[#allocation5 + $0x650] ss:$8 sps:$4 sm:$0xff]  }
  0xcb   :  { %6875 = vmatpush1.bf16.msra.mxu1 %v9468_v61  ;;  %6835 = vmatprep.subr.bf16.mxu0 %v9473_v62  ;;  %v9547_v61 = vld [vmem:[#allocation5 + $0x750] ss:$8 sps:$4 sm:$0xff]   ;;  %v9552_v62 = vld [vmem:[#allocation5 + $0x644] ss:$8 sps:$4 sm:$0xff]  }
  0xcc   :  { %6876 = vmatprep.subr.bf16.mxu1 %v9476_v63  ;;  %v9555_v63 = vld [vmem:[#allocation5 + $0x744] ss:$8 sps:$4 sm:$0xff]  }
  0xce   :  { %6836 = vmatpush1.bf16.msra.mxu0 %v9471_v0  ;;  %v9550_v0 = vld [vmem:[#allocation5 + $0x640] ss:$8 sps:$4 sm:$0xff]  }
  0xcf   :  { %6877 = vmatpush1.bf16.msra.mxu1 %v9474_v1  ;;  %6837 = vmatprep.subr.bf16.mxu0 %v9479_v2  ;;  %v9553_v1 = vld [vmem:[#allocation5 + $0x740] ss:$8 sps:$4 sm:$0xff]   ;;  %v9558_v2 = vld [vmem:[#allocation5 + $0x634] ss:$8 sps:$4 sm:$0xff]  }
  0xd0   :  { %6878 = vmatprep.subr.bf16.mxu1 %v9482_v3  ;;  %v9561_v3 = vld [vmem:[#allocation5 + $0x734] ss:$8 sps:$4 sm:$0xff]  }
  0xd2   :  { %6838 = vmatpush1.bf16.msra.mxu0 %v9477_v4  ;;  %v9556_v4 = vld [vmem:[#allocation5 + $0x630] ss:$8 sps:$4 sm:$0xff]  }
  0xd3   :  { %6879 = vmatpush1.bf16.msra.mxu1 %v9480_v5  ;;  %6839 = vmatprep.subr.bf16.mxu0 %v9485_v6  ;;  %v9559_v5 = vld [vmem:[#allocation5 + $0x730] ss:$8 sps:$4 sm:$0xff]   ;;  %v9564_v6 = vld [vmem:[#allocation5 + $0x624] ss:$8 sps:$4 sm:$0xff]  }
  0xd4   :  { %6880 = vmatprep.subr.bf16.mxu1 %v9488_v7  ;;  %v9567_v7 = vld [vmem:[#allocation5 + $0x724] ss:$8 sps:$4 sm:$0xff]  }
  0xd6   :  { %6840 = vmatpush2.bf16.msra.mxu0 %v9483_v8  ;;  %v9562_v8 = vld [vmem:[#allocation5 + $0x620] ss:$8 sps:$4 sm:$0xff]  }
  0xd7   :  { %6881 = vmatpush2.bf16.msra.mxu1 %v9486_v9  ;;  %6841 = vmatprep.subr.bf16.mxu0 %v9491_v10  ;;  %v9565_v9 = vld [vmem:[#allocation5 + $0x720] ss:$8 sps:$4 sm:$0xff]   ;;  %v9570_v10 = vld [vmem:[#allocation5 + $0x614] ss:$8 sps:$4 sm:$0xff]  }
  0xd8   :  { %6882 = vmatprep.subr.bf16.mxu1 %v9494_v11  ;;  %v9573_v11 = vld [vmem:[#allocation5 + $0x714] ss:$8 sps:$4 sm:$0xff]  }
  0xda   :  { %6842 = vmatpush2.bf16.msra.mxu0 %v9489_v12  ;;  %v9568_v12 = vld [vmem:[#allocation5 + $0x610] ss:$8 sps:$4 sm:$0xff]  }
  0xdb   :  { %6883 = vmatpush2.bf16.msra.mxu1 %v9492_v13  ;;  %6843 = vmatprep.subr.bf16.mxu0 %v9497_v14  ;;  %v9571_v13 = vld [vmem:[#allocation5 + $0x710] ss:$8 sps:$4 sm:$0xff]   ;;  %v9576_v14 = vld [vmem:[#allocation5 + $0x604] ss:$8 sps:$4 sm:$0xff]  }
  0xdc   :  { %6884 = vmatprep.subr.bf16.mxu1 %v9500_v15  ;;  %v9579_v15 = vld [vmem:[#allocation5 + $0x704] ss:$8 sps:$4 sm:$0xff]  }
  0xde   :  { %6844 = vmatpush2.bf16.msra.mxu0 %v9495_v16  ;;  %v9574_v16 = vld [vmem:[#allocation5 + $0x600] ss:$8 sps:$4 sm:$0xff]  }
  0xdf   :  { %6885 = vmatpush2.bf16.msra.mxu1 %v9498_v17  ;;  %6845 = vmatprep.subr.bf16.mxu0 %v9503_v18  ;;  %v9577_v17 = vld [vmem:[#allocation5 + $0x700] ss:$8 sps:$4 sm:$0xff]   ;;  %v9582_v18 = vld [vmem:[#allocation5 + $0x6f4] ss:$8 sps:$4 sm:$0xff]  }
  0xe0   :  { %6886 = vmatprep.subr.bf16.mxu1 %v9506_v19  ;;  %v9585_v19 = vld [vmem:[#allocation5 + $0x7f4] ss:$8 sps:$4 sm:$0xff]  }
  0xe2   :  { %6846 = vmatpush2.bf16.msra.mxu0 %v9501_v20  ;;  %v9580_v20 = vld [vmem:[#allocation5 + $0x6f0] ss:$8 sps:$4 sm:$0xff]  }
  0xe3   :  { %6887 = vmatpush2.bf16.msra.mxu1 %v9504_v21  ;;  %6847 = vmatprep.subr.bf16.mxu0 %v9509_v22  ;;  %v9583_v21 = vld [vmem:[#allocation5 + $0x7f0] ss:$8 sps:$4 sm:$0xff]   ;;  %v9588_v22 = vld [vmem:[#allocation5 + $0x6e4] ss:$8 sps:$4 sm:$0xff]  }
  0xe4   :  { %6888 = vmatprep.subr.bf16.mxu1 %v9512_v23  ;;  %v9591_v23 = vld [vmem:[#allocation5 + $0x7e4] ss:$8 sps:$4 sm:$0xff]  }
  0xe6   :  { %6848 = vmatpush2.bf16.msra.mxu0 %v9507_v24  ;;  %v9586_v24 = vld [vmem:[#allocation5 + $0x6e0] ss:$8 sps:$4 sm:$0xff]  }
  0xe7   :  { %6889 = vmatpush2.bf16.msra.mxu1 %v9510_v25  ;;  %6849 = vmatprep.subr.bf16.mxu0 %v9515_v26  ;;  %v9589_v25 = vld [vmem:[#allocation5 + $0x7e0] ss:$8 sps:$4 sm:$0xff]   ;;  %v9594_v26 = vld [vmem:[#allocation5 + $0x6d4] ss:$8 sps:$4 sm:$0xff]  }
  0xe8   :  { %6890 = vmatprep.subr.bf16.mxu1 %v9518_v27  ;;  %v9597_v27 = vld [vmem:[#allocation5 + $0x7d4] ss:$8 sps:$4 sm:$0xff]  }
  0xea   :  { %6850 = vmatpush2.bf16.msra.mxu0 %v9513_v28  ;;  %v9592_v28 = vld [vmem:[#allocation5 + $0x6d0] ss:$8 sps:$4 sm:$0xff]  }
  0xeb   :  { %6891 = vmatpush2.bf16.msra.mxu1 %v9516_v30  ;;  %6851 = vmatprep.subr.bf16.mxu0 %v9521_v31  ;;  %v9600_v30 = vld [vmem:[#allocation5 + $0x6c4] ss:$8 sps:$4 sm:$0xff]  }
  0xec   :  { %6892 = vmatprep.subr.bf16.mxu1 %v9524_v32  ;;  %v9603_v31 = vld [vmem:[#allocation5 + $0x7c4] ss:$8 sps:$4 sm:$0xff]   ;;  %v9598_v32 = vld [vmem:[#allocation5 + $0x6c0] ss:$8 sps:$4 sm:$0xff]  }
  0xee   :  { %6852 = vmatpush2.bf16.msra.mxu0 %v9519_v34  ;;  %v9606_v34 = vld [vmem:[#allocation5 + $0x6b4] ss:$8 sps:$4 sm:$0xff]  }
  0xef   :  { %6893 = vmatpush2.bf16.msra.mxu1 %v9522_v36  ;;  %6853 = vmatprep.subr.bf16.mxu0 %v9527_v37  ;;  %v9609_v36 = vld [vmem:[#allocation5 + $0x7b4] ss:$8 sps:$4 sm:$0xff]   ;;  %v9604_v37 = vld [vmem:[#allocation5 + $0x6b0] ss:$8 sps:$4 sm:$0xff]  }
  0xf0   :  { %6894 = vmatprep.subr.bf16.mxu1 %v9530_v38  ;;  %v9607_v38 = vld [vmem:[#allocation5 + $0x7b0] ss:$8 sps:$4 sm:$0xff]  }
  0xf2   :  { %6854 = vmatpush2.bf16.msra.mxu0 %v9525_v42  ;;  %v9612_v42 = vld [vmem:[#allocation5 + $0x6a4] ss:$8 sps:$4 sm:$0xff]  }
  0xf3   :  { %6895 = vmatpush2.bf16.msra.mxu1 %v9528_v44  ;;  %6905 = vmatprep.subr.bf16.mxu0 %v9534_v45  ;;  %v9615_v44 = vld [vmem:[#allocation5 + $0x7a4] ss:$8 sps:$4 sm:$0xff]  }
  0xf4   :  { %6946 = vmatprep.subr.bf16.mxu1 %v9537_v46  ;;  %v75_v45 = vld [vmem:[#allocation2 + $0x20] sm:$0xff] }
  0xf5   :  { %6856 = vmatmul.mubr.bf16.vlgmr.msra.gmra.mxu0 %v447_v50  ;;  %v9610_v46 = vld [vmem:[#allocation5 + $0x6a0] ss:$8 sps:$4 sm:$0xff]   ;;  %v9621_v50 = vld [vmem:[#allocation5 + $0x794] ss:$8 sps:$4 sm:$0xff]  }
  0xf6   :  { %6897 = vmatmul.mubr.bf16.vlgmr.msra.gmra.mxu1 %v449_v51  ;;  %6906 = vmatpush1.bf16.msra.mxu0 %v9532_v52  ;;  %v171_v51 = vcombine.high %v75_v45, %v75_v45  ;;  %v9616_v52 = vld [vmem:[#allocation5 + $0x690] ss:$8 sps:$4 sm:$0xff]  }
  0xf7   :  { %6947 = vmatpush1.bf16.msra.mxu1 %v9535_v53  ;;  %6907 = vmatprep.subr.bf16.mxu0 %v9540_v54  ;;  %v9619_v53 = vld [vmem:[#allocation5 + $0x790] ss:$8 sps:$4 sm:$0xff]   ;;  %v9624_v54 = vld [vmem:[#allocation5 + $0x684] ss:$8 sps:$4 sm:$0xff]  }
  0xf8   :  { %6948 = vmatprep.subr.bf16.mxu1 %v9543_v55  ;;  %6937 = vmatprep.mubr.bf16.mxu0 %v452_v56  ;;  %v9627_v55 = vld [vmem:[#allocation5 + $0x784] ss:$8 sps:$4 sm:$0xff]   ;;  %v11015_v56 = vrot.slane %v75_v45, %v10972_v49  ;;  %v9665_v45 = vld [vmem:[#allocation5 + $0x810] ss:$8 sps:$4 sm:$0xff]  }
  0xf9   :  { %6978 = vmatprep.mubr.bf16.mxu1 %v454_v57  ;;  %v11018_v57 = vrot.slane %v171_v51, %v10972_v49  ;;  %v9674_v51 = vld [vmem:[#allocation5 + $0x900] ss:$8 sps:$4 sm:$0xff]  }
  0xfa   :  { %6908 = vmatpush1.bf16.msra.mxu0 %v9538_v58  ;;  %v9622_v58 = vld [vmem:[#allocation5 + $0x680] ss:$8 sps:$4 sm:$0xff]  }
  0xfb   :  { %6949 = vmatpush1.bf16.msra.mxu1 %v9541_v59  ;;  %6909 = vmatprep.subr.bf16.mxu0 %v9546_v35  ;;  %v9625_v59 = vld [vmem:[#allocation5 + $0x780] ss:$8 sps:$4 sm:$0xff]  }
  0xfc   :  { %6950 = vmatprep.subr.bf16.mxu1 %v9549_v39  ;;  %v1527_v35 = vld [vmem:[#allocation7] sm:$0x3]  ;;  %v1531_v39 = vsub.s32 0, %v10969_v43 }
  0xfe   :  { %6910 = vmatpush1.bf16.msra.mxu0 %v9544_v60  ;;  %v9631_v60 = vld [vmem:[#allocation5 + $0x874] ss:$8 sps:$4 sm:$0xff]  }
  0xff   :  { %6951 = vmatpush1.bf16.msra.mxu1 %v9547_v61  ;;  %6911 = vmatprep.subr.bf16.mxu0 %v9552_v62  ;;  %v9634_v61 = vld [vmem:[#allocation5 + $0x974] ss:$8 sps:$4 sm:$0xff]   ;;  %v1535_v62 = vsub.s32 1, %v10969_v43  ;;  %v9637_v43 = vld [vmem:[#allocation5 + $0x864] ss:$8 sps:$4 sm:$0xff]  }
 0x100   :  { %6952 = vmatprep.subr.bf16.mxu1 %v9555_v63  ;;  %v186_v63 = vcombine.high %v11015_v56, %v11015_v56 }
 0x102   :  { %6912 = vmatpush1.bf16.msra.mxu0 %v9550_v0  ;;  %v187_v0 = vcombine.high %v11018_v57, %v11018_v57 }
 0x103   :  { %6953 = vmatpush1.bf16.msra.mxu1 %v9553_v1  ;;  %6913 = vmatprep.subr.bf16.mxu0 %v9558_v2  ;;  %v451_v1 = vpack.c.bf16 %v11001_v40, %v11001_v40  ;;  %v453_v2 = vpack.c.bf16 %v11004_v41, %v11004_v41  ;;  %v9635_v40 = vld [vmem:[#allocation5 + $0x860] ss:$8 sps:$4 sm:$0xff]  }
 0x104   :  { %6954 = vmatprep.subr.bf16.mxu1 %v9561_v3  ;;  %v1532_v3 = vrot.slane %v1527_v35, %v1531_v39  ;;  %v9638_v41 = vld [vmem:[#allocation5 + $0x960] ss:$8 sps:$4 sm:$0xff]  }
 0x105   :  { %v9686_v39 = vld [vmem:[#allocation5 + $0x9e0] ss:$8 sps:$4 sm:$0xff]  }
 0x106   :  { %6914 = vmatpush1.bf16.msra.mxu0 %v9556_v4  ;;  %v9629_v4 = vld [vmem:[#allocation5 + $0x870] ss:$8 sps:$4 sm:$0xff]  }
 0x107   :  { %6955 = vmatpush1.bf16.msra.mxu1 %v9559_v5  ;;  %6915 = vmatprep.subr.bf16.mxu0 %v9564_v6  ;;  %v9632_v5 = vld [vmem:[#allocation5 + $0x970] ss:$8 sps:$4 sm:$0xff]   ;;  %v9640_v6 = vld [vmem:[#allocation5 + $0x964] ss:$8 sps:$4 sm:$0xff]  }
 0x108   :  { %6956 = vmatprep.subr.bf16.mxu1 %v9567_v7  ;;  %v1536_v7 = vrot.slane %v1527_v35, %v1535_v62  ;;  %v9683_v35 = vld [vmem:[#allocation5 + $0x8e0] ss:$8 sps:$4 sm:$0xff]   ;;  %v9689_v62 = vld [vmem:[#allocation5 + $0x8d0] ss:$8 sps:$4 sm:$0xff]  }
 0x10a   :  { %6916 = vmatpush1.bf16.msra.mxu0 %v9562_v8  ;;  %v456_v8 = vpack.c.bf16 %v186_v63, %v186_v63  ;;  %v9692_v63 = vld [vmem:[#allocation5 + $0x9d0] ss:$8 sps:$4 sm:$0xff]  }
 0x10b   :  { %6957 = vmatpush1.bf16.msra.mxu1 %v9565_v9  ;;  %6917 = vmatprep.subr.bf16.mxu0 %v9570_v10  ;;  %v458_v9 = vpack.c.bf16 %v187_v0, %v187_v0  ;;  %v9697_v0 = vld [vmem:[#allocation5 + $0x8c4] ss:$8 sps:$4 sm:$0xff]  }
 0x10c   :  { %6958 = vmatprep.subr.bf16.mxu1 %v9573_v11 }
 0x10e   :  { %6918 = vmatpush1.bf16.msra.mxu0 %v9568_v12 }
 0x10f   :  { %6959 = vmatpush1.bf16.msra.mxu1 %v9571_v13  ;;  %6919 = vmatprep.subr.bf16.mxu0 %v9576_v14  ;;  %v9643_v13 = vld [vmem:[#allocation5 + $0x854] ss:$8 sps:$4 sm:$0xff]  }
 0x110   :  { %6960 = vmatprep.subr.bf16.mxu1 %v9579_v15 }
 0x112   :  { %6920 = vmatpush1.bf16.msra.mxu0 %v9574_v16  ;;  %v9646_v16 = vld [vmem:[#allocation5 + $0x954] ss:$8 sps:$4 sm:$0xff]  }
 0x113   :  { %6961 = vmatpush1.bf16.msra.mxu1 %v9577_v17  ;;  %6921 = vmatprep.subr.bf16.mxu0 %v9582_v18 }
 0x114   :  { %6962 = vmatprep.subr.bf16.mxu1 %v9585_v19 }
 0x116   :  { %6922 = vmatpush2.bf16.msra.mxu0 %v9580_v20 }
 0x117   :  { %6963 = vmatpush2.bf16.msra.mxu1 %v9583_v21  ;;  %6923 = vmatprep.subr.bf16.mxu0 %v9588_v22  ;;  %v9641_v21 = vld [vmem:[#allocation5 + $0x850] ss:$8 sps:$4 sm:$0xff]  }
 0x118   :  { %6964 = vmatprep.subr.bf16.mxu1 %v9591_v23  ;;  %v9644_v22 = vld [vmem:[#allocation5 + $0x950] ss:$8 sps:$4 sm:$0xff]  }
 0x11a   :  { %6924 = vmatpush2.bf16.msra.mxu0 %v9586_v24 }
 0x11b   :  { %6965 = vmatpush2.bf16.msra.mxu1 %v9589_v25  ;;  %6925 = vmatprep.subr.bf16.mxu0 %v9594_v26  ;;  %v9649_v26 = vld [vmem:[#allocation5 + $0x844] ss:$8 sps:$4 sm:$0xff]  }
 0x11c   :  { %6966 = vmatprep.subr.bf16.mxu1 %v9597_v27  ;;  %v9652_v27 = vld [vmem:[#allocation5 + $0x944] ss:$8 sps:$4 sm:$0xff]  }
 0x11e   :  { %6926 = vmatpush2.bf16.msra.mxu0 %v9592_v28  ;;  %v9647_v28 = vld [vmem:[#allocation5 + $0x840] ss:$8 sps:$4 sm:$0xff]  }
 0x11f   :  { %6967 = vmatpush2.bf16.msra.mxu1 %v9595_v29  ;;  %6927 = vmatprep.subr.bf16.mxu0 %v9600_v30  ;;  %v9650_v29 = vld [vmem:[#allocation5 + $0x940] ss:$8 sps:$4 sm:$0xff]   ;;  %v9655_v30 = vld [vmem:[#allocation5 + $0x834] ss:$8 sps:$4 sm:$0xff]  }
 0x120   :  { %6968 = vmatprep.subr.bf16.mxu1 %v9603_v31  ;;  %v9658_v31 = vld [vmem:[#allocation5 + $0x934] ss:$8 sps:$4 sm:$0xff]  }
 0x122   :  { %6928 = vmatpush2.bf16.msra.mxu0 %v9598_v32  ;;  %v9653_v32 = vld [vmem:[#allocation5 + $0x830] ss:$8 sps:$4 sm:$0xff]  }
 0x123   :  { %6969 = vmatpush2.bf16.msra.mxu1 %v9601_v33  ;;  %6929 = vmatprep.subr.bf16.mxu0 %v9606_v34  ;;  %v9656_v33 = vld [vmem:[#allocation5 + $0x930] ss:$8 sps:$4 sm:$0xff]   ;;  %v9661_v34 = vld [vmem:[#allocation5 + $0x824] ss:$8 sps:$4 sm:$0xff]  }
 0x124   :  { %6970 = vmatprep.subr.bf16.mxu1 %v9609_v36  ;;  %v9664_v36 = vld [vmem:[#allocation5 + $0x924] ss:$8 sps:$4 sm:$0xff]  }
 0x126   :  { %6930 = vmatpush2.bf16.msra.mxu0 %v9604_v37  ;;  %v9659_v37 = vld [vmem:[#allocation5 + $0x820] ss:$8 sps:$4 sm:$0xff]  }
 0x127   :  { %6971 = vmatpush2.bf16.msra.mxu1 %v9607_v38  ;;  %6931 = vmatprep.subr.bf16.mxu0 %v9612_v42  ;;  %v9662_v38 = vld [vmem:[#allocation5 + $0x920] ss:$8 sps:$4 sm:$0xff]   ;;  %v9667_v42 = vld [vmem:[#allocation5 + $0x814] ss:$8 sps:$4 sm:$0xff]  }
 0x128   :  { %6972 = vmatprep.subr.bf16.mxu1 %v9615_v44  ;;  %v9670_v44 = vld [vmem:[#allocation5 + $0x914] ss:$8 sps:$4 sm:$0xff]  }
 0x12a   :  { %6932 = vmatpush2.bf16.msra.mxu0 %v9610_v46  ;;  %v9668_v46 = vld [vmem:[#allocation5 + $0x910] ss:$8 sps:$4 sm:$0xff]  }
 0x12b   :  { %6973 = vmatpush2.bf16.msra.mxu1 %v9613_v47  ;;  %6933 = vmatprep.subr.bf16.mxu0 %v9618_v48  ;;  %v9673_v47 = vld [vmem:[#allocation5 + $0x804] ss:$8 sps:$4 sm:$0xff]  }
 0x12c   :  { %6974 = vmatprep.subr.bf16.mxu1 %v9621_v50  ;;  %v9676_v48 = vld [vmem:[#allocation5 + $0x904] ss:$8 sps:$4 sm:$0xff]   ;;  %v9671_v50 = vld [vmem:[#allocation5 + $0x800] ss:$8 sps:$4 sm:$0xff]  }
 0x12e   :  { %6934 = vmatpush2.bf16.msra.mxu0 %v9616_v52  ;;  %v9679_v52 = vld [vmem:[#allocation5 + $0x8f4] ss:$8 sps:$4 sm:$0xff]  }
 0x12f   :  { %6975 = vmatpush2.bf16.msra.mxu1 %v9619_v53  ;;  %6935 = vmatprep.subr.bf16.mxu0 %v9624_v54  ;;  %v9682_v53 = vld [vmem:[#allocation5 + $0x9f4] ss:$8 sps:$4 sm:$0xff]   ;;  %v9677_v54 = vld [vmem:[#allocation5 + $0x8f0] ss:$8 sps:$4 sm:$0xff]  }
 0x130   :  { %6976 = vmatprep.subr.bf16.mxu1 %v9627_v55  ;;  %v9680_v55 = vld [vmem:[#allocation5 + $0x9f0] ss:$8 sps:$4 sm:$0xff]  }
 0x132   :  { %6936 = vmatpush2.bf16.msra.mxu0 %v9622_v58  ;;  %v9685_v58 = vld [vmem:[#allocation5 + $0x8e4] ss:$8 sps:$4 sm:$0xff]  }
 0x133   :  { %6977 = vmatpush2.bf16.msra.mxu1 %v9625_v59  ;;  %6987 = vmatprep.subr.bf16.mxu0 %v9631_v60  ;;  %v9688_v59 = vld [vmem:[#allocation5 + $0x9e4] ss:$8 sps:$4 sm:$0xff]   ;;  %v9691_v60 = vld [vmem:[#allocation5 + $0x8d4] ss:$8 sps:$4 sm:$0xff]  }
 0x134   :  { %7028 = vmatprep.subr.bf16.mxu1 %v9634_v61  ;;  %v9694_v61 = vld [vmem:[#allocation5 + $0x9d4] ss:$8 sps:$4 sm:$0xff]  }
 0x135   :  { %v6693_v10 = vpop.f32.mrf.mxu0  ;;  %6938 = vmatmul.mubr.bf16.vlgmr.msra.gmra.mxu0 %v451_v1  ;;  %v9700_v1 = vld [vmem:[#allocation5 + $0x9c4] ss:$8 sps:$4 sm:$0xff]  }
 0x136   :  { %v6734_v11 = vpop.f32.mrf.mxu1  ;;  %6979 = vmatmul.mubr.bf16.vlgmr.msra.gmra.mxu1 %v453_v2  ;;  %v6694_v12 = vadd.f32 %v6693_v10, %v1532_v3  ;;  %6988 = vmatpush1.bf16.msra.mxu0 %v9629_v4  ;;  %v9695_v2 = vld [vmem:[#allocation5 + $0x8c0] ss:$8 sps:$4 sm:$0xff]   ;;  %v9703_v4 = vld [vmem:[#allocation5 + $0x8b4] ss:$8 sps:$4 sm:$0xff]  }
 0x137   :  { %7029 = vmatpush1.bf16.msra.mxu1 %v9632_v5  ;;  %v6695_v14 = vpop.f32.mrf.mxu0  ;;  %6989 = vmatprep.subr.bf16.mxu0 %v9637_v43  ;;  %v9698_v3 = vld [vmem:[#allocation5 + $0x9c0] ss:$8 sps:$4 sm:$0xff]   ;;  %v9706_v5 = vld [vmem:[#allocation5 + $0x9b4] ss:$8 sps:$4 sm:$0xff]   ;;  %v9701_v43 = vld [vmem:[#allocation5 + $0x8b0] ss:$8 sps:$4 sm:$0xff]  }
 0x138   :  { %v6736_v15 = vpop.f32.mrf.mxu1  ;;  %7030 = vmatprep.subr.bf16.mxu1 %v9640_v6  ;;  %v11030_v17 = vadd.f32 %v6734_v11, %v6694_v12  ;;  %v6696_v18 = vadd.f32 %v6695_v14, %v1536_v7  ;;  %7019 = vmatprep.mubr.bf16.mxu0 %v456_v8  ;;  %v9704_v6 = vld [vmem:[#allocation5 + $0x9b0] ss:$8 sps:$4 sm:$0xff]   ;;  %v9709_v7 = vld [vmem:[#allocation5 + $0x8a4] ss:$8 sps:$4 sm:$0xff]   ;;  %v9707_v10 = vld [vmem:[#allocation5 + $0x8a0] ss:$8 sps:$4 sm:$0xff]  }
 0x139   :  { %7060 = vmatprep.mubr.bf16.mxu1 %v458_v9  ;;  %v6697_v19 = vpop.f32.mrf.mxu0  ;;  %v9712_v8 = vld [vmem:[#allocation5 + $0x9a4] ss:$8 sps:$4 sm:$0xff]   ;;  %v9710_v11 = vld [vmem:[#allocation5 + $0x9a0] ss:$8 sps:$4 sm:$0xff]   ;;  %v9718_v12 = vld [vmem:[#allocation5 + $0x994] ss:$8 sps:$4 sm:$0xff]  }
 0x13a   :  { %v6738_v20 = vpop.f32.mrf.mxu1  ;;  %v11032_v23 = vadd.f32 %v6736_v15, %v6696_v18  ;;  %6990 = vmatpush1.bf16.msra.mxu0 %v9635_v40  ;;  %v76_v9 = vld [vmem:[#allocation2 + $0x28] sm:$0xff]  ;;  %v9715_v40 = vld [vmem:[#allocation5 + $0x894] ss:$8 sps:$4 sm:$0xff]   ;;  %v9716_v14 = vld [vmem:[#allocation5 + $0x990] ss:$8 sps:$4 sm:$0xff]  }
 0x13b   :  { %7031 = vmatpush1.bf16.msra.mxu1 %v9638_v41  ;;  %v6698_v24 = vpop.f32.mrf.mxu0  ;;  %6991 = vmatprep.subr.bf16.mxu0 %v9643_v13  ;;  %v188_v41 = vcombine.high %v76_v9, %v76_v9  ;;  %v9713_v13 = vld [vmem:[#allocation5 + $0x890] ss:$8 sps:$4 sm:$0xff]   ;;  %v9721_v15 = vld [vmem:[#allocation5 + $0x884] ss:$8 sps:$4 sm:$0xff]   ;;  %v11035_v18 = vrot.slane %v76_v9, %v10972_v49  ;;  %v9719_v20 = vld [vmem:[#allocation5 + $0x880] ss:$8 sps:$4 sm:$0xff]  }
 0x13c   :  { %v6739_v25 = vpop.f32.mrf.mxu1  ;;  %7032 = vmatprep.subr.bf16.mxu1 %v9646_v16  ;;  %v9724_v16 = vld [vmem:[#allocation5 + $0x984] ss:$8 sps:$4 sm:$0xff]   ;;  %v9731_v24 = vld [vmem:[#allocation5 + $0xb74] ss:$8 sps:$4 sm:$0xff]   ;;  %v9771_v9 = vld [vmem:[#allocation5 + $0xb00] ss:$8 sps:$4 sm:$0xff]  }
 0x13d   :  { %v11038_v19 = vrot.slane %v188_v41, %v10972_v49  ;;  %v9726_v25 = vld [vmem:[#allocation5 + $0xa70] ss:$8 sps:$4 sm:$0xff]   ;;  %v9782_v41 = vld [vmem:[#allocation5 + $0xae4] ss:$8 sps:$4 sm:$0xff]  }
 0x13e   :  { %6992 = vmatpush1.bf16.msra.mxu0 %v9641_v21  ;;  %v9722_v21 = vld [vmem:[#allocation5 + $0x980] ss:$8 sps:$4 sm:$0xff]  }
 0x13f   :  { %7033 = vmatpush1.bf16.msra.mxu1 %v9644_v22  ;;  %6993 = vmatprep.subr.bf16.mxu0 %v9649_v26  ;;  %v9728_v22 = vld [vmem:[#allocation5 + $0xa74] ss:$8 sps:$4 sm:$0xff]   ;;  %v9729_v26 = vld [vmem:[#allocation5 + $0xb70] ss:$8 sps:$4 sm:$0xff]  }
 0x140   :  { %7034 = vmatprep.subr.bf16.mxu1 %v9652_v27  ;;  %v203_v27 = vcombine.high %v11035_v18, %v11035_v18 }
 0x142   :  { %6994 = vmatpush1.bf16.msra.mxu0 %v9647_v28  ;;  %v204_v28 = vcombine.high %v11038_v19, %v11038_v19 }
 0x143   :  { %7035 = vmatpush1.bf16.msra.mxu1 %v9650_v29  ;;  %6995 = vmatprep.subr.bf16.mxu0 %v9655_v30  ;;  %v455_v29 = vpack.c.bf16 %v11015_v56, %v11015_v56  ;;  %v457_v30 = vpack.c.bf16 %v11018_v57, %v11018_v57 }
 0x144   :  { %7036 = vmatprep.subr.bf16.mxu1 %v9658_v31  ;;  %v9734_v31 = vld [vmem:[#allocation5 + $0xa64] ss:$8 sps:$4 sm:$0xff]  }
 0x146   :  { %6996 = vmatpush1.bf16.msra.mxu0 %v9653_v32  ;;  %v9737_v32 = vld [vmem:[#allocation5 + $0xb64] ss:$8 sps:$4 sm:$0xff]  }
 0x147   :  { %7037 = vmatpush1.bf16.msra.mxu1 %v9656_v33  ;;  %6997 = vmatprep.subr.bf16.mxu0 %v9661_v34  ;;  %v9732_v33 = vld [vmem:[#allocation5 + $0xa60] ss:$8 sps:$4 sm:$0xff]  }
 0x148   :  { %7038 = vmatprep.subr.bf16.mxu1 %v9664_v36  ;;  %v9735_v34 = vld [vmem:[#allocation5 + $0xb60] ss:$8 sps:$4 sm:$0xff]   ;;  %v460_v36 = vpack.c.bf16 %v203_v27, %v203_v27 }
 0x149   :  { %v9795_v27 = vld [vmem:[#allocation5 + $0xbc0] ss:$8 sps:$4 sm:$0xff]  }
 0x14a   :  { %6998 = vmatpush1.bf16.msra.mxu0 %v9659_v37  ;;  %v462_v37 = vpack.c.bf16 %v204_v28, %v204_v28  ;;  %v9800_v28 = vld [vmem:[#allocation5 + $0xab4] ss:$8 sps:$4 sm:$0xff]  }
 0x14b   :  { %7039 = vmatpush1.bf16.msra.mxu1 %v9662_v38  ;;  %6999 = vmatprep.subr.bf16.mxu0 %v9667_v42 }
 0x14c   :  { %7040 = vmatprep.subr.bf16.mxu1 %v9670_v44 }
 0x14e   :  { %7000 = vmatpush1.bf16.msra.mxu0 %v9665_v45  ;;  %v9740_v45 = vld [vmem:[#allocation5 + $0xa54] ss:$8 sps:$4 sm:$0xff]  }
 0x14f   :  { %7041 = vmatpush1.bf16.msra.mxu1 %v9668_v46  ;;  %7001 = vmatprep.subr.bf16.mxu0 %v9673_v47  ;;  %v9743_v46 = vld [vmem:[#allocation5 + $0xb54] ss:$8 sps:$4 sm:$0xff]  }
 0x150   :  { %7042 = vmatprep.subr.bf16.mxu1 %v9676_v48 }
 0x152   :  { %7002 = vmatpush1.bf16.msra.mxu0 %v9671_v50  ;;  %v9738_v50 = vld [vmem:[#allocation5 + $0xa50] ss:$8 sps:$4 sm:$0xff]  }
 0x153   :  { %7043 = vmatpush1.bf16.msra.mxu1 %v9674_v51  ;;  %7003 = vmatprep.subr.bf16.mxu0 %v9679_v52  ;;  %v9741_v51 = vld [vmem:[#allocation5 + $0xb50] ss:$8 sps:$4 sm:$0xff]  }
 0x154   :  { %7044 = vmatprep.subr.bf16.mxu1 %v9682_v53 }
 0x156   :  { %7004 = vmatpush2.bf16.msra.mxu0 %v9677_v54 }
 0x157   :  { %7045 = vmatpush2.bf16.msra.mxu1 %v9680_v55  ;;  %7005 = vmatprep.subr.bf16.mxu0 %v9685_v58  ;;  %v9746_v58 = vld [vmem:[#allocation5 + $0xa44] ss:$8 sps:$4 sm:$0xff]  }
 0x158   :  { %7046 = vmatprep.subr.bf16.mxu1 %v9688_v59  ;;  %v9749_v59 = vld [vmem:[#allocation5 + $0xb44] ss:$8 sps:$4 sm:$0xff]  }
 0x15a   :  { %7006 = vmatpush2.bf16.msra.mxu0 %v9683_v35  ;;  %v9744_v35 = vld [vmem:[#allocation5 + $0xa40] ss:$8 sps:$4 sm:$0xff]  }
 0x15b   :  { %7047 = vmatpush2.bf16.msra.mxu1 %v9686_v39  ;;  %7007 = vmatprep.subr.bf16.mxu0 %v9691_v60  ;;  %v9752_v39 = vld [vmem:[#allocation5 + $0xa34] ss:$8 sps:$4 sm:$0xff]  }
 0x15c   :  { %7048 = vmatprep.subr.bf16.mxu1 %v9694_v61  ;;  %v9755_v60 = vld [vmem:[#allocation5 + $0xb34] ss:$8 sps:$4 sm:$0xff]   ;;  %v9750_v61 = vld [vmem:[#allocation5 + $0xa30] ss:$8 sps:$4 sm:$0xff]  }
 0x15e   :  { %7008 = vmatpush2.bf16.msra.mxu0 %v9689_v62  ;;  %v9753_v62 = vld [vmem:[#allocation5 + $0xb30] ss:$8 sps:$4 sm:$0xff]  }
 0x15f   :  { %7049 = vmatpush2.bf16.msra.mxu1 %v9692_v63  ;;  %7009 = vmatprep.subr.bf16.mxu0 %v9697_v0  ;;  %v9758_v63 = vld [vmem:[#allocation5 + $0xa24] ss:$8 sps:$4 sm:$0xff]  }
 0x160   :  { %7050 = vmatprep.subr.bf16.mxu1 %v9700_v1  ;;  %v9761_v0 = vld [vmem:[#allocation5 + $0xb24] ss:$8 sps:$4 sm:$0xff]   ;;  %v9756_v1 = vld [vmem:[#allocation5 + $0xa20] ss:$8 sps:$4 sm:$0xff]  }
 0x162   :  { %7010 = vmatpush2.bf16.msra.mxu0 %v9695_v2  ;;  %v9759_v2 = vld [vmem:[#allocation5 + $0xb20] ss:$8 sps:$4 sm:$0xff]  }
 0x163   :  { %7051 = vmatpush2.bf16.msra.mxu1 %v9698_v3  ;;  %7011 = vmatprep.subr.bf16.mxu0 %v9703_v4  ;;  %v9764_v3 = vld [vmem:[#allocation5 + $0xa14] ss:$8 sps:$4 sm:$0xff]  }
 0x164   :  { %7052 = vmatprep.subr.bf16.mxu1 %v9706_v5  ;;  %v9767_v4 = vld [vmem:[#allocation5 + $0xb14] ss:$8 sps:$4 sm:$0xff]   ;;  %v9762_v5 = vld [vmem:[#allocation5 + $0xa10] ss:$8 sps:$4 sm:$0xff]  }
 0x166   :  { %7012 = vmatpush2.bf16.msra.mxu0 %v9701_v43  ;;  %v9765_v43 = vld [vmem:[#allocation5 + $0xb10] ss:$8 sps:$4 sm:$0xff]  }
 0x167   :  { %7053 = vmatpush2.bf16.msra.mxu1 %v9704_v6  ;;  %7013 = vmatprep.subr.bf16.mxu0 %v9709_v7  ;;  %v9770_v6 = vld [vmem:[#allocation5 + $0xa04] ss:$8 sps:$4 sm:$0xff]  }
 0x168   :  { %7054 = vmatprep.subr.bf16.mxu1 %v9712_v8  ;;  %v9773_v7 = vld [vmem:[#allocation5 + $0xb04] ss:$8 sps:$4 sm:$0xff]   ;;  %v9768_v8 = vld [vmem:[#allocation5 + $0xa00] ss:$8 sps:$4 sm:$0xff]  }
 0x16a   :  { %7014 = vmatpush2.bf16.msra.mxu0 %v9707_v10  ;;  %v9776_v10 = vld [vmem:[#allocation5 + $0xaf4] ss:$8 sps:$4 sm:$0xff]  }
 0x16b   :  { %7055 = vmatpush2.bf16.msra.mxu1 %v9710_v11  ;;  %7015 = vmatprep.subr.bf16.mxu0 %v9715_v40  ;;  %v9779_v11 = vld [vmem:[#allocation5 + $0xbf4] ss:$8 sps:$4 sm:$0xff]   ;;  %v9774_v40 = vld [vmem:[#allocation5 + $0xaf0] ss:$8 sps:$4 sm:$0xff]  }
 0x16c   :  { %7056 = vmatprep.subr.bf16.mxu1 %v9718_v12  ;;  %v9777_v12 = vld [vmem:[#allocation5 + $0xbf0] ss:$8 sps:$4 sm:$0xff]  }
 0x16e   :  { %7016 = vmatpush2.bf16.msra.mxu0 %v9713_v13  ;;  %v9785_v13 = vld [vmem:[#allocation5 + $0xbe4] ss:$8 sps:$4 sm:$0xff]  }
 0x16f   :  { %7057 = vmatpush2.bf16.msra.mxu1 %v9716_v14  ;;  %7017 = vmatprep.subr.bf16.mxu0 %v9721_v15  ;;  %v9780_v14 = vld [vmem:[#allocation5 + $0xae0] ss:$8 sps:$4 sm:$0xff]  }
 0x170   :  { %7058 = vmatprep.subr.bf16.mxu1 %v9724_v16  ;;  %v9783_v15 = vld [vmem:[#allocation5 + $0xbe0] ss:$8 sps:$4 sm:$0xff]   ;;  %v9788_v16 = vld [vmem:[#allocation5 + $0xad4] ss:$8 sps:$4 sm:$0xff]  }
 0x172   :  { %7018 = vmatpush2.bf16.msra.mxu0 %v9719_v20  ;;  %v9791_v20 = vld [vmem:[#allocation5 + $0xbd4] ss:$8 sps:$4 sm:$0xff]  }
 0x173   :  { %7059 = vmatpush2.bf16.msra.mxu1 %v9722_v21  ;;  %7069 = vmatprep.subr.bf16.mxu0 %v9728_v22  ;;  %v9786_v21 = vld [vmem:[#allocation5 + $0xad0] ss:$8 sps:$4 sm:$0xff]  }
 0x174   :  { %7110 = vmatprep.subr.bf16.mxu1 %v9731_v24  ;;  %v9789_v22 = vld [vmem:[#allocation5 + $0xbd0] ss:$8 sps:$4 sm:$0xff]   ;;  %v9794_v24 = vld [vmem:[#allocation5 + $0xac4] ss:$8 sps:$4 sm:$0xff]  }
 0x175   :  { %v6775_v38 = vpop.f32.mrf.mxu0  ;;  %7020 = vmatmul.mubr.bf16.vlgmr.msra.gmra.mxu0 %v455_v29  ;;  %v9803_v29 = vld [vmem:[#allocation5 + $0xbb4] ss:$8 sps:$4 sm:$0xff]  }
 0x176   :  { %v6816_v42 = vpop.f32.mrf.mxu1  ;;  %7061 = vmatmul.mubr.bf16.vlgmr.msra.gmra.mxu1 %v457_v30  ;;  %v6776_v44 = vadd.f32 %v6775_v38, %v11030_v17  ;;  %7070 = vmatpush1.bf16.msra.mxu0 %v9726_v25  ;;  %v9797_v25 = vld [vmem:[#allocation5 + $0xbc4] ss:$8 sps:$4 sm:$0xff]   ;;  %v9798_v30 = vld [vmem:[#allocation5 + $0xab0] ss:$8 sps:$4 sm:$0xff]   ;;  %v9812_v38 = vld [vmem:[#allocation5 + $0xa94] ss:$8 sps:$4 sm:$0xff]  }
 0x177   :  { %7111 = vmatpush1.bf16.msra.mxu1 %v9729_v26  ;;  %v6777_v56 = vpop.f32.mrf.mxu0  ;;  %7071 = vmatprep.subr.bf16.mxu0 %v9734_v31  ;;  %v9792_v26 = vld [vmem:[#allocation5 + $0xac0] ss:$8 sps:$4 sm:$0xff]   ;;  %v9801_v31 = vld [vmem:[#allocation5 + $0xbb0] ss:$8 sps:$4 sm:$0xff]  }
 0x178   :  { %v6818_v57 = vpop.f32.mrf.mxu1  ;;  %7112 = vmatprep.subr.bf16.mxu1 %v9737_v32  ;;  %v11049_v47 = vadd.f32 %v6816_v42, %v6776_v44  ;;  %v6778_v48 = vadd.f32 %v6777_v56, %v11032_v23  ;;  %7101 = vmatprep.mubr.bf16.mxu0 %v460_v36  ;;  %v9747_v23 = vld [vmem:[#allocation5 + $0xb40] ss:$8 sps:$4 sm:$0xff]   ;;  %v9806_v32 = vld [vmem:[#allocation5 + $0xaa4] ss:$8 sps:$4 sm:$0xff]   ;;  %v9815_v42 = vld [vmem:[#allocation5 + $0xb94] ss:$8 sps:$4 sm:$0xff]  }
 0x179   :  { %7142 = vmatprep.mubr.bf16.mxu1 %v462_v37  ;;  %v6779_v52 = vpop.f32.mrf.mxu0  ;;  %v9804_v36 = vld [vmem:[#allocation5 + $0xaa0] ss:$8 sps:$4 sm:$0xff]   ;;  %v9810_v56 = vld [vmem:[#allocation5 + $0xa90] ss:$8 sps:$4 sm:$0xff]  }
 0x17a   :  { %v6820_v53 = vpop.f32.mrf.mxu1  ;;  %v11052_v54 = vadd.f32 %v6818_v57, %v6778_v48  ;;  %7072 = vmatpush1.bf16.msra.mxu0 %v9732_v33  ;;  %v9809_v33 = vld [vmem:[#allocation5 + $0xba4] ss:$8 sps:$4 sm:$0xff]   ;;  %v9807_v37 = vld [vmem:[#allocation5 + $0xba0] ss:$8 sps:$4 sm:$0xff]   ;;  %v9813_v57 = vld [vmem:[#allocation5 + $0xb90] ss:$8 sps:$4 sm:$0xff]  }
 0x17b   :  { %7113 = vmatpush1.bf16.msra.mxu1 %v9735_v34  ;;  %v6780_v17 = vpop.f32.mrf.mxu0  ;;  %7073 = vmatprep.subr.bf16.mxu0 %v9740_v45  ;;  %v77_v34 = vld [vmem:[#allocation2 + $0x30] sm:$0xff]  ;;  %v9818_v45 = vld [vmem:[#allocation5 + $0xa84] ss:$8 sps:$4 sm:$0xff]   ;;  %v9819_v52 = vld [vmem:[#allocation5 + $0xb80] ss:$8 sps:$4 sm:$0xff]  }
 0x17c   :  { %v6821_v55 = vpop.f32.mrf.mxu1  ;;  %7114 = vmatprep.subr.bf16.mxu1 %v9743_v46  ;;  %v205_v44 = vcombine.high %v77_v34, %v77_v34  ;;  %v9821_v46 = vld [vmem:[#allocation5 + $0xb84] ss:$8 sps:$4 sm:$0xff]   ;;  %v11055_v48 = vrot.slane %v77_v34, %v10972_v49  ;;  %v9825_v53 = vld [vmem:[#allocation5 + $0xc74] ss:$8 sps:$4 sm:$0xff]   ;;  %v9868_v34 = vld [vmem:[#allocation5 + $0xd00] ss:$8 sps:$4 sm:$0xff]  }
 0x17d   :  { %v9828_v17 = vld [vmem:[#allocation5 + $0xd74] ss:$8 sps:$4 sm:$0xff]   ;;  %v9823_v55 = vld [vmem:[#allocation5 + $0xc70] ss:$8 sps:$4 sm:$0xff]  }
 0x17e   :  { %7074 = vmatpush1.bf16.msra.mxu0 %v9738_v50  ;;  %v11058_v50 = vrot.slane %v205_v44, %v10972_v49  ;;  %v9879_v44 = vld [vmem:[#allocation5 + $0xce4] ss:$8 sps:$4 sm:$0xff]  }
 0x17f   :  { %7115 = vmatpush1.bf16.msra.mxu1 %v9741_v51  ;;  %7075 = vmatprep.subr.bf16.mxu0 %v9746_v58  ;;  %v9816_v51 = vld [vmem:[#allocation5 + $0xa80] ss:$8 sps:$4 sm:$0xff]   ;;  %v9826_v58 = vld [vmem:[#allocation5 + $0xd70] ss:$8 sps:$4 sm:$0xff]  }
 0x180   :  { %7116 = vmatprep.subr.bf16.mxu1 %v9749_v59  ;;  %v220_v59 = vcombine.high %v11055_v48, %v11055_v48 }
 0x182   :  { %7076 = vmatpush1.bf16.msra.mxu0 %v9744_v35  ;;  %v221_v35 = vcombine.high %v11058_v50, %v11058_v50 }
 0x183   :  { %7117 = vmatpush1.bf16.msra.mxu1 %v9747_v23  ;;  %7077 = vmatprep.subr.bf16.mxu0 %v9752_v39  ;;  %v459_v23 = vpack.c.bf16 %v11035_v18, %v11035_v18  ;;  %v461_v39 = vpack.c.bf16 %v11038_v19, %v11038_v19 }
 0x184   :  { %7118 = vmatprep.subr.bf16.mxu1 %v9755_v60  ;;  %v9831_v60 = vld [vmem:[#allocation5 + $0xc64] ss:$8 sps:$4 sm:$0xff]  }
 0x186   :  { %7078 = vmatpush1.bf16.msra.mxu0 %v9750_v61  ;;  %v9834_v61 = vld [vmem:[#allocation5 + $0xd64] ss:$8 sps:$4 sm:$0xff]  }
 0x187   :  { %7119 = vmatpush1.bf16.msra.mxu1 %v9753_v62  ;;  %7079 = vmatprep.subr.bf16.mxu0 %v9758_v63  ;;  %v9829_v62 = vld [vmem:[#allocation5 + $0xc60] ss:$8 sps:$4 sm:$0xff]  }
 0x188   :  { %7120 = vmatprep.subr.bf16.mxu1 %v9761_v0  ;;  %v9832_v63 = vld [vmem:[#allocation5 + $0xd60] ss:$8 sps:$4 sm:$0xff]   ;;  %v464_v0 = vpack.c.bf16 %v220_v59, %v220_v59 }
 0x189   :  { %v9892_v59 = vld [vmem:[#allocation5 + $0xdc0] ss:$8 sps:$4 sm:$0xff]  }
 0x18a   :  { %7080 = vmatpush1.bf16.msra.mxu0 %v9756_v1  ;;  %v466_v1 = vpack.c.bf16 %v221_v35, %v221_v35  ;;  %v9897_v35 = vld [vmem:[#allocation5 + $0xcb4] ss:$8 sps:$4 sm:$0xff]  }
 0x18b   :  { %7121 = vmatpush1.bf16.msra.mxu1 %v9759_v2  ;;  %7081 = vmatprep.subr.bf16.mxu0 %v9764_v3 }
 0x18c   :  { %7122 = vmatprep.subr.bf16.mxu1 %v9767_v4 }
 0x18e   :  { %7082 = vmatpush1.bf16.msra.mxu0 %v9762_v5  ;;  %v9837_v5 = vld [vmem:[#allocation5 + $0xc54] ss:$8 sps:$4 sm:$0xff]  }
 0x18f   :  { %7123 = vmatpush1.bf16.msra.mxu1 %v9765_v43  ;;  %7083 = vmatprep.subr.bf16.mxu0 %v9770_v6  ;;  %v9840_v43 = vld [vmem:[#allocation5 + $0xd54] ss:$8 sps:$4 sm:$0xff]  }
 0x190   :  { %7124 = vmatprep.subr.bf16.mxu1 %v9773_v7 }
 0x192   :  { %7084 = vmatpush1.bf16.msra.mxu0 %v9768_v8  ;;  %v9835_v8 = vld [vmem:[#allocation5 + $0xc50] ss:$8 sps:$4 sm:$0xff]  }
 0x193   :  { %7125 = vmatpush1.bf16.msra.mxu1 %v9771_v9  ;;  %7085 = vmatprep.subr.bf16.mxu0 %v9776_v10  ;;  %v9838_v9 = vld [vmem:[#allocation5 + $0xd50] ss:$8 sps:$4 sm:$0xff]  }
 0x194   :  { %7126 = vmatprep.subr.bf16.mxu1 %v9779_v11 }
 0x196   :  { %7086 = vmatpush2.bf16.msra.mxu0 %v9774_v40 }
 0x197   :  { %7127 = vmatpush2.bf16.msra.mxu1 %v9777_v12  ;;  %7087 = vmatprep.subr.bf16.mxu0 %v9782_v41  ;;  %v9843_v41 = vld [vmem:[#allocation5 + $0xc44] ss:$8 sps:$4 sm:$0xff]  }
 0x198   :  { %7128 = vmatprep.subr.bf16.mxu1 %v9785_v13  ;;  %v9846_v13 = vld [vmem:[#allocation5 + $0xd44] ss:$8 sps:$4 sm:$0xff]  }
 0x19a   :  { %7088 = vmatpush2.bf16.msra.mxu0 %v9780_v14  ;;  %v9841_v14 = vld [vmem:[#allocation5 + $0xc40] ss:$8 sps:$4 sm:$0xff]  }
 0x19b   :  { %7129 = vmatpush2.bf16.msra.mxu1 %v9783_v15  ;;  %7089 = vmatprep.subr.bf16.mxu0 %v9788_v16  ;;  %v9849_v15 = vld [vmem:[#allocation5 + $0xc34] ss:$8 sps:$4 sm:$0xff]  }
 0x19c   :  { %7130 = vmatprep.subr.bf16.mxu1 %v9791_v20  ;;  %v9852_v16 = vld [vmem:[#allocation5 + $0xd34] ss:$8 sps:$4 sm:$0xff]   ;;  %v9847_v20 = vld [vmem:[#allocation5 + $0xc30] ss:$8 sps:$4 sm:$0xff]  }
 0x19e   :  { %7090 = vmatpush2.bf16.msra.mxu0 %v9786_v21  ;;  %v9850_v21 = vld [vmem:[#allocation5 + $0xd30] ss:$8 sps:$4 sm:$0xff]  }
 0x19f   :  { %7131 = vmatpush2.bf16.msra.mxu1 %v9789_v22  ;;  %7091 = vmatprep.subr.bf16.mxu0 %v9794_v24  ;;  %v9855_v22 = vld [vmem:[#allocation5 + $0xc24] ss:$8 sps:$4 sm:$0xff]  }
 0x1a0   :  { %7132 = vmatprep.subr.bf16.mxu1 %v9797_v25  ;;  %v9858_v24 = vld [vmem:[#allocation5 + $0xd24] ss:$8 sps:$4 sm:$0xff]   ;;  %v9853_v25 = vld [vmem:[#allocation5 + $0xc20] ss:$8 sps:$4 sm:$0xff]  }
 0x1a2   :  { %7092 = vmatpush2.bf16.msra.mxu0 %v9792_v26  ;;  %v9856_v26 = vld [vmem:[#allocation5 + $0xd20] ss:$8 sps:$4 sm:$0xff]  }
 0x1a3   :  { %7133 = vmatpush2.bf16.msra.mxu1 %v9795_v27  ;;  %7093 = vmatprep.subr.bf16.mxu0 %v9800_v28  ;;  %v9861_v27 = vld [vmem:[#allocation5 + $0xc14] ss:$8 sps:$4 sm:$0xff]  }
 0x1a4   :  { %7134 = vmatprep.subr.bf16.mxu1 %v9803_v29  ;;  %v9864_v28 = vld [vmem:[#allocation5 + $0xd14] ss:$8 sps:$4 sm:$0xff]   ;;  %v9859_v29 = vld [vmem:[#allocation5 + $0xc10] ss:$8 sps:$4 sm:$0xff]  }
 0x1a6   :  { %7094 = vmatpush2.bf16.msra.mxu0 %v9798_v30  ;;  %v9862_v30 = vld [vmem:[#allocation5 + $0xd10] ss:$8 sps:$4 sm:$0xff]  }
 0x1a7   :  { %7135 = vmatpush2.bf16.msra.mxu1 %v9801_v31  ;;  %7095 = vmatprep.subr.bf16.mxu0 %v9806_v32  ;;  %v9867_v31 = vld [vmem:[#allocation5 + $0xc04] ss:$8 sps:$4 sm:$0xff]  }
 0x1a8   :  { %7136 = vmatprep.subr.bf16.mxu1 %v9809_v33  ;;  %v9870_v32 = vld [vmem:[#allocation5 + $0xd04] ss:$8 sps:$4 sm:$0xff]   ;;  %v9865_v33 = vld [vmem:[#allocation5 + $0xc00] ss:$8 sps:$4 sm:$0xff]  }
 0x1aa   :  { %7096 = vmatpush2.bf16.msra.mxu0 %v9804_v36  ;;  %v9873_v36 = vld [vmem:[#allocation5 + $0xcf4] ss:$8 sps:$4 sm:$0xff]  }
 0x1ab   :  { %7137 = vmatpush2.bf16.msra.mxu1 %v9807_v37  ;;  %7097 = vmatprep.subr.bf16.mxu0 %v9812_v38  ;;  %v9876_v37 = vld [vmem:[#allocation5 + $0xdf4] ss:$8 sps:$4 sm:$0xff]   ;;  %v9871_v38 = vld [vmem:[#allocation5 + $0xcf0] ss:$8 sps:$4 sm:$0xff]  }
 0x1ac   :  { %7138 = vmatprep.subr.bf16.mxu1 %v9815_v42  ;;  %v9874_v42 = vld [vmem:[#allocation5 + $0xdf0] ss:$8 sps:$4 sm:$0xff]  }
 0x1ae   :  { %7098 = vmatpush2.bf16.msra.mxu0 %v9810_v56  ;;  %v9882_v56 = vld [vmem:[#allocation5 + $0xde4] ss:$8 sps:$4 sm:$0xff]  }
 0x1af   :  { %7139 = vmatpush2.bf16.msra.mxu1 %v9813_v57  ;;  %7099 = vmatprep.subr.bf16.mxu0 %v9818_v45  ;;  %v9877_v57 = vld [vmem:[#allocation5 + $0xce0] ss:$8 sps:$4 sm:$0xff]  }
 0x1b0   :  { %7140 = vmatprep.subr.bf16.mxu1 %v9821_v46  ;;  %v9880_v45 = vld [vmem:[#allocation5 + $0xde0] ss:$8 sps:$4 sm:$0xff]   ;;  %v9885_v46 = vld [vmem:[#allocation5 + $0xcd4] ss:$8 sps:$4 sm:$0xff]  }
 0x1b2   :  { %7100 = vmatpush2.bf16.msra.mxu0 %v9816_v51  ;;  %v9888_v51 = vld [vmem:[#allocation5 + $0xdd4] ss:$8 sps:$4 sm:$0xff]  }
 0x1b3   :  { %7141 = vmatpush2.bf16.msra.mxu1 %v9819_v52  ;;  %7151 = vmatprep.subr.bf16.mxu0 %v9825_v53  ;;  %v9883_v52 = vld [vmem:[#allocation5 + $0xcd0] ss:$8 sps:$4 sm:$0xff]  }
 0x1b4   :  { %7192 = vmatprep.subr.bf16.mxu1 %v9828_v17  ;;  %v9886_v53 = vld [vmem:[#allocation5 + $0xdd0] ss:$8 sps:$4 sm:$0xff]   ;;  %v9891_v17 = vld [vmem:[#allocation5 + $0xcc4] ss:$8 sps:$4 sm:$0xff]  }
 0x1b5   :  { %v6857_v2 = vpop.f32.mrf.mxu0  ;;  %7102 = vmatmul.mubr.bf16.vlgmr.msra.gmra.mxu0 %v459_v23  ;;  %v9900_v23 = vld [vmem:[#allocation5 + $0xdb4] ss:$8 sps:$4 sm:$0xff]  }
 0x1b6   :  { %v6898_v3 = vpop.f32.mrf.mxu1  ;;  %7143 = vmatmul.mubr.bf16.vlgmr.msra.gmra.mxu1 %v461_v39  ;;  %v6858_v4 = vadd.f32 %v6857_v2, %v11049_v47  ;;  %7152 = vmatpush1.bf16.msra.mxu0 %v9823_v55  ;;  %v9894_v55 = vld [vmem:[#allocation5 + $0xdc4] ss:$8 sps:$4 sm:$0xff]   ;;  %v9895_v39 = vld [vmem:[#allocation5 + $0xcb0] ss:$8 sps:$4 sm:$0xff]   ;;  %v9909_v2 = vld [vmem:[#allocation5 + $0xc94] ss:$8 sps:$4 sm:$0xff]  }
 0x1b7   :  { %7193 = vmatpush1.bf16.msra.mxu1 %v9826_v58  ;;  %v6859_v18 = vpop.f32.mrf.mxu0  ;;  %7153 = vmatprep.subr.bf16.mxu0 %v9831_v60  ;;  %v9889_v58 = vld [vmem:[#allocation5 + $0xcc0] ss:$8 sps:$4 sm:$0xff]   ;;  %v9898_v60 = vld [vmem:[#allocation5 + $0xdb0] ss:$8 sps:$4 sm:$0xff]  }
 0x1b8   :  { %v6900_v19 = vpop.f32.mrf.mxu1  ;;  %7194 = vmatprep.subr.bf16.mxu1 %v9834_v61  ;;  %v11069_v6 = vadd.f32 %v6898_v3, %v6858_v4  ;;  %v6860_v7 = vadd.f32 %v6859_v18, %v11052_v54  ;;  %7183 = vmatprep.mubr.bf16.mxu0 %v464_v0  ;;  %v9844_v54 = vld [vmem:[#allocation5 + $0xd40] ss:$8 sps:$4 sm:$0xff]   ;;  %v9903_v61 = vld [vmem:[#allocation5 + $0xca4] ss:$8 sps:$4 sm:$0xff]   ;;  %v9912_v3 = vld [vmem:[#allocation5 + $0xd94] ss:$8 sps:$4 sm:$0xff]  }
 0x1b9   :  { %7224 = vmatprep.mubr.bf16.mxu1 %v466_v1  ;;  %v6861_v10 = vpop.f32.mrf.mxu0  ;;  %v9901_v0 = vld [vmem:[#allocation5 + $0xca0] ss:$8 sps:$4 sm:$0xff]   ;;  %v9907_v18 = vld [vmem:[#allocation5 + $0xc90] ss:$8 sps:$4 sm:$0xff]  }
 0x1ba   :  { %v6902_v11 = vpop.f32.mrf.mxu1  ;;  %v11072_v40 = vadd.f32 %v6900_v19, %v6860_v7  ;;  %7154 = vmatpush1.bf16.msra.mxu0 %v9829_v62  ;;  %v9906_v62 = vld [vmem:[#allocation5 + $0xda4] ss:$8 sps:$4 sm:$0xff]   ;;  %v9904_v1 = vld [vmem:[#allocation5 + $0xda0] ss:$8 sps:$4 sm:$0xff]   ;;  %v9910_v19 = vld [vmem:[#allocation5 + $0xd90] ss:$8 sps:$4 sm:$0xff]  }
 0x1bb   :  { %7195 = vmatpush1.bf16.msra.mxu1 %v9832_v63  ;;  %v6862_v47 = vpop.f32.mrf.mxu0  ;;  %7155 = vmatprep.subr.bf16.mxu0 %v9837_v5  ;;  %v78_v63 = vld [vmem:[#allocation2 + $0x38] sm:$0xff]  ;;  %v9915_v5 = vld [vmem:[#allocation5 + $0xc84] ss:$8 sps:$4 sm:$0xff]   ;;  %v9916_v10 = vld [vmem:[#allocation5 + $0xd80] ss:$8 sps:$4 sm:$0xff]  }
 0x1bc   :  { %v6903_v12 = vpop.f32.mrf.mxu1  ;;  %7196 = vmatprep.subr.bf16.mxu1 %v9840_v43  ;;  %v222_v4 = vcombine.high %v78_v63, %v78_v63  ;;  %v9918_v43 = vld [vmem:[#allocation5 + $0xd84] ss:$8 sps:$4 sm:$0xff]   ;;  %v11075_v7 = vrot.slane %v78_v63, %v10972_v49  ;;  %v9922_v11 = vld [vmem:[#allocation5 + $0xe74] ss:$8 sps:$4 sm:$0xff]   ;;  %v9965_v63 = vld [vmem:[#allocation5 + $0xf00] ss:$8 sps:$4 sm:$0xff]  }
 0x1bd   :  { %v9925_v47 = vld [vmem:[#allocation5 + $0xf74] ss:$8 sps:$4 sm:$0xff]   ;;  %v9920_v12 = vld [vmem:[#allocation5 + $0xe70] ss:$8 sps:$4 sm:$0xff]  }
 0x1be   :  { %7156 = vmatpush1.bf16.msra.mxu0 %v9835_v8  ;;  %v11078_v8 = vrot.slane %v222_v4, %v10972_v49  ;;  %v9976_v4 = vld [vmem:[#allocation5 + $0xee4] ss:$8 sps:$4 sm:$0xff]  }
 0x1bf   :  { %7197 = vmatpush1.bf16.msra.mxu1 %v9838_v9  ;;  %7157 = vmatprep.subr.bf16.mxu0 %v9843_v41  ;;  %v9913_v9 = vld [vmem:[#allocation5 + $0xc80] ss:$8 sps:$4 sm:$0xff]   ;;  %v9923_v41 = vld [vmem:[#allocation5 + $0xf70] ss:$8 sps:$4 sm:$0xff]  }
 0x1c0   :  { %7198 = vmatprep.subr.bf16.mxu1 %v9846_v13  ;;  %v237_v13 = vcombine.high %v11075_v7, %v11075_v7 }
 0x1c2   :  { %7158 = vmatpush1.bf16.msra.mxu0 %v9841_v14  ;;  %v238_v14 = vcombine.high %v11078_v8, %v11078_v8 }
 0x1c3   :  { %7199 = vmatpush1.bf16.msra.mxu1 %v9844_v54  ;;  %7159 = vmatprep.subr.bf16.mxu0 %v9849_v15  ;;  %v463_v54 = vpack.c.bf16 %v11055_v48, %v11055_v48  ;;  %v465_v15 = vpack.c.bf16 %v11058_v50, %v11058_v50 }
 0x1c4   :  { %7200 = vmatprep.subr.bf16.mxu1 %v9852_v16  ;;  %v9928_v16 = vld [vmem:[#allocation5 + $0xe64] ss:$8 sps:$4 sm:$0xff]  }
 0x1c6   :  { %7160 = vmatpush1.bf16.msra.mxu0 %v9847_v20  ;;  %v9931_v20 = vld [vmem:[#allocation5 + $0xf64] ss:$8 sps:$4 sm:$0xff]  }
 0x1c7   :  { %7201 = vmatpush1.bf16.msra.mxu1 %v9850_v21  ;;  %7161 = vmatprep.subr.bf16.mxu0 %v9855_v22  ;;  %v9926_v21 = vld [vmem:[#allocation5 + $0xe60] ss:$8 sps:$4 sm:$0xff]  }
 0x1c8   :  { %7202 = vmatprep.subr.bf16.mxu1 %v9858_v24  ;;  %v9929_v22 = vld [vmem:[#allocation5 + $0xf60] ss:$8 sps:$4 sm:$0xff]   ;;  %v468_v24 = vpack.c.bf16 %v237_v13, %v237_v13 }
 0x1c9   :  { %v9989_v13 = vld [vmem:[#allocation5 + $0xfc0] ss:$8 sps:$4 sm:$0xff]  }
 0x1ca   :  { %7162 = vmatpush1.bf16.msra.mxu0 %v9853_v25  ;;  %v470_v25 = vpack.c.bf16 %v238_v14, %v238_v14  ;;  %v9994_v14 = vld [vmem:[#allocation5 + $0xeb4] ss:$8 sps:$4 sm:$0xff]  }
 0x1cb   :  { %7203 = vmatpush1.bf16.msra.mxu1 %v9856_v26  ;;  %7163 = vmatprep.subr.bf16.mxu0 %v9861_v27 }
 0x1cc   :  { %7204 = vmatprep.subr.bf16.mxu1 %v9864_v28 }
 0x1ce   :  { %7164 = vmatpush1.bf16.msra.mxu0 %v9859_v29  ;;  %v9934_v29 = vld [vmem:[#allocation5 + $0xe54] ss:$8 sps:$4 sm:$0xff]  }
 0x1cf   :  { %7205 = vmatpush1.bf16.msra.mxu1 %v9862_v30  ;;  %7165 = vmatprep.subr.bf16.mxu0 %v9867_v31  ;;  %v9937_v30 = vld [vmem:[#allocation5 + $0xf54] ss:$8 sps:$4 sm:$0xff]  }
 0x1d0   :  { %7206 = vmatprep.subr.bf16.mxu1 %v9870_v32 }
 0x1d2   :  { %7166 = vmatpush1.bf16.msra.mxu0 %v9865_v33  ;;  %v9932_v33 = vld [vmem:[#allocation5 + $0xe50] ss:$8 sps:$4 sm:$0xff]  }
 0x1d3   :  { %7207 = vmatpush1.bf16.msra.mxu1 %v9868_v34  ;;  %7167 = vmatprep.subr.bf16.mxu0 %v9873_v36  ;;  %v9935_v34 = vld [vmem:[#allocation5 + $0xf50] ss:$8 sps:$4 sm:$0xff]  }
 0x1d4   :  { %7208 = vmatprep.subr.bf16.mxu1 %v9876_v37 }
 0x1d6   :  { %7168 = vmatpush2.bf16.msra.mxu0 %v9871_v38 }
 0x1d7   :  { %7209 = vmatpush2.bf16.msra.mxu1 %v9874_v42  ;;  %7169 = vmatprep.subr.bf16.mxu0 %v9879_v44  ;;  %v9940_v44 = vld [vmem:[#allocation5 + $0xe44] ss:$8 sps:$4 sm:$0xff]  }
 0x1d8   :  { %7210 = vmatprep.subr.bf16.mxu1 %v9882_v56  ;;  %v9943_v56 = vld [vmem:[#allocation5 + $0xf44] ss:$8 sps:$4 sm:$0xff]  }
 0x1da   :  { %7170 = vmatpush2.bf16.msra.mxu0 %v9877_v57  ;;  %v9938_v57 = vld [vmem:[#allocation5 + $0xe40] ss:$8 sps:$4 sm:$0xff]  }
 0x1db   :  { %7211 = vmatpush2.bf16.msra.mxu1 %v9880_v45  ;;  %7171 = vmatprep.subr.bf16.mxu0 %v9885_v46  ;;  %v9946_v45 = vld [vmem:[#allocation5 + $0xe34] ss:$8 sps:$4 sm:$0xff]  }
 0x1dc   :  { %7212 = vmatprep.subr.bf16.mxu1 %v9888_v51  ;;  %v9949_v46 = vld [vmem:[#allocation5 + $0xf34] ss:$8 sps:$4 sm:$0xff]   ;;  %v9944_v51 = vld [vmem:[#allocation5 + $0xe30] ss:$8 sps:$4 sm:$0xff]  }
 0x1de   :  { %7172 = vmatpush2.bf16.msra.mxu0 %v9883_v52  ;;  %v9947_v52 = vld [vmem:[#allocation5 + $0xf30] ss:$8 sps:$4 sm:$0xff]  }
 0x1df   :  { %7213 = vmatpush2.bf16.msra.mxu1 %v9886_v53  ;;  %7173 = vmatprep.subr.bf16.mxu0 %v9891_v17  ;;  %v9952_v53 = vld [vmem:[#allocation5 + $0xe24] ss:$8 sps:$4 sm:$0xff]  }
 0x1e0   :  { %7214 = vmatprep.subr.bf16.mxu1 %v9894_v55  ;;  %v9955_v17 = vld [vmem:[#allocation5 + $0xf24] ss:$8 sps:$4 sm:$0xff]   ;;  %v9950_v55 = vld [vmem:[#allocation5 + $0xe20] ss:$8 sps:$4 sm:$0xff]  }
 0x1e2   :  { %7174 = vmatpush2.bf16.msra.mxu0 %v9889_v58  ;;  %v9953_v58 = vld [vmem:[#allocation5 + $0xf20] ss:$8 sps:$4 sm:$0xff]  }
 0x1e3   :  { %7215 = vmatpush2.bf16.msra.mxu1 %v9892_v59  ;;  %7175 = vmatprep.subr.bf16.mxu0 %v9897_v35  ;;  %v9958_v59 = vld [vmem:[#allocation5 + $0xe14] ss:$8 sps:$4 sm:$0xff]  }
 0x1e4   :  { %7216 = vmatprep.subr.bf16.mxu1 %v9900_v23  ;;  %v9961_v35 = vld [vmem:[#allocation5 + $0xf14] ss:$8 sps:$4 sm:$0xff]   ;;  %v9956_v23 = vld [vmem:[#allocation5 + $0xe10] ss:$8 sps:$4 sm:$0xff]  }
 0x1e6   :  { %7176 = vmatpush2.bf16.msra.mxu0 %v9895_v39  ;;  %v9959_v39 = vld [vmem:[#allocation5 + $0xf10] ss:$8 sps:$4 sm:$0xff]  }
 0x1e7   :  { %7217 = vmatpush2.bf16.msra.mxu1 %v9898_v60  ;;  %7177 = vmatprep.subr.bf16.mxu0 %v9903_v61  ;;  %v9964_v60 = vld [vmem:[#allocation5 + $0xe04] ss:$8 sps:$4 sm:$0xff]  }
 0x1e8   :  { %7218 = vmatprep.subr.bf16.mxu1 %v9906_v62  ;;  %v9967_v61 = vld [vmem:[#allocation5 + $0xf04] ss:$8 sps:$4 sm:$0xff]   ;;  %v9962_v62 = vld [vmem:[#allocation5 + $0xe00] ss:$8 sps:$4 sm:$0xff]  }
 0x1ea   :  { %7178 = vmatpush2.bf16.msra.mxu0 %v9901_v0  ;;  %v9970_v0 = vld [vmem:[#allocation5 + $0xef4] ss:$8 sps:$4 sm:$0xff]  }
 0x1eb   :  { %7219 = vmatpush2.bf16.msra.mxu1 %v9904_v1  ;;  %7179 = vmatprep.subr.bf16.mxu0 %v9909_v2  ;;  %v9973_v1 = vld [vmem:[#allocation5 + $0xff4] ss:$8 sps:$4 sm:$0xff]   ;;  %v9968_v2 = vld [vmem:[#allocation5 + $0xef0] ss:$8 sps:$4 sm:$0xff]  }
 0x1ec   :  { %7220 = vmatprep.subr.bf16.mxu1 %v9912_v3  ;;  %v9971_v3 = vld [vmem:[#allocation5 + $0xff0] ss:$8 sps:$4 sm:$0xff]  }
 0x1ee   :  { %7180 = vmatpush2.bf16.msra.mxu0 %v9907_v18  ;;  %v9979_v18 = vld [vmem:[#allocation5 + $0xfe4] ss:$8 sps:$4 sm:$0xff]  }
 0x1ef   :  { %7221 = vmatpush2.bf16.msra.mxu1 %v9910_v19  ;;  %7181 = vmatprep.subr.bf16.mxu0 %v9915_v5  ;;  %v9974_v19 = vld [vmem:[#allocation5 + $0xee0] ss:$8 sps:$4 sm:$0xff]  }
 0x1f0   :  { %7222 = vmatprep.subr.bf16.mxu1 %v9918_v43  ;;  %v9977_v5 = vld [vmem:[#allocation5 + $0xfe0] ss:$8 sps:$4 sm:$0xff]   ;;  %v9982_v43 = vld [vmem:[#allocation5 + $0xed4] ss:$8 sps:$4 sm:$0xff]  }
 0x1f2   :  { %7182 = vmatpush2.bf16.msra.mxu0 %v9913_v9  ;;  %v9985_v9 = vld [vmem:[#allocation5 + $0xfd4] ss:$8 sps:$4 sm:$0xff]  }
 0x1f3   :  { %7223 = vmatpush2.bf16.msra.mxu1 %v9916_v10  ;;  %7233 = vmatprep.subr.bf16.mxu0 %v9922_v11  ;;  %v9980_v10 = vld [vmem:[#allocation5 + $0xed0] ss:$8 sps:$4 sm:$0xff]  }
 0x1f4   :  { %7274 = vmatprep.subr.bf16.mxu1 %v9925_v47  ;;  %v9983_v11 = vld [vmem:[#allocation5 + $0xfd0] ss:$8 sps:$4 sm:$0xff]   ;;  %v9988_v47 = vld [vmem:[#allocation5 + $0xec4] ss:$8 sps:$4 sm:$0xff]  }
 0x1f5   :  { %v6939_v26 = vpop.f32.mrf.mxu0  ;;  %7184 = vmatmul.mubr.bf16.vlgmr.msra.gmra.mxu0 %v463_v54  ;;  %v9997_v54 = vld [vmem:[#allocation5 + $0xfb4] ss:$8 sps:$4 sm:$0xff]  }
 0x1f6   :  { %v6980_v27 = vpop.f32.mrf.mxu1  ;;  %7225 = vmatmul.mubr.bf16.vlgmr.msra.gmra.mxu1 %v465_v15  ;;  %v6940_v28 = vadd.f32 %v6939_v26, %v11069_v6  ;;  %7234 = vmatpush1.bf16.msra.mxu0 %v9920_v12  ;;  %v9991_v12 = vld [vmem:[#allocation5 + $0xfc4] ss:$8 sps:$4 sm:$0xff]   ;;  %v9992_v15 = vld [vmem:[#allocation5 + $0xeb0] ss:$8 sps:$4 sm:$0xff]   ;;  %v10006_v26 = vld [vmem:[#allocation5 + $0xe94] ss:$8 sps:$4 sm:$0xff]  }
 0x1f7   :  { %7275 = vmatpush1.bf16.msra.mxu1 %v9923_v41  ;;  %v6941_v48 = vpop.f32.mrf.mxu0  ;;  %7235 = vmatprep.subr.bf16.mxu0 %v9928_v16  ;;  %v9986_v41 = vld [vmem:[#allocation5 + $0xec0] ss:$8 sps:$4 sm:$0xff]   ;;  %v9995_v16 = vld [vmem:[#allocation5 + $0xfb0] ss:$8 sps:$4 sm:$0xff]  }
 0x1f8   :  { %v6982_v50 = vpop.f32.mrf.mxu1  ;;  %7276 = vmatprep.subr.bf16.mxu1 %v9931_v20  ;;  %v11089_v31 = vadd.f32 %v6980_v27, %v6940_v28  ;;  %v6942_v32 = vadd.f32 %v6941_v48, %v11072_v40  ;;  %7265 = vmatprep.mubr.bf16.mxu0 %v468_v24  ;;  %v9941_v40 = vld [vmem:[#allocation5 + $0xf40] ss:$8 sps:$4 sm:$0xff]   ;;  %v10000_v20 = vld [vmem:[#allocation5 + $0xea4] ss:$8 sps:$4 sm:$0xff]   ;;  %v10009_v27 = vld [vmem:[#allocation5 + $0xf94] ss:$8 sps:$4 sm:$0xff]  }
 0x1f9   :  { %7306 = vmatprep.mubr.bf16.mxu1 %v470_v25  ;;  %v6943_v36 = vpop.f32.mrf.mxu0  ;;  %v9998_v24 = vld [vmem:[#allocation5 + $0xea0] ss:$8 sps:$4 sm:$0xff]   ;;  %v10004_v48 = vld [vmem:[#allocation5 + $0xe90] ss:$8 sps:$4 sm:$0xff]  }
 0x1fa   :  { %v6984_v37 = vpop.f32.mrf.mxu1  ;;  %v11092_v38 = vadd.f32 %v6982_v50, %v6942_v32  ;;  %7236 = vmatpush1.bf16.msra.mxu0 %v9926_v21  ;;  %v10003_v21 = vld [vmem:[#allocation5 + $0xfa4] ss:$8 sps:$4 sm:$0xff]   ;;  %v10001_v25 = vld [vmem:[#allocation5 + $0xfa0] ss:$8 sps:$4 sm:$0xff]   ;;  %v10007_v50 = vld [vmem:[#allocation5 + $0xf90] ss:$8 sps:$4 sm:$0xff]  }
 0x1fb   :  { %7277 = vmatpush1.bf16.msra.mxu1 %v9929_v22  ;;  %v6944_v6 = vpop.f32.mrf.mxu0  ;;  %7237 = vmatprep.subr.bf16.mxu0 %v9934_v29  ;;  %v79_v22 = vld [vmem:[#allocation2 + $0x40] sm:$0xff]  ;;  %v10019_v37 = vld [vmem:[#allocation5 + $0x1074] ss:$8 sps:$4 sm:$0xff]  }
 0x1fc   :  { %v6985_v42 = vpop.f32.mrf.mxu1  ;;  %7278 = vmatprep.subr.bf16.mxu1 %v9937_v30  ;;  %v239_v28 = vcombine.high %v79_v22, %v79_v22  ;;  %v10012_v29 = vld [vmem:[#allocation5 + $0xe84] ss:$8 sps:$4 sm:$0xff]   ;;  %v11095_v32 = vrot.slane %v79_v22, %v10972_v49  ;;  %v10013_v36 = vld [vmem:[#allocation5 + $0xf80] ss:$8 sps:$4 sm:$0xff]   ;;  %v10022_v6 = vld [vmem:[#allocation5 + $0x1174] ss:$8 sps:$4 sm:$0xff]  }
 0x1fd   :  { %v10015_v30 = vld [vmem:[#allocation5 + $0xf84] ss:$8 sps:$4 sm:$0xff]   ;;  %v10017_v42 = vld [vmem:[#allocation5 + $0x1070] ss:$8 sps:$4 sm:$0xff]   ;;  %v10062_v22 = vld [vmem:[#allocation5 + $0x1100] ss:$8 sps:$4 sm:$0xff]  }
 0x1fe   :  { %7238 = vmatpush1.bf16.msra.mxu0 %v9932_v33  ;;  %v11098_v33 = vrot.slane %v239_v28, %v10972_v49  ;;  %v10073_v28 = vld [vmem:[#allocation5 + $0x10e4] ss:$8 sps:$4 sm:$0xff]  }
 0x1ff   :  { %7279 = vmatpush1.bf16.msra.mxu1 %v9935_v34  ;;  %7239 = vmatprep.subr.bf16.mxu0 %v9940_v44  ;;  %v10010_v34 = vld [vmem:[#allocation5 + $0xe80] ss:$8 sps:$4 sm:$0xff]   ;;  %v10020_v44 = vld [vmem:[#allocation5 + $0x1170] ss:$8 sps:$4 sm:$0xff]  }
 0x200   :  { %7280 = vmatprep.subr.bf16.mxu1 %v9943_v56  ;;  %v254_v56 = vcombine.high %v11095_v32, %v11095_v32 }
 0x202   :  { %7240 = vmatpush1.bf16.msra.mxu0 %v9938_v57  ;;  %v255_v57 = vcombine.high %v11098_v33, %v11098_v33 }
 0x203   :  { %7281 = vmatpush1.bf16.msra.mxu1 %v9941_v40  ;;  %7241 = vmatprep.subr.bf16.mxu0 %v9946_v45  ;;  %v467_v40 = vpack.c.bf16 %v11075_v7, %v11075_v7  ;;  %v469_v45 = vpack.c.bf16 %v11078_v8, %v11078_v8 }
 0x204   :  { %7282 = vmatprep.subr.bf16.mxu1 %v9949_v46  ;;  %v10025_v46 = vld [vmem:[#allocation5 + $0x1064] ss:$8 sps:$4 sm:$0xff]  }
 0x206   :  { %7242 = vmatpush1.bf16.msra.mxu0 %v9944_v51  ;;  %v10028_v51 = vld [vmem:[#allocation5 + $0x1164] ss:$8 sps:$4 sm:$0xff]  }
 0x207   :  { %7283 = vmatpush1.bf16.msra.mxu1 %v9947_v52  ;;  %7243 = vmatprep.subr.bf16.mxu0 %v9952_v53  ;;  %v10023_v52 = vld [vmem:[#allocation5 + $0x1060] ss:$8 sps:$4 sm:$0xff]  }
 0x208   :  { %7284 = vmatprep.subr.bf16.mxu1 %v9955_v17  ;;  %v10026_v53 = vld [vmem:[#allocation5 + $0x1160] ss:$8 sps:$4 sm:$0xff]   ;;  %v472_v17 = vpack.c.bf16 %v254_v56, %v254_v56 }
 0x209   :  { %v10086_v56 = vld [vmem:[#allocation5 + $0x11c0] ss:$8 sps:$4 sm:$0xff]  }
 0x20a   :  { %7244 = vmatpush1.bf16.msra.mxu0 %v9950_v55  ;;  %v474_v55 = vpack.c.bf16 %v255_v57, %v255_v57  ;;  %v10091_v57 = vld [vmem:[#allocation5 + $0x10b4] ss:$8 sps:$4 sm:$0xff]  }
 0x20b   :  { %7285 = vmatpush1.bf16.msra.mxu1 %v9953_v58  ;;  %7245 = vmatprep.subr.bf16.mxu0 %v9958_v59 }
 0x20c   :  { %7286 = vmatprep.subr.bf16.mxu1 %v9961_v35 }
 0x20e   :  { %7246 = vmatpush1.bf16.msra.mxu0 %v9956_v23  ;;  %v10031_v23 = vld [vmem:[#allocation5 + $0x1054] ss:$8 sps:$4 sm:$0xff]  }
 0x20f   :  { %7287 = vmatpush1.bf16.msra.mxu1 %v9959_v39  ;;  %7247 = vmatprep.subr.bf16.mxu0 %v9964_v60  ;;  %v10034_v39 = vld [vmem:[#allocation5 + $0x1154] ss:$8 sps:$4 sm:$0xff]  }
 0x210   :  { %7288 = vmatprep.subr.bf16.mxu1 %v9967_v61 }
 0x212   :  { %7248 = vmatpush1.bf16.msra.mxu0 %v9962_v62  ;;  %v10029_v62 = vld [vmem:[#allocation5 + $0x1050] ss:$8 sps:$4 sm:$0xff]  }
 0x213   :  { %7289 = vmatpush1.bf16.msra.mxu1 %v9965_v63  ;;  %7249 = vmatprep.subr.bf16.mxu0 %v9970_v0  ;;  %v10032_v63 = vld [vmem:[#allocation5 + $0x1150] ss:$8 sps:$4 sm:$0xff]  }
 0x214   :  { %7290 = vmatprep.subr.bf16.mxu1 %v9973_v1 }
 0x216   :  { %7250 = vmatpush2.bf16.msra.mxu0 %v9968_v2 }
 0x217   :  { %7291 = vmatpush2.bf16.msra.mxu1 %v9971_v3  ;;  %7251 = vmatprep.subr.bf16.mxu0 %v9976_v4  ;;  %v10037_v4 = vld [vmem:[#allocation5 + $0x1044] ss:$8 sps:$4 sm:$0xff]  }
 0x218   :  { %7292 = vmatprep.subr.bf16.mxu1 %v9979_v18  ;;  %v10040_v18 = vld [vmem:[#allocation5 + $0x1144] ss:$8 sps:$4 sm:$0xff]  }
 0x21a   :  { %7252 = vmatpush2.bf16.msra.mxu0 %v9974_v19  ;;  %v10035_v19 = vld [vmem:[#allocation5 + $0x1040] ss:$8 sps:$4 sm:$0xff]  }
 0x21b   :  { %7293 = vmatpush2.bf16.msra.mxu1 %v9977_v5  ;;  %7253 = vmatprep.subr.bf16.mxu0 %v9982_v43  ;;  %v10043_v5 = vld [vmem:[#allocation5 + $0x1034] ss:$8 sps:$4 sm:$0xff]  }
 0x21c   :  { %7294 = vmatprep.subr.bf16.mxu1 %v9985_v9  ;;  %v10046_v43 = vld [vmem:[#allocation5 + $0x1134] ss:$8 sps:$4 sm:$0xff]   ;;  %v10041_v9 = vld [vmem:[#allocation5 + $0x1030] ss:$8 sps:$4 sm:$0xff]  }
 0x21e   :  { %7254 = vmatpush2.bf16.msra.mxu0 %v9980_v10  ;;  %v10044_v10 = vld [vmem:[#allocation5 + $0x1130] ss:$8 sps:$4 sm:$0xff]  }
 0x21f   :  { %7295 = vmatpush2.bf16.msra.mxu1 %v9983_v11  ;;  %7255 = vmatprep.subr.bf16.mxu0 %v9988_v47  ;;  %v10049_v11 = vld [vmem:[#allocation5 + $0x1024] ss:$8 sps:$4 sm:$0xff]  }
 0x220   :  { %7296 = vmatprep.subr.bf16.mxu1 %v9991_v12  ;;  %v10052_v47 = vld [vmem:[#allocation5 + $0x1124] ss:$8 sps:$4 sm:$0xff]   ;;  %v10047_v12 = vld [vmem:[#allocation5 + $0x1020] ss:$8 sps:$4 sm:$0xff]  }
 0x222   :  { %7256 = vmatpush2.bf16.msra.mxu0 %v9986_v41  ;;  %v10050_v41 = vld [vmem:[#allocation5 + $0x1120] ss:$8 sps:$4 sm:$0xff]  }
 0x223   :  { %7297 = vmatpush2.bf16.msra.mxu1 %v9989_v13  ;;  %7257 = vmatprep.subr.bf16.mxu0 %v9994_v14  ;;  %v10055_v13 = vld [vmem:[#allocation5 + $0x1014] ss:$8 sps:$4 sm:$0xff]  }
 0x224   :  { %7298 = vmatprep.subr.bf16.mxu1 %v9997_v54  ;;  %v10058_v14 = vld [vmem:[#allocation5 + $0x1114] ss:$8 sps:$4 sm:$0xff]   ;;  %v10053_v54 = vld [vmem:[#allocation5 + $0x1010] ss:$8 sps:$4 sm:$0xff]  }
 0x226   :  { %7258 = vmatpush2.bf16.msra.mxu0 %v9992_v15  ;;  %v10056_v15 = vld [vmem:[#allocation5 + $0x1110] ss:$8 sps:$4 sm:$0xff]  }
 0x227   :  { %7299 = vmatpush2.bf16.msra.mxu1 %v9995_v16  ;;  %7259 = vmatprep.subr.bf16.mxu0 %v10000_v20  ;;  %v10061_v16 = vld [vmem:[#allocation5 + $0x1004] ss:$8 sps:$4 sm:$0xff]  }
 0x228   :  { %7300 = vmatprep.subr.bf16.mxu1 %v10003_v21  ;;  %v10064_v20 = vld [vmem:[#allocation5 + $0x1104] ss:$8 sps:$4 sm:$0xff]   ;;  %v10059_v21 = vld [vmem:[#allocation5 + $0x1000] ss:$8 sps:$4 sm:$0xff]  }
 0x22a   :  { %7260 = vmatpush2.bf16.msra.mxu0 %v9998_v24  ;;  %v10067_v24 = vld [vmem:[#allocation5 + $0x10f4] ss:$8 sps:$4 sm:$0xff]  }
 0x22b   :  { %7301 = vmatpush2.bf16.msra.mxu1 %v10001_v25  ;;  %7261 = vmatprep.subr.bf16.mxu0 %v10006_v26  ;;  %v10070_v25 = vld [vmem:[#allocation5 + $0x11f4] ss:$8 sps:$4 sm:$0xff]   ;;  %v10065_v26 = vld [vmem:[#allocation5 + $0x10f0] ss:$8 sps:$4 sm:$0xff]  }
 0x22c   :  { %7302 = vmatprep.subr.bf16.mxu1 %v10009_v27  ;;  %v10068_v27 = vld [vmem:[#allocation5 + $0x11f0] ss:$8 sps:$4 sm:$0xff]  }
 0x22e   :  { %7262 = vmatpush2.bf16.msra.mxu0 %v10004_v48  ;;  %v10076_v48 = vld [vmem:[#allocation5 + $0x11e4] ss:$8 sps:$4 sm:$0xff]  }
 0x22f   :  { %7303 = vmatpush2.bf16.msra.mxu1 %v10007_v50  ;;  %7263 = vmatprep.subr.bf16.mxu0 %v10012_v29  ;;  %v10071_v50 = vld [vmem:[#allocation5 + $0x10e0] ss:$8 sps:$4 sm:$0xff]  }
 0x230   :  { %7304 = vmatprep.subr.bf16.mxu1 %v10015_v30  ;;  %v10074_v29 = vld [vmem:[#allocation5 + $0x11e0] ss:$8 sps:$4 sm:$0xff]   ;;  %v10079_v30 = vld [vmem:[#allocation5 + $0x10d4] ss:$8 sps:$4 sm:$0xff]  }
 0x232   :  { %7264 = vmatpush2.bf16.msra.mxu0 %v10010_v34  ;;  %v10082_v34 = vld [vmem:[#allocation5 + $0x11d4] ss:$8 sps:$4 sm:$0xff]  }
 0x233   :  { %7305 = vmatpush2.bf16.msra.mxu1 %v10013_v36  ;;  %7315 = vmatprep.subr.bf16.mxu0 %v10019_v37  ;;  %v10077_v36 = vld [vmem:[#allocation5 + $0x10d0] ss:$8 sps:$4 sm:$0xff]  }
 0x234   :  { %7356 = vmatprep.subr.bf16.mxu1 %v10022_v6  ;;  %v10080_v37 = vld [vmem:[#allocation5 + $0x11d0] ss:$8 sps:$4 sm:$0xff]   ;;  %v10085_v6 = vld [vmem:[#allocation5 + $0x10c4] ss:$8 sps:$4 sm:$0xff]  }
 0x235   :  { %v7021_v58 = vpop.f32.mrf.mxu0  ;;  %7266 = vmatmul.mubr.bf16.vlgmr.msra.gmra.mxu0 %v467_v40  ;;  %v10094_v40 = vld [vmem:[#allocation5 + $0x11b4] ss:$8 sps:$4 sm:$0xff]  }
 0x236   :  { %v7062_v59 = vpop.f32.mrf.mxu1  ;;  %7307 = vmatmul.mubr.bf16.vlgmr.msra.gmra.mxu1 %v469_v45  ;;  %v7022_v35 = vadd.f32 %v7021_v58, %v11089_v31  ;;  %7316 = vmatpush1.bf16.msra.mxu0 %v10017_v42  ;;  %v10088_v42 = vld [vmem:[#allocation5 + $0x11c4] ss:$8 sps:$4 sm:$0xff]   ;;  %v10089_v45 = vld [vmem:[#allocation5 + $0x10b0] ss:$8 sps:$4 sm:$0xff]   ;;  %v10103_v58 = vld [vmem:[#allocation5 + $0x1094] ss:$8 sps:$4 sm:$0xff]  }
 0x237   :  { %7357 = vmatpush1.bf16.msra.mxu1 %v10020_v44  ;;  %v7023_v7 = vpop.f32.mrf.mxu0  ;;  %7317 = vmatprep.subr.bf16.mxu0 %v10025_v46  ;;  %v10083_v44 = vld [vmem:[#allocation5 + $0x10c0] ss:$8 sps:$4 sm:$0xff]   ;;  %v10092_v46 = vld [vmem:[#allocation5 + $0x11b0] ss:$8 sps:$4 sm:$0xff]  }
 0x238   :  { %v7064_v8 = vpop.f32.mrf.mxu1  ;;  %7358 = vmatprep.subr.bf16.mxu1 %v10028_v51  ;;  %v11109_v60 = vadd.f32 %v7062_v59, %v7022_v35  ;;  %v7024_v61 = vadd.f32 %v7023_v7, %v11092_v38  ;;  %7347 = vmatprep.mubr.bf16.mxu0 %v472_v17  ;;  %v10038_v38 = vld [vmem:[#allocation5 + $0x1140] ss:$8 sps:$4 sm:$0xff]   ;;  %v10097_v51 = vld [vmem:[#allocation5 + $0x10a4] ss:$8 sps:$4 sm:$0xff]   ;;  %v10106_v59 = vld [vmem:[#allocation5 + $0x1194] ss:$8 sps:$4 sm:$0xff]  }
 0x239   :  { %7388 = vmatprep.mubr.bf16.mxu1 %v474_v55  ;;  %v7025_v0 = vpop.f32.mrf.mxu0  ;;  %v10095_v17 = vld [vmem:[#allocation5 + $0x10a0] ss:$8 sps:$4 sm:$0xff]   ;;  %v10101_v7 = vld [vmem:[#allocation5 + $0x1090] ss:$8 sps:$4 sm:$0xff]  }
 0x23a   :  { %v7066_v1 = vpop.f32.mrf.mxu1  ;;  %v11112_v2 = vadd.f32 %v7064_v8, %v7024_v61  ;;  %7318 = vmatpush1.bf16.msra.mxu0 %v10023_v52  ;;  %v10100_v52 = vld [vmem:[#allocation5 + $0x11a4] ss:$8 sps:$4 sm:$0xff]   ;;  %v10098_v55 = vld [vmem:[#allocation5 + $0x11a0] ss:$8 sps:$4 sm:$0xff]   ;;  %v10104_v8 = vld [vmem:[#allocation5 + $0x1190] ss:$8 sps:$4 sm:$0xff]  }
 0x23b   :  { %7359 = vmatpush1.bf16.msra.mxu1 %v10026_v53  ;;  %v7026_v31 = vpop.f32.mrf.mxu0  ;;  %7319 = vmatprep.subr.bf16.mxu0 %v10031_v23  ;;  %v80_v53 = vld [vmem:[#allocation2 + $0x48] sm:$0xff]  ;;  %v10116_v1 = vld [vmem:[#allocation5 + $0x1274] ss:$8 sps:$4 sm:$0xff]  }
 0x23c   :  { %v7067_v3 = vpop.f32.mrf.mxu1  ;;  %7360 = vmatprep.subr.bf16.mxu1 %v10034_v39  ;;  %v256_v35 = vcombine.high %v80_v53, %v80_v53  ;;  %v10109_v23 = vld [vmem:[#allocation5 + $0x1084] ss:$8 sps:$4 sm:$0xff]   ;;  %v11115_v61 = vrot.slane %v80_v53, %v10972_v49  ;;  %v10110_v0 = vld [vmem:[#allocation5 + $0x1180] ss:$8 sps:$4 sm:$0xff]   ;;  %v10119_v31 = vld [vmem:[#allocation5 + $0x1374] ss:$8 sps:$4 sm:$0xff]  }
 0x23d   :  { %v10112_v39 = vld [vmem:[#allocation5 + $0x1184] ss:$8 sps:$4 sm:$0xff]   ;;  %v10114_v3 = vld [vmem:[#allocation5 + $0x1270] ss:$8 sps:$4 sm:$0xff]   ;;  %v10159_v53 = vld [vmem:[#allocation5 + $0x1300] ss:$8 sps:$4 sm:$0xff]  }
 0x23e   :  { %7320 = vmatpush1.bf16.msra.mxu0 %v10029_v62  ;;  %v11118_v62 = vrot.slane %v256_v35, %v10972_v49  ;;  %v10170_v35 = vld [vmem:[#allocation5 + $0x12e4] ss:$8 sps:$4 sm:$0xff]  }
 0x23f   :  { %7361 = vmatpush1.bf16.msra.mxu1 %v10032_v63  ;;  %7321 = vmatprep.subr.bf16.mxu0 %v10037_v4  ;;  %v10107_v63 = vld [vmem:[#allocation5 + $0x1080] ss:$8 sps:$4 sm:$0xff]   ;;  %v10117_v4 = vld [vmem:[#allocation5 + $0x1370] ss:$8 sps:$4 sm:$0xff]  }
 0x240   :  { %7362 = vmatprep.subr.bf16.mxu1 %v10040_v18  ;;  %v271_v18 = vcombine.high %v11115_v61, %v11115_v61 }
 0x242   :  { %7322 = vmatpush1.bf16.msra.mxu0 %v10035_v19  ;;  %v272_v19 = vcombine.high %v11118_v62, %v11118_v62 }
 0x243   :  { %7363 = vmatpush1.bf16.msra.mxu1 %v10038_v38  ;;  %7323 = vmatprep.subr.bf16.mxu0 %v10043_v5  ;;  %v471_v38 = vpack.c.bf16 %v11095_v32, %v11095_v32  ;;  %v473_v5 = vpack.c.bf16 %v11098_v33, %v11098_v33 }
 0x244   :  { %7364 = vmatprep.subr.bf16.mxu1 %v10046_v43  ;;  %v10122_v43 = vld [vmem:[#allocation5 + $0x1264] ss:$8 sps:$4 sm:$0xff]  }
 0x246   :  { %7324 = vmatpush1.bf16.msra.mxu0 %v10041_v9  ;;  %v10125_v9 = vld [vmem:[#allocation5 + $0x1364] ss:$8 sps:$4 sm:$0xff]  }
 0x247   :  { %7365 = vmatpush1.bf16.msra.mxu1 %v10044_v10  ;;  %7325 = vmatprep.subr.bf16.mxu0 %v10049_v11  ;;  %v10120_v10 = vld [vmem:[#allocation5 + $0x1260] ss:$8 sps:$4 sm:$0xff]  }
 0x248   :  { %7366 = vmatprep.subr.bf16.mxu1 %v10052_v47  ;;  %v10123_v11 = vld [vmem:[#allocation5 + $0x1360] ss:$8 sps:$4 sm:$0xff]   ;;  %v476_v47 = vpack.c.bf16 %v271_v18, %v271_v18 }
 0x249   :  { %v10183_v18 = vld [vmem:[#allocation5 + $0x13c0] ss:$8 sps:$4 sm:$0xff]  }
 0x24a   :  { %7326 = vmatpush1.bf16.msra.mxu0 %v10047_v12  ;;  %v478_v12 = vpack.c.bf16 %v272_v19, %v272_v19  ;;  %v10188_v19 = vld [vmem:[#allocation5 + $0x12b4] ss:$8 sps:$4 sm:$0xff]  }
 0x24b   :  { %7367 = vmatpush1.bf16.msra.mxu1 %v10050_v41  ;;  %7327 = vmatprep.subr.bf16.mxu0 %v10055_v13 }
 0x24c   :  { %7368 = vmatprep.subr.bf16.mxu1 %v10058_v14 }
 0x24e   :  { %7328 = vmatpush1.bf16.msra.mxu0 %v10053_v54  ;;  %v10128_v54 = vld [vmem:[#allocation5 + $0x1254] ss:$8 sps:$4 sm:$0xff]  }
 0x24f   :  { %7369 = vmatpush1.bf16.msra.mxu1 %v10056_v15  ;;  %7329 = vmatprep.subr.bf16.mxu0 %v10061_v16  ;;  %v10131_v15 = vld [vmem:[#allocation5 + $0x1354] ss:$8 sps:$4 sm:$0xff]  }
 0x250   :  { %7370 = vmatprep.subr.bf16.mxu1 %v10064_v20 }
 0x252   :  { %7330 = vmatpush1.bf16.msra.mxu0 %v10059_v21  ;;  %v10126_v21 = vld [vmem:[#allocation5 + $0x1250] ss:$8 sps:$4 sm:$0xff]  }
 0x253   :  { %7371 = vmatpush1.bf16.msra.mxu1 %v10062_v22  ;;  %7331 = vmatprep.subr.bf16.mxu0 %v10067_v24  ;;  %v10129_v22 = vld [vmem:[#allocation5 + $0x1350] ss:$8 sps:$4 sm:$0xff]  }
 0x254   :  { %7372 = vmatprep.subr.bf16.mxu1 %v10070_v25 }
 0x256   :  { %7332 = vmatpush2.bf16.msra.mxu0 %v10065_v26 }
 0x257   :  { %7373 = vmatpush2.bf16.msra.mxu1 %v10068_v27  ;;  %7333 = vmatprep.subr.bf16.mxu0 %v10073_v28  ;;  %v10134_v28 = vld [vmem:[#allocation5 + $0x1244] ss:$8 sps:$4 sm:$0xff]  }
 0x258   :  { %7374 = vmatprep.subr.bf16.mxu1 %v10076_v48  ;;  %v10137_v48 = vld [vmem:[#allocation5 + $0x1344] ss:$8 sps:$4 sm:$0xff]  }
 0x25a   :  { %7334 = vmatpush2.bf16.msra.mxu0 %v10071_v50  ;;  %v10132_v50 = vld [vmem:[#allocation5 + $0x1240] ss:$8 sps:$4 sm:$0xff]  }
 0x25b   :  { %7375 = vmatpush2.bf16.msra.mxu1 %v10074_v29  ;;  %7335 = vmatprep.subr.bf16.mxu0 %v10079_v30  ;;  %v10140_v29 = vld [vmem:[#allocation5 + $0x1234] ss:$8 sps:$4 sm:$0xff]  }
 0x25c   :  { %7376 = vmatprep.subr.bf16.mxu1 %v10082_v34  ;;  %v10143_v30 = vld [vmem:[#allocation5 + $0x1334] ss:$8 sps:$4 sm:$0xff]   ;;  %v10138_v34 = vld [vmem:[#allocation5 + $0x1230] ss:$8 sps:$4 sm:$0xff]  }
 0x25e   :  { %7336 = vmatpush2.bf16.msra.mxu0 %v10077_v36  ;;  %v10141_v36 = vld [vmem:[#allocation5 + $0x1330] ss:$8 sps:$4 sm:$0xff]  }
 0x25f   :  { %7377 = vmatpush2.bf16.msra.mxu1 %v10080_v37  ;;  %7337 = vmatprep.subr.bf16.mxu0 %v10085_v6  ;;  %v10146_v37 = vld [vmem:[#allocation5 + $0x1224] ss:$8 sps:$4 sm:$0xff]  }
 0x260   :  { %7378 = vmatprep.subr.bf16.mxu1 %v10088_v42  ;;  %v10149_v6 = vld [vmem:[#allocation5 + $0x1324] ss:$8 sps:$4 sm:$0xff]   ;;  %v10144_v42 = vld [vmem:[#allocation5 + $0x1220] ss:$8 sps:$4 sm:$0xff]  }
 0x262   :  { %7338 = vmatpush2.bf16.msra.mxu0 %v10083_v44  ;;  %v10147_v44 = vld [vmem:[#allocation5 + $0x1320] ss:$8 sps:$4 sm:$0xff]  }
 0x263   :  { %7379 = vmatpush2.bf16.msra.mxu1 %v10086_v56  ;;  %7339 = vmatprep.subr.bf16.mxu0 %v10091_v57  ;;  %v10152_v56 = vld [vmem:[#allocation5 + $0x1214] ss:$8 sps:$4 sm:$0xff]  }
 0x264   :  { %7380 = vmatprep.subr.bf16.mxu1 %v10094_v40  ;;  %v10155_v57 = vld [vmem:[#allocation5 + $0x1314] ss:$8 sps:$4 sm:$0xff]   ;;  %v10150_v40 = vld [vmem:[#allocation5 + $0x1210] ss:$8 sps:$4 sm:$0xff]  }
 0x266   :  { %7340 = vmatpush2.bf16.msra.mxu0 %v10089_v45  ;;  %v10153_v45 = vld [vmem:[#allocation5 + $0x1310] ss:$8 sps:$4 sm:$0xff]  }
 0x267   :  { %7381 = vmatpush2.bf16.msra.mxu1 %v10092_v46  ;;  %7341 = vmatprep.subr.bf16.mxu0 %v10097_v51  ;;  %v10158_v46 = vld [vmem:[#allocation5 + $0x1204] ss:$8 sps:$4 sm:$0xff]  }
 0x268   :  { %7382 = vmatprep.subr.bf16.mxu1 %v10100_v52  ;;  %v10161_v51 = vld [vmem:[#allocation5 + $0x1304] ss:$8 sps:$4 sm:$0xff]   ;;  %v10156_v52 = vld [vmem:[#allocation5 + $0x1200] ss:$8 sps:$4 sm:$0xff]  }
 0x26a   :  { %7342 = vmatpush2.bf16.msra.mxu0 %v10095_v17  ;;  %v10164_v17 = vld [vmem:[#allocation5 + $0x12f4] ss:$8 sps:$4 sm:$0xff]  }
 0x26b   :  { %7383 = vmatpush2.bf16.msra.mxu1 %v10098_v55  ;;  %7343 = vmatprep.subr.bf16.mxu0 %v10103_v58  ;;  %v10167_v55 = vld [vmem:[#allocation5 + $0x13f4] ss:$8 sps:$4 sm:$0xff]   ;;  %v10162_v58 = vld [vmem:[#allocation5 + $0x12f0] ss:$8 sps:$4 sm:$0xff]  }
 0x26c   :  { %7384 = vmatprep.subr.bf16.mxu1 %v10106_v59  ;;  %v10165_v59 = vld [vmem:[#allocation5 + $0x13f0] ss:$8 sps:$4 sm:$0xff]  }
 0x26e   :  { %7344 = vmatpush2.bf16.msra.mxu0 %v10101_v7  ;;  %v10173_v7 = vld [vmem:[#allocation5 + $0x13e4] ss:$8 sps:$4 sm:$0xff]  }
 0x26f   :  { %7385 = vmatpush2.bf16.msra.mxu1 %v10104_v8  ;;  %7345 = vmatprep.subr.bf16.mxu0 %v10109_v23  ;;  %v10168_v8 = vld [vmem:[#allocation5 + $0x12e0] ss:$8 sps:$4 sm:$0xff]  }
 0x270   :  { %7386 = vmatprep.subr.bf16.mxu1 %v10112_v39  ;;  %v10171_v23 = vld [vmem:[#allocation5 + $0x13e0] ss:$8 sps:$4 sm:$0xff]   ;;  %v10176_v39 = vld [vmem:[#allocation5 + $0x12d4] ss:$8 sps:$4 sm:$0xff]  }
 0x272   :  { %7346 = vmatpush2.bf16.msra.mxu0 %v10107_v63  ;;  %v10179_v63 = vld [vmem:[#allocation5 + $0x13d4] ss:$8 sps:$4 sm:$0xff]  }
 0x273   :  { %7387 = vmatpush2.bf16.msra.mxu1 %v10110_v0  ;;  %7397 = vmatprep.subr.bf16.mxu0 %v10116_v1  ;;  %v10174_v0 = vld [vmem:[#allocation5 + $0x12d0] ss:$8 sps:$4 sm:$0xff]  }
 0x274   :  { %7438 = vmatprep.subr.bf16.mxu1 %v10119_v31  ;;  %v10177_v1 = vld [vmem:[#allocation5 + $0x13d0] ss:$8 sps:$4 sm:$0xff]   ;;  %v10182_v31 = vld [vmem:[#allocation5 + $0x12c4] ss:$8 sps:$4 sm:$0xff]  }
 0x275   :  { %v7103_v41 = vpop.f32.mrf.mxu0  ;;  %7348 = vmatmul.mubr.bf16.vlgmr.msra.gmra.mxu0 %v471_v38  ;;  %v10191_v38 = vld [vmem:[#allocation5 + $0x13b4] ss:$8 sps:$4 sm:$0xff]  }
 0x276   :  { %v7144_v13 = vpop.f32.mrf.mxu1  ;;  %7389 = vmatmul.mubr.bf16.vlgmr.msra.gmra.mxu1 %v473_v5  ;;  %v7104_v14 = vadd.f32 %v7103_v41, %v11109_v60  ;;  %7398 = vmatpush1.bf16.msra.mxu0 %v10114_v3  ;;  %v10185_v3 = vld [vmem:[#allocation5 + $0x13c4] ss:$8 sps:$4 sm:$0xff]   ;;  %v10186_v5 = vld [vmem:[#allocation5 + $0x12b0] ss:$8 sps:$4 sm:$0xff]   ;;  %v10200_v41 = vld [vmem:[#allocation5 + $0x1294] ss:$8 sps:$4 sm:$0xff]  }
 0x277   :  { %7439 = vmatpush1.bf16.msra.mxu1 %v10117_v4  ;;  %v7105_v32 = vpop.f32.mrf.mxu0  ;;  %7399 = vmatprep.subr.bf16.mxu0 %v10122_v43  ;;  %v10180_v4 = vld [vmem:[#allocation5 + $0x12c0] ss:$8 sps:$4 sm:$0xff]   ;;  %v10189_v43 = vld [vmem:[#allocation5 + $0x13b0] ss:$8 sps:$4 sm:$0xff]  }
 0x278   :  { %v7146_v33 = vpop.f32.mrf.mxu1  ;;  %7440 = vmatprep.subr.bf16.mxu1 %v10125_v9  ;;  %v11129_v16 = vadd.f32 %v7144_v13, %v7104_v14  ;;  %v7106_v20 = vadd.f32 %v7105_v32, %v11112_v2  ;;  %7429 = vmatprep.mubr.bf16.mxu0 %v476_v47  ;;  %v10135_v2 = vld [vmem:[#allocation5 + $0x1340] ss:$8 sps:$4 sm:$0xff]   ;;  %v10194_v9 = vld [vmem:[#allocation5 + $0x12a4] ss:$8 sps:$4 sm:$0xff]   ;;  %v10203_v13 = vld [vmem:[#allocation5 + $0x1394] ss:$8 sps:$4 sm:$0xff]  }
 0x279   :  { %7470 = vmatprep.mubr.bf16.mxu1 %v478_v12  ;;  %v7107_v24 = vpop.f32.mrf.mxu0  ;;  %v10192_v47 = vld [vmem:[#allocation5 + $0x12a0] ss:$8 sps:$4 sm:$0xff]   ;;  %v10198_v32 = vld [vmem:[#allocation5 + $0x1290] ss:$8 sps:$4 sm:$0xff]  }
 0x27a   :  { %v7148_v25 = vpop.f32.mrf.mxu1  ;;  %v11132_v26 = vadd.f32 %v7146_v33, %v7106_v20  ;;  %7400 = vmatpush1.bf16.msra.mxu0 %v10120_v10  ;;  %v10197_v10 = vld [vmem:[#allocation5 + $0x13a4] ss:$8 sps:$4 sm:$0xff]   ;;  %v10195_v12 = vld [vmem:[#allocation5 + $0x13a0] ss:$8 sps:$4 sm:$0xff]   ;;  %v10201_v33 = vld [vmem:[#allocation5 + $0x1390] ss:$8 sps:$4 sm:$0xff]  }
 0x27b   :  { %7441 = vmatpush1.bf16.msra.mxu1 %v10123_v11  ;;  %v7108_v60 = vpop.f32.mrf.mxu0  ;;  %7401 = vmatprep.subr.bf16.mxu0 %v10128_v54  ;;  %v81_v11 = vld [vmem:[#allocation2 + $0x50] sm:$0xff]  ;;  %v10206_v54 = vld [vmem:[#allocation5 + $0x1284] ss:$8 sps:$4 sm:$0xff]   ;;  %v10207_v24 = vld [vmem:[#allocation5 + $0x1380] ss:$8 sps:$4 sm:$0xff]  }
 0x27c   :  { %v7149_v27 = vpop.f32.mrf.mxu1  ;;  %7442 = vmatprep.subr.bf16.mxu1 %v10131_v15  ;;  %v273_v14 = vcombine.high %v81_v11, %v81_v11  ;;  %v10209_v15 = vld [vmem:[#allocation5 + $0x1384] ss:$8 sps:$4 sm:$0xff]   ;;  %v11135_v20 = vrot.slane %v81_v11, %v10972_v49  ;;  %v10213_v25 = vld [vmem:[#allocation5 + $0x1474] ss:$8 sps:$4 sm:$0xff]   ;;  %v10256_v11 = vld [vmem:[#allocation5 + $0x1500] ss:$8 sps:$4 sm:$0xff]  }
 0x27d   :  { %v10216_v60 = vld [vmem:[#allocation5 + $0x1574] ss:$8 sps:$4 sm:$0xff]  }
 0x27e   :  { %7402 = vmatpush1.bf16.msra.mxu0 %v10126_v21  ;;  %v11138_v21 = vrot.slane %v273_v14, %v10972_v49  ;;  %v288_v27 = vcombine.high %v11135_v20, %v11135_v20  ;;  %v10267_v14 = vld [vmem:[#allocation5 + $0x14e4] ss:$8 sps:$4 sm:$0xff]  }
 0x27f   :  { %7443 = vmatpush1.bf16.msra.mxu1 %v10129_v22  ;;  %7403 = vmatprep.subr.bf16.mxu0 %v10134_v28  ;;  %v10204_v22 = vld [vmem:[#allocation5 + $0x1280] ss:$8 sps:$4 sm:$0xff]  }
 0x280   :  { %7444 = vmatprep.subr.bf16.mxu1 %v10137_v48  ;;  %v289_v28 = vcombine.high %v11138_v21, %v11138_v21  ;;  %v475_v48 = vpack.c.bf16 %v11115_v61, %v11115_v61  ;;  %v10217_v61 = vld [vmem:[#allocation5 + $0x1460] ss:$8 sps:$4 sm:$0xff]  }
 0x282   :  { %7404 = vmatpush1.bf16.msra.mxu0 %v10132_v50  ;;  %v477_v50 = vpack.c.bf16 %v11118_v62, %v11118_v62  ;;  %v10220_v62 = vld [vmem:[#allocation5 + $0x1560] ss:$8 sps:$4 sm:$0xff]  }
 0x283   :  { %7445 = vmatpush1.bf16.msra.mxu1 %v10135_v2  ;;  %7405 = vmatprep.subr.bf16.mxu0 %v10140_v29  ;;  %v10211_v2 = vld [vmem:[#allocation5 + $0x1470] ss:$8 sps:$4 sm:$0xff]  }
 0x284   :  { %7446 = vmatprep.subr.bf16.mxu1 %v10143_v30  ;;  %v10214_v29 = vld [vmem:[#allocation5 + $0x1570] ss:$8 sps:$4 sm:$0xff]   ;;  %v10219_v30 = vld [vmem:[#allocation5 + $0x1464] ss:$8 sps:$4 sm:$0xff]  }
 0x286   :  { %7406 = vmatpush1.bf16.msra.mxu0 %v10138_v34  ;;  %v10222_v34 = vld [vmem:[#allocation5 + $0x1564] ss:$8 sps:$4 sm:$0xff]  }
 0x287   :  { %7447 = vmatpush1.bf16.msra.mxu1 %v10141_v36  ;;  %7407 = vmatprep.subr.bf16.mxu0 %v10146_v37  ;;  %v480_v36 = vpack.c.bf16 %v288_v27, %v288_v27  ;;  %v482_v37 = vpack.c.bf16 %v289_v28, %v289_v28  ;;  %v10282_v27 = vld [vmem:[#allocation5 + $0x15c4] ss:$8 sps:$4 sm:$0xff]   ;;  %v10277_v28 = vld [vmem:[#allocation5 + $0x14c0] ss:$8 sps:$4 sm:$0xff]  }
 0x288   :  { %7448 = vmatprep.subr.bf16.mxu1 %v10149_v6 }
 0x28a   :  { %7408 = vmatpush1.bf16.msra.mxu0 %v10144_v42 }
 0x28b   :  { %7449 = vmatpush1.bf16.msra.mxu1 %v10147_v44  ;;  %7409 = vmatprep.subr.bf16.mxu0 %v10152_v56 }
 0x28c   :  { %7450 = vmatprep.subr.bf16.mxu1 %v10155_v57 }
 0x28e   :  { %7410 = vmatpush1.bf16.msra.mxu0 %v10150_v40  ;;  %v10225_v40 = vld [vmem:[#allocation5 + $0x1454] ss:$8 sps:$4 sm:$0xff]  }
 0x28f   :  { %7451 = vmatpush1.bf16.msra.mxu1 %v10153_v45  ;;  %7411 = vmatprep.subr.bf16.mxu0 %v10158_v46  ;;  %v10228_v45 = vld [vmem:[#allocation5 + $0x1554] ss:$8 sps:$4 sm:$0xff]  }
 0x290   :  { %7452 = vmatprep.subr.bf16.mxu1 %v10161_v51 }
 0x292   :  { %7412 = vmatpush1.bf16.msra.mxu0 %v10156_v52 }
 0x293   :  { %7453 = vmatpush1.bf16.msra.mxu1 %v10159_v53  ;;  %7413 = vmatprep.subr.bf16.mxu0 %v10164_v17 }
 0x294   :  { %7454 = vmatprep.subr.bf16.mxu1 %v10167_v55  ;;  %v10226_v55 = vld [vmem:[#allocation5 + $0x1550] ss:$8 sps:$4 sm:$0xff]  }
 0x296   :  { %7414 = vmatpush2.bf16.msra.mxu0 %v10162_v58 }
 0x297   :  { %7455 = vmatpush2.bf16.msra.mxu1 %v10165_v59  ;;  %7415 = vmatprep.subr.bf16.mxu0 %v10170_v35  ;;  %v10231_v35 = vld [vmem:[#allocation5 + $0x1444] ss:$8 sps:$4 sm:$0xff]  }
 0x298   :  { %7456 = vmatprep.subr.bf16.mxu1 %v10173_v7  ;;  %v10234_v7 = vld [vmem:[#allocation5 + $0x1544] ss:$8 sps:$4 sm:$0xff]  }
 0x29a   :  { %7416 = vmatpush2.bf16.msra.mxu0 %v10168_v8  ;;  %v10229_v8 = vld [vmem:[#allocation5 + $0x1440] ss:$8 sps:$4 sm:$0xff]  }
 0x29b   :  { %7457 = vmatpush2.bf16.msra.mxu1 %v10171_v23  ;;  %7417 = vmatprep.subr.bf16.mxu0 %v10176_v39  ;;  %v10237_v23 = vld [vmem:[#allocation5 + $0x1434] ss:$8 sps:$4 sm:$0xff]  }
 0x29c   :  { %7458 = vmatprep.subr.bf16.mxu1 %v10179_v63  ;;  %v10240_v39 = vld [vmem:[#allocation5 + $0x1534] ss:$8 sps:$4 sm:$0xff]   ;;  %v10235_v63 = vld [vmem:[#allocation5 + $0x1430] ss:$8 sps:$4 sm:$0xff]  }
 0x29e   :  { %7418 = vmatpush2.bf16.msra.mxu0 %v10174_v0  ;;  %v10238_v0 = vld [vmem:[#allocation5 + $0x1530] ss:$8 sps:$4 sm:$0xff]  }
 0x29f   :  { %7459 = vmatpush2.bf16.msra.mxu1 %v10177_v1  ;;  %7419 = vmatprep.subr.bf16.mxu0 %v10182_v31  ;;  %v10243_v1 = vld [vmem:[#allocation5 + $0x1424] ss:$8 sps:$4 sm:$0xff]  }
 0x2a0   :  { %7460 = vmatprep.subr.bf16.mxu1 %v10185_v3  ;;  %v10246_v31 = vld [vmem:[#allocation5 + $0x1524] ss:$8 sps:$4 sm:$0xff]   ;;  %v10241_v3 = vld [vmem:[#allocation5 + $0x1420] ss:$8 sps:$4 sm:$0xff]  }
 0x2a2   :  { %7420 = vmatpush2.bf16.msra.mxu0 %v10180_v4  ;;  %v10244_v4 = vld [vmem:[#allocation5 + $0x1520] ss:$8 sps:$4 sm:$0xff]  }
 0x2a3   :  { %7461 = vmatpush2.bf16.msra.mxu1 %v10183_v18  ;;  %7421 = vmatprep.subr.bf16.mxu0 %v10188_v19  ;;  %v10249_v18 = vld [vmem:[#allocation5 + $0x1414] ss:$8 sps:$4 sm:$0xff]  }
 0x2a4   :  { %7462 = vmatprep.subr.bf16.mxu1 %v10191_v38  ;;  %v10252_v19 = vld [vmem:[#allocation5 + $0x1514] ss:$8 sps:$4 sm:$0xff]   ;;  %v10247_v38 = vld [vmem:[#allocation5 + $0x1410] ss:$8 sps:$4 sm:$0xff]  }
 0x2a6   :  { %7422 = vmatpush2.bf16.msra.mxu0 %v10186_v5  ;;  %v10250_v5 = vld [vmem:[#allocation5 + $0x1510] ss:$8 sps:$4 sm:$0xff]  }
 0x2a7   :  { %7463 = vmatpush2.bf16.msra.mxu1 %v10189_v43  ;;  %7423 = vmatprep.subr.bf16.mxu0 %v10194_v9  ;;  %v10255_v43 = vld [vmem:[#allocation5 + $0x1404] ss:$8 sps:$4 sm:$0xff]  }
 0x2a8   :  { %7464 = vmatprep.subr.bf16.mxu1 %v10197_v10  ;;  %v10258_v9 = vld [vmem:[#allocation5 + $0x1504] ss:$8 sps:$4 sm:$0xff]   ;;  %v10253_v10 = vld [vmem:[#allocation5 + $0x1400] ss:$8 sps:$4 sm:$0xff]  }
 0x2aa   :  { %7424 = vmatpush2.bf16.msra.mxu0 %v10192_v47  ;;  %v10261_v47 = vld [vmem:[#allocation5 + $0x14f4] ss:$8 sps:$4 sm:$0xff]  }
 0x2ab   :  { %7465 = vmatpush2.bf16.msra.mxu1 %v10195_v12  ;;  %7425 = vmatprep.subr.bf16.mxu0 %v10200_v41  ;;  %v10264_v12 = vld [vmem:[#allocation5 + $0x15f4] ss:$8 sps:$4 sm:$0xff]   ;;  %v10259_v41 = vld [vmem:[#allocation5 + $0x14f0] ss:$8 sps:$4 sm:$0xff]  }
 0x2ac   :  { %7466 = vmatprep.subr.bf16.mxu1 %v10203_v13  ;;  %v10262_v13 = vld [vmem:[#allocation5 + $0x15f0] ss:$8 sps:$4 sm:$0xff]  }
 0x2ae   :  { %7426 = vmatpush2.bf16.msra.mxu0 %v10198_v32  ;;  %v10270_v32 = vld [vmem:[#allocation5 + $0x15e4] ss:$8 sps:$4 sm:$0xff]  }
 0x2af   :  { %7467 = vmatpush2.bf16.msra.mxu1 %v10201_v33  ;;  %7427 = vmatprep.subr.bf16.mxu0 %v10206_v54  ;;  %v10265_v33 = vld [vmem:[#allocation5 + $0x14e0] ss:$8 sps:$4 sm:$0xff]  }
 0x2b0   :  { %7468 = vmatprep.subr.bf16.mxu1 %v10209_v15  ;;  %v10268_v54 = vld [vmem:[#allocation5 + $0x15e0] ss:$8 sps:$4 sm:$0xff]   ;;  %v10273_v15 = vld [vmem:[#allocation5 + $0x14d4] ss:$8 sps:$4 sm:$0xff]  }
 0x2b2   :  { %7428 = vmatpush2.bf16.msra.mxu0 %v10204_v22  ;;  %v10276_v22 = vld [vmem:[#allocation5 + $0x15d4] ss:$8 sps:$4 sm:$0xff]  }
 0x2b3   :  { %7469 = vmatpush2.bf16.msra.mxu1 %v10207_v24  ;;  %7479 = vmatprep.subr.bf16.mxu0 %v10213_v25  ;;  %v10271_v24 = vld [vmem:[#allocation5 + $0x14d0] ss:$8 sps:$4 sm:$0xff]  }
 0x2b4   :  { %7520 = vmatprep.subr.bf16.mxu1 %v10216_v60  ;;  %v10274_v25 = vld [vmem:[#allocation5 + $0x15d0] ss:$8 sps:$4 sm:$0xff]   ;;  %v10279_v60 = vld [vmem:[#allocation5 + $0x14c4] ss:$8 sps:$4 sm:$0xff]  }
 0x2b5   :  { %v7185_v6 = vpop.f32.mrf.mxu0  ;;  %7430 = vmatmul.mubr.bf16.vlgmr.msra.gmra.mxu0 %v475_v48  ;;  %v10280_v48 = vld [vmem:[#allocation5 + $0x15c0] ss:$8 sps:$4 sm:$0xff]  }
 0x2b6   :  { %v7226_v42 = vpop.f32.mrf.mxu1  ;;  %7471 = vmatmul.mubr.bf16.vlgmr.msra.gmra.mxu1 %v477_v50  ;;  %v7186_v44 = vadd.f32 %v7185_v6, %v11129_v16  ;;  %7480 = vmatpush1.bf16.msra.mxu0 %v10211_v2  ;;  %v10223_v16 = vld [vmem:[#allocation5 + $0x1450] ss:$8 sps:$4 sm:$0xff]   ;;  %v10285_v50 = vld [vmem:[#allocation5 + $0x14b4] ss:$8 sps:$4 sm:$0xff]   ;;  %v10289_v6 = vld [vmem:[#allocation5 + $0x14a0] ss:$8 sps:$4 sm:$0xff]  }
 0x2b7   :  { %7521 = vmatpush1.bf16.msra.mxu1 %v10214_v29  ;;  %v7187_v56 = vpop.f32.mrf.mxu0  ;;  %7481 = vmatprep.subr.bf16.mxu0 %v10219_v30  ;;  %v10288_v2 = vld [vmem:[#allocation5 + $0x15b4] ss:$8 sps:$4 sm:$0xff]   ;;  %v10283_v29 = vld [vmem:[#allocation5 + $0x14b0] ss:$8 sps:$4 sm:$0xff]  }
 0x2b8   :  { %v7228_v57 = vpop.f32.mrf.mxu1  ;;  %7522 = vmatprep.subr.bf16.mxu1 %v10222_v34  ;;  %v11149_v46 = vadd.f32 %v7226_v42, %v7186_v44  ;;  %v7188_v51 = vadd.f32 %v7187_v56, %v11132_v26  ;;  %7511 = vmatprep.mubr.bf16.mxu0 %v480_v36  ;;  %v10232_v26 = vld [vmem:[#allocation5 + $0x1540] ss:$8 sps:$4 sm:$0xff]   ;;  %v10286_v30 = vld [vmem:[#allocation5 + $0x15b0] ss:$8 sps:$4 sm:$0xff]   ;;  %v10291_v34 = vld [vmem:[#allocation5 + $0x14a4] ss:$8 sps:$4 sm:$0xff]  }
 0x2b9   :  { %7552 = vmatprep.mubr.bf16.mxu1 %v482_v37  ;;  %v7189_v52 = vpop.f32.mrf.mxu0  ;;  %v10294_v36 = vld [vmem:[#allocation5 + $0x15a4] ss:$8 sps:$4 sm:$0xff]   ;;  %v82_v37 = vld [vmem:[#allocation2 + $0x58] sm:$0xff]  ;;  %v10292_v42 = vld [vmem:[#allocation5 + $0x15a0] ss:$8 sps:$4 sm:$0xff]  }
 0x2ba   :  { %v7230_v53 = vpop.f32.mrf.mxu1  ;;  %v11152_v17 = vadd.f32 %v7228_v57, %v7188_v51  ;;  %7482 = vmatpush1.bf16.msra.mxu0 %v10217_v61  ;;  %v10297_v44 = vld [vmem:[#allocation5 + $0x1494] ss:$8 sps:$4 sm:$0xff]   ;;  %v10295_v56 = vld [vmem:[#allocation5 + $0x1490] ss:$8 sps:$4 sm:$0xff]   ;;  %v11155_v51 = vrot.slane %v82_v37, %v10972_v49 }
 0x2bb   :  { %7523 = vmatpush1.bf16.msra.mxu1 %v10220_v62  ;;  %v7190_v58 = vpop.f32.mrf.mxu0  ;;  %7483 = vmatprep.subr.bf16.mxu0 %v10225_v40  ;;  %v10300_v61 = vld [vmem:[#allocation5 + $0x1594] ss:$8 sps:$4 sm:$0xff]   ;;  %v290_v62 = vcombine.high %v82_v37, %v82_v37  ;;  %v10298_v57 = vld [vmem:[#allocation5 + $0x1590] ss:$8 sps:$4 sm:$0xff]   ;;  %v10303_v40 = vld [vmem:[#allocation5 + $0x1484] ss:$8 sps:$4 sm:$0xff]  }
 0x2bc   :  { %v7231_v59 = vpop.f32.mrf.mxu1  ;;  %7524 = vmatprep.subr.bf16.mxu1 %v10228_v45  ;;  %v10306_v45 = vld [vmem:[#allocation5 + $0x1584] ss:$8 sps:$4 sm:$0xff]   ;;  %v10301_v53 = vld [vmem:[#allocation5 + $0x1480] ss:$8 sps:$4 sm:$0xff]   ;;  %v10313_v58 = vld [vmem:[#allocation5 + $0x1774] ss:$8 sps:$4 sm:$0xff]  }
 0x2bd   :  { %v11158_v52 = vrot.slane %v290_v62, %v10972_v49  ;;  %v305_v59 = vcombine.high %v11155_v51, %v11155_v51  ;;  %v10353_v37 = vld [vmem:[#allocation5 + $0x1700] ss:$8 sps:$4 sm:$0xff]   ;;  %v10364_v62 = vld [vmem:[#allocation5 + $0x16e4] ss:$8 sps:$4 sm:$0xff]  }
 0x2be   :  { %7484 = vmatpush1.bf16.msra.mxu0 %v10223_v16  ;;  %v10304_v16 = vld [vmem:[#allocation5 + $0x1580] ss:$8 sps:$4 sm:$0xff]  }
 0x2bf   :  { %7525 = vmatpush1.bf16.msra.mxu1 %v10226_v55  ;;  %7485 = vmatprep.subr.bf16.mxu0 %v10231_v35  ;;  %v10310_v55 = vld [vmem:[#allocation5 + $0x1674] ss:$8 sps:$4 sm:$0xff]   ;;  %v306_v35 = vcombine.high %v11158_v52, %v11158_v52 }
 0x2c0   :  { %7526 = vmatprep.subr.bf16.mxu1 %v10234_v7  ;;  %v479_v7 = vpack.c.bf16 %v11135_v20, %v11135_v20  ;;  %v10314_v20 = vld [vmem:[#allocation5 + $0x1660] ss:$8 sps:$4 sm:$0xff]  }
 0x2c2   :  { %7486 = vmatpush1.bf16.msra.mxu0 %v10229_v8  ;;  %v481_v8 = vpack.c.bf16 %v11138_v21, %v11138_v21  ;;  %v10317_v21 = vld [vmem:[#allocation5 + $0x1760] ss:$8 sps:$4 sm:$0xff]  }
 0x2c3   :  { %7527 = vmatpush1.bf16.msra.mxu1 %v10232_v26  ;;  %7487 = vmatprep.subr.bf16.mxu0 %v10237_v23  ;;  %v10308_v26 = vld [vmem:[#allocation5 + $0x1670] ss:$8 sps:$4 sm:$0xff]  }
 0x2c4   :  { %7528 = vmatprep.subr.bf16.mxu1 %v10240_v39  ;;  %v10311_v23 = vld [vmem:[#allocation5 + $0x1770] ss:$8 sps:$4 sm:$0xff]   ;;  %v10316_v39 = vld [vmem:[#allocation5 + $0x1664] ss:$8 sps:$4 sm:$0xff]  }
 0x2c6   :  { %7488 = vmatpush1.bf16.msra.mxu0 %v10235_v63  ;;  %v10319_v63 = vld [vmem:[#allocation5 + $0x1764] ss:$8 sps:$4 sm:$0xff]  }
 0x2c7   :  { %7529 = vmatpush1.bf16.msra.mxu1 %v10238_v0  ;;  %7489 = vmatprep.subr.bf16.mxu0 %v10243_v1  ;;  %v484_v0 = vpack.c.bf16 %v305_v59, %v305_v59  ;;  %v486_v1 = vpack.c.bf16 %v306_v35, %v306_v35  ;;  %v10379_v59 = vld [vmem:[#allocation5 + $0x17c4] ss:$8 sps:$4 sm:$0xff]   ;;  %v10374_v35 = vld [vmem:[#allocation5 + $0x16c0] ss:$8 sps:$4 sm:$0xff]  }
 0x2c8   :  { %7530 = vmatprep.subr.bf16.mxu1 %v10246_v31 }
 0x2ca   :  { %7490 = vmatpush1.bf16.msra.mxu0 %v10241_v3 }
 0x2cb   :  { %7531 = vmatpush1.bf16.msra.mxu1 %v10244_v4  ;;  %7491 = vmatprep.subr.bf16.mxu0 %v10249_v18 }
 0x2cc   :  { %7532 = vmatprep.subr.bf16.mxu1 %v10252_v19 }
 0x2ce   :  { %7492 = vmatpush1.bf16.msra.mxu0 %v10247_v38  ;;  %v10322_v38 = vld [vmem:[#allocation5 + $0x1654] ss:$8 sps:$4 sm:$0xff]  }
 0x2cf   :  { %7533 = vmatpush1.bf16.msra.mxu1 %v10250_v5  ;;  %7493 = vmatprep.subr.bf16.mxu0 %v10255_v43  ;;  %v10325_v5 = vld [vmem:[#allocation5 + $0x1754] ss:$8 sps:$4 sm:$0xff]  }
 0x2d0   :  { %7534 = vmatprep.subr.bf16.mxu1 %v10258_v9 }
 0x2d2   :  { %7494 = vmatpush1.bf16.msra.mxu0 %v10253_v10 }
 0x2d3   :  { %7535 = vmatpush1.bf16.msra.mxu1 %v10256_v11  ;;  %7495 = vmatprep.subr.bf16.mxu0 %v10261_v47 }
 0x2d4   :  { %7536 = vmatprep.subr.bf16.mxu1 %v10264_v12  ;;  %v10323_v12 = vld [vmem:[#allocation5 + $0x1750] ss:$8 sps:$4 sm:$0xff]  }
 0x2d6   :  { %7496 = vmatpush2.bf16.msra.mxu0 %v10259_v41 }
 0x2d7   :  { %7537 = vmatpush2.bf16.msra.mxu1 %v10262_v13  ;;  %7497 = vmatprep.subr.bf16.mxu0 %v10267_v14  ;;  %v10328_v14 = vld [vmem:[#allocation5 + $0x1644] ss:$8 sps:$4 sm:$0xff]  }
 0x2d8   :  { %7538 = vmatprep.subr.bf16.mxu1 %v10270_v32  ;;  %v10331_v32 = vld [vmem:[#allocation5 + $0x1744] ss:$8 sps:$4 sm:$0xff]  }
 0x2da   :  { %7498 = vmatpush2.bf16.msra.mxu0 %v10265_v33  ;;  %v10326_v33 = vld [vmem:[#allocation5 + $0x1640] ss:$8 sps:$4 sm:$0xff]  }
 0x2db   :  { %7539 = vmatpush2.bf16.msra.mxu1 %v10268_v54  ;;  %7499 = vmatprep.subr.bf16.mxu0 %v10273_v15  ;;  %v10334_v54 = vld [vmem:[#allocation5 + $0x1634] ss:$8 sps:$4 sm:$0xff]  }
 0x2dc   :  { %7540 = vmatprep.subr.bf16.mxu1 %v10276_v22  ;;  %v10337_v15 = vld [vmem:[#allocation5 + $0x1734] ss:$8 sps:$4 sm:$0xff]   ;;  %v10332_v22 = vld [vmem:[#allocation5 + $0x1630] ss:$8 sps:$4 sm:$0xff]  }
 0x2de   :  { %7500 = vmatpush2.bf16.msra.mxu0 %v10271_v24  ;;  %v10335_v24 = vld [vmem:[#allocation5 + $0x1730] ss:$8 sps:$4 sm:$0xff]  }
 0x2df   :  { %7541 = vmatpush2.bf16.msra.mxu1 %v10274_v25  ;;  %7501 = vmatprep.subr.bf16.mxu0 %v10279_v60  ;;  %v10340_v25 = vld [vmem:[#allocation5 + $0x1624] ss:$8 sps:$4 sm:$0xff]  }
 0x2e0   :  { %7542 = vmatprep.subr.bf16.mxu1 %v10282_v27  ;;  %v10343_v60 = vld [vmem:[#allocation5 + $0x1724] ss:$8 sps:$4 sm:$0xff]   ;;  %v10338_v27 = vld [vmem:[#allocation5 + $0x1620] ss:$8 sps:$4 sm:$0xff]  }
 0x2e2   :  { %7502 = vmatpush2.bf16.msra.mxu0 %v10277_v28  ;;  %v10341_v28 = vld [vmem:[#allocation5 + $0x1720] ss:$8 sps:$4 sm:$0xff]  }
 0x2e3   :  { %7543 = vmatpush2.bf16.msra.mxu1 %v10280_v48  ;;  %7503 = vmatprep.subr.bf16.mxu0 %v10285_v50  ;;  %v10346_v48 = vld [vmem:[#allocation5 + $0x1614] ss:$8 sps:$4 sm:$0xff]  }
 0x2e4   :  { %7544 = vmatprep.subr.bf16.mxu1 %v10288_v2  ;;  %v10349_v50 = vld [vmem:[#allocation5 + $0x1714] ss:$8 sps:$4 sm:$0xff]   ;;  %v10344_v2 = vld [vmem:[#allocation5 + $0x1610] ss:$8 sps:$4 sm:$0xff]  }
 0x2e6   :  { %7504 = vmatpush2.bf16.msra.mxu0 %v10283_v29  ;;  %v10347_v29 = vld [vmem:[#allocation5 + $0x1710] ss:$8 sps:$4 sm:$0xff]  }
 0x2e7   :  { %7545 = vmatpush2.bf16.msra.mxu1 %v10286_v30  ;;  %7505 = vmatprep.subr.bf16.mxu0 %v10291_v34  ;;  %v10352_v30 = vld [vmem:[#allocation5 + $0x1604] ss:$8 sps:$4 sm:$0xff]  }
 0x2e8   :  { %7546 = vmatprep.subr.bf16.mxu1 %v10294_v36  ;;  %v10355_v34 = vld [vmem:[#allocation5 + $0x1704] ss:$8 sps:$4 sm:$0xff]   ;;  %v10350_v36 = vld [vmem:[#allocation5 + $0x1600] ss:$8 sps:$4 sm:$0xff]  }
 0x2ea   :  { %7506 = vmatpush2.bf16.msra.mxu0 %v10289_v6  ;;  %v10358_v6 = vld [vmem:[#allocation5 + $0x16f4] ss:$8 sps:$4 sm:$0xff]  }
 0x2eb   :  { %7547 = vmatpush2.bf16.msra.mxu1 %v10292_v42  ;;  %7507 = vmatprep.subr.bf16.mxu0 %v10297_v44  ;;  %v10361_v42 = vld [vmem:[#allocation5 + $0x17f4] ss:$8 sps:$4 sm:$0xff]   ;;  %v10356_v44 = vld [vmem:[#allocation5 + $0x16f0] ss:$8 sps:$4 sm:$0xff]  }
 0x2ec   :  { %7548 = vmatprep.subr.bf16.mxu1 %v10300_v61  ;;  %v10359_v61 = vld [vmem:[#allocation5 + $0x17f0] ss:$8 sps:$4 sm:$0xff]  }
 0x2ee   :  { %7508 = vmatpush2.bf16.msra.mxu0 %v10295_v56  ;;  %v10367_v56 = vld [vmem:[#allocation5 + $0x17e4] ss:$8 sps:$4 sm:$0xff]  }
 0x2ef   :  { %7549 = vmatpush2.bf16.msra.mxu1 %v10298_v57  ;;  %7509 = vmatprep.subr.bf16.mxu0 %v10303_v40  ;;  %v10362_v57 = vld [vmem:[#allocation5 + $0x16e0] ss:$8 sps:$4 sm:$0xff]  }
 0x2f0   :  { %7550 = vmatprep.subr.bf16.mxu1 %v10306_v45  ;;  %v10365_v40 = vld [vmem:[#allocation5 + $0x17e0] ss:$8 sps:$4 sm:$0xff]   ;;  %v10370_v45 = vld [vmem:[#allocation5 + $0x16d4] ss:$8 sps:$4 sm:$0xff]  }
 0x2f2   :  { %7510 = vmatpush2.bf16.msra.mxu0 %v10301_v53  ;;  %v10373_v53 = vld [vmem:[#allocation5 + $0x17d4] ss:$8 sps:$4 sm:$0xff]  }
 0x2f3   :  { %7551 = vmatpush2.bf16.msra.mxu1 %v10304_v16  ;;  %7561 = vmatprep.subr.bf16.mxu0 %v10310_v55  ;;  %v10368_v16 = vld [vmem:[#allocation5 + $0x16d0] ss:$8 sps:$4 sm:$0xff]  }
 0x2f4   :  { %7602 = vmatprep.subr.bf16.mxu1 %v10313_v58  ;;  %v10371_v55 = vld [vmem:[#allocation5 + $0x17d0] ss:$8 sps:$4 sm:$0xff]   ;;  %v10376_v58 = vld [vmem:[#allocation5 + $0x16c4] ss:$8 sps:$4 sm:$0xff]  }
 0x2f5   :  { %v7267_v31 = vpop.f32.mrf.mxu0  ;;  %7512 = vmatmul.mubr.bf16.vlgmr.msra.gmra.mxu0 %v479_v7  ;;  %v10377_v7 = vld [vmem:[#allocation5 + $0x17c0] ss:$8 sps:$4 sm:$0xff]  }
 0x2f6   :  { %v7308_v3 = vpop.f32.mrf.mxu1  ;;  %7553 = vmatmul.mubr.bf16.vlgmr.msra.gmra.mxu1 %v481_v8  ;;  %v7268_v4 = vadd.f32 %v7267_v31, %v11149_v46  ;;  %7562 = vmatpush1.bf16.msra.mxu0 %v10308_v26  ;;  %v10320_v46 = vld [vmem:[#allocation5 + $0x1650] ss:$8 sps:$4 sm:$0xff]   ;;  %v10382_v8 = vld [vmem:[#allocation5 + $0x16b4] ss:$8 sps:$4 sm:$0xff]   ;;  %v10386_v31 = vld [vmem:[#allocation5 + $0x16a0] ss:$8 sps:$4 sm:$0xff]  }
 0x2f7   :  { %7603 = vmatpush1.bf16.msra.mxu1 %v10311_v23  ;;  %v7269_v18 = vpop.f32.mrf.mxu0  ;;  %7563 = vmatprep.subr.bf16.mxu0 %v10316_v39  ;;  %v10385_v26 = vld [vmem:[#allocation5 + $0x17b4] ss:$8 sps:$4 sm:$0xff]   ;;  %v10380_v23 = vld [vmem:[#allocation5 + $0x16b0] ss:$8 sps:$4 sm:$0xff]  }
 0x2f8   :  { %v7310_v19 = vpop.f32.mrf.mxu1  ;;  %7604 = vmatprep.subr.bf16.mxu1 %v10319_v63  ;;  %v11169_v43 = vadd.f32 %v7308_v3, %v7268_v4  ;;  %v7270_v9 = vadd.f32 %v7269_v18, %v11152_v17  ;;  %7593 = vmatprep.mubr.bf16.mxu0 %v484_v0  ;;  %v10329_v17 = vld [vmem:[#allocation5 + $0x1740] ss:$8 sps:$4 sm:$0xff]   ;;  %v10383_v39 = vld [vmem:[#allocation5 + $0x17b0] ss:$8 sps:$4 sm:$0xff]   ;;  %v10388_v63 = vld [vmem:[#allocation5 + $0x16a4] ss:$8 sps:$4 sm:$0xff]  }
 0x2f9   :  { %7634 = vmatprep.mubr.bf16.mxu1 %v486_v1  ;;  %v7271_v10 = vpop.f32.mrf.mxu0  ;;  %v10391_v0 = vld [vmem:[#allocation5 + $0x17a4] ss:$8 sps:$4 sm:$0xff]   ;;  %v10389_v3 = vld [vmem:[#allocation5 + $0x17a0] ss:$8 sps:$4 sm:$0xff]   ;;  %v10394_v4 = vld [vmem:[#allocation5 + $0x1694] ss:$8 sps:$4 sm:$0xff]  }
 0x2fa   :  { %v7312_v11 = vpop.f32.mrf.mxu1  ;;  %v11172_v47 = vadd.f32 %v7310_v19, %v7270_v9  ;;  %7564 = vmatpush1.bf16.msra.mxu0 %v10314_v20  ;;  %v83_v1 = vld [vmem:[#allocation2 + $0x60] sm:$0xff]  ;;  %v10397_v20 = vld [vmem:[#allocation5 + $0x1794] ss:$8 sps:$4 sm:$0xff]   ;;  %v10392_v18 = vld [vmem:[#allocation5 + $0x1690] ss:$8 sps:$4 sm:$0xff]  }
 0x2fb   :  { %7605 = vmatpush1.bf16.msra.mxu1 %v10317_v21  ;;  %v7272_v41 = vpop.f32.mrf.mxu0  ;;  %7565 = vmatprep.subr.bf16.mxu0 %v10322_v38  ;;  %v307_v21 = vcombine.high %v83_v1, %v83_v1  ;;  %v10395_v19 = vld [vmem:[#allocation5 + $0x1790] ss:$8 sps:$4 sm:$0xff]   ;;  %v10400_v38 = vld [vmem:[#allocation5 + $0x1684] ss:$8 sps:$4 sm:$0xff]   ;;  %v11175_v9 = vrot.slane %v83_v1, %v10972_v49  ;;  %v10398_v11 = vld [vmem:[#allocation5 + $0x1680] ss:$8 sps:$4 sm:$0xff]  }
 0x2fc   :  { %v7313_v13 = vpop.f32.mrf.mxu1  ;;  %7606 = vmatprep.subr.bf16.mxu1 %v10325_v5  ;;  %v10403_v5 = vld [vmem:[#allocation5 + $0x1784] ss:$8 sps:$4 sm:$0xff]   ;;  %v10410_v41 = vld [vmem:[#allocation5 + $0x1974] ss:$8 sps:$4 sm:$0xff]   ;;  %v10450_v1 = vld [vmem:[#allocation5 + $0x1900] ss:$8 sps:$4 sm:$0xff]  }
 0x2fd   :  { %v11178_v10 = vrot.slane %v307_v21, %v10972_v49  ;;  %v322_v13 = vcombine.high %v11175_v9, %v11175_v9  ;;  %v10461_v21 = vld [vmem:[#allocation5 + $0x18e4] ss:$8 sps:$4 sm:$0xff]  }
 0x2fe   :  { %7566 = vmatpush1.bf16.msra.mxu0 %v10320_v46  ;;  %v10401_v46 = vld [vmem:[#allocation5 + $0x1780] ss:$8 sps:$4 sm:$0xff]  }
 0x2ff   :  { %7607 = vmatpush1.bf16.msra.mxu1 %v10323_v12  ;;  %7567 = vmatprep.subr.bf16.mxu0 %v10328_v14  ;;  %v10407_v12 = vld [vmem:[#allocation5 + $0x1874] ss:$8 sps:$4 sm:$0xff]   ;;  %v323_v14 = vcombine.high %v11178_v10, %v11178_v10 }
 0x300   :  { %7608 = vmatprep.subr.bf16.mxu1 %v10331_v32  ;;  %v483_v32 = vpack.c.bf16 %v11155_v51, %v11155_v51  ;;  %v10411_v51 = vld [vmem:[#allocation5 + $0x1860] ss:$8 sps:$4 sm:$0xff]  }
 0x302   :  { %7568 = vmatpush1.bf16.msra.mxu0 %v10326_v33  ;;  %v485_v33 = vpack.c.bf16 %v11158_v52, %v11158_v52  ;;  %v10414_v52 = vld [vmem:[#allocation5 + $0x1960] ss:$8 sps:$4 sm:$0xff]  }
 0x303   :  { %7609 = vmatpush1.bf16.msra.mxu1 %v10329_v17  ;;  %7569 = vmatprep.subr.bf16.mxu0 %v10334_v54  ;;  %v10405_v17 = vld [vmem:[#allocation5 + $0x1870] ss:$8 sps:$4 sm:$0xff]  }
 0x304   :  { %7610 = vmatprep.subr.bf16.mxu1 %v10337_v15  ;;  %v10408_v54 = vld [vmem:[#allocation5 + $0x1970] ss:$8 sps:$4 sm:$0xff]   ;;  %v10413_v15 = vld [vmem:[#allocation5 + $0x1864] ss:$8 sps:$4 sm:$0xff]  }
 0x306   :  { %7570 = vmatpush1.bf16.msra.mxu0 %v10332_v22  ;;  %v10416_v22 = vld [vmem:[#allocation5 + $0x1964] ss:$8 sps:$4 sm:$0xff]  }
 0x307   :  { %7611 = vmatpush1.bf16.msra.mxu1 %v10335_v24  ;;  %7571 = vmatprep.subr.bf16.mxu0 %v10340_v25  ;;  %v488_v24 = vpack.c.bf16 %v322_v13, %v322_v13  ;;  %v490_v25 = vpack.c.bf16 %v323_v14, %v323_v14  ;;  %v10476_v13 = vld [vmem:[#allocation5 + $0x19c4] ss:$8 sps:$4 sm:$0xff]   ;;  %v10471_v14 = vld [vmem:[#allocation5 + $0x18c0] ss:$8 sps:$4 sm:$0xff]  }
 0x308   :  { %7612 = vmatprep.subr.bf16.mxu1 %v10343_v60 }
 0x30a   :  { %7572 = vmatpush1.bf16.msra.mxu0 %v10338_v27 }
 0x30b   :  { %7613 = vmatpush1.bf16.msra.mxu1 %v10341_v28  ;;  %7573 = vmatprep.subr.bf16.mxu0 %v10346_v48 }
 0x30c   :  { %7614 = vmatprep.subr.bf16.mxu1 %v10349_v50 }
 0x30e   :  { %7574 = vmatpush1.bf16.msra.mxu0 %v10344_v2  ;;  %v10419_v2 = vld [vmem:[#allocation5 + $0x1854] ss:$8 sps:$4 sm:$0xff]  }
 0x30f   :  { %7615 = vmatpush1.bf16.msra.mxu1 %v10347_v29  ;;  %7575 = vmatprep.subr.bf16.mxu0 %v10352_v30  ;;  %v10422_v29 = vld [vmem:[#allocation5 + $0x1954] ss:$8 sps:$4 sm:$0xff]  }
 0x310   :  { %7616 = vmatprep.subr.bf16.mxu1 %v10355_v34 }
 0x312   :  { %7576 = vmatpush1.bf16.msra.mxu0 %v10350_v36 }
 0x313   :  { %7617 = vmatpush1.bf16.msra.mxu1 %v10353_v37  ;;  %7577 = vmatprep.subr.bf16.mxu0 %v10358_v6 }
 0x314   :  { %7618 = vmatprep.subr.bf16.mxu1 %v10361_v42  ;;  %v10420_v42 = vld [vmem:[#allocation5 + $0x1950] ss:$8 sps:$4 sm:$0xff]  }
 0x316   :  { %7578 = vmatpush2.bf16.msra.mxu0 %v10356_v44 }
 0x317   :  { %7619 = vmatpush2.bf16.msra.mxu1 %v10359_v61  ;;  %7579 = vmatprep.subr.bf16.mxu0 %v10364_v62  ;;  %v10425_v62 = vld [vmem:[#allocation5 + $0x1844] ss:$8 sps:$4 sm:$0xff]  }
 0x318   :  { %7620 = vmatprep.subr.bf16.mxu1 %v10367_v56  ;;  %v10428_v56 = vld [vmem:[#allocation5 + $0x1944] ss:$8 sps:$4 sm:$0xff]  }
 0x31a   :  { %7580 = vmatpush2.bf16.msra.mxu0 %v10362_v57  ;;  %v10423_v57 = vld [vmem:[#allocation5 + $0x1840] ss:$8 sps:$4 sm:$0xff]  }
 0x31b   :  { %7621 = vmatpush2.bf16.msra.mxu1 %v10365_v40  ;;  %7581 = vmatprep.subr.bf16.mxu0 %v10370_v45  ;;  %v10431_v40 = vld [vmem:[#allocation5 + $0x1834] ss:$8 sps:$4 sm:$0xff]  }
 0x31c   :  { %7622 = vmatprep.subr.bf16.mxu1 %v10373_v53  ;;  %v10434_v45 = vld [vmem:[#allocation5 + $0x1934] ss:$8 sps:$4 sm:$0xff]   ;;  %v10429_v53 = vld [vmem:[#allocation5 + $0x1830] ss:$8 sps:$4 sm:$0xff]  }
 0x31e   :  { %7582 = vmatpush2.bf16.msra.mxu0 %v10368_v16  ;;  %v10432_v16 = vld [vmem:[#allocation5 + $0x1930] ss:$8 sps:$4 sm:$0xff]  }
 0x31f   :  { %7623 = vmatpush2.bf16.msra.mxu1 %v10371_v55  ;;  %7583 = vmatprep.subr.bf16.mxu0 %v10376_v58  ;;  %v10437_v55 = vld [vmem:[#allocation5 + $0x1824] ss:$8 sps:$4 sm:$0xff]  }
 0x320   :  { %7624 = vmatprep.subr.bf16.mxu1 %v10379_v59  ;;  %v10440_v58 = vld [vmem:[#allocation5 + $0x1924] ss:$8 sps:$4 sm:$0xff]   ;;  %v10435_v59 = vld [vmem:[#allocation5 + $0x1820] ss:$8 sps:$4 sm:$0xff]  }
 0x322   :  { %7584 = vmatpush2.bf16.msra.mxu0 %v10374_v35  ;;  %v10438_v35 = vld [vmem:[#allocation5 + $0x1920] ss:$8 sps:$4 sm:$0xff]  }
 0x323   :  { %7625 = vmatpush2.bf16.msra.mxu1 %v10377_v7  ;;  %7585 = vmatprep.subr.bf16.mxu0 %v10382_v8  ;;  %v10443_v7 = vld [vmem:[#allocation5 + $0x1814] ss:$8 sps:$4 sm:$0xff]  }
 0x324   :  { %7626 = vmatprep.subr.bf16.mxu1 %v10385_v26  ;;  %v10446_v8 = vld [vmem:[#allocation5 + $0x1914] ss:$8 sps:$4 sm:$0xff]   ;;  %v10441_v26 = vld [vmem:[#allocation5 + $0x1810] ss:$8 sps:$4 sm:$0xff]  }
 0x326   :  { %7586 = vmatpush2.bf16.msra.mxu0 %v10380_v23  ;;  %v10444_v23 = vld [vmem:[#allocation5 + $0x1910] ss:$8 sps:$4 sm:$0xff]  }
 0x327   :  { %7627 = vmatpush2.bf16.msra.mxu1 %v10383_v39  ;;  %7587 = vmatprep.subr.bf16.mxu0 %v10388_v63  ;;  %v10449_v39 = vld [vmem:[#allocation5 + $0x1804] ss:$8 sps:$4 sm:$0xff]  }
 0x328   :  { %7628 = vmatprep.subr.bf16.mxu1 %v10391_v0  ;;  %v10452_v63 = vld [vmem:[#allocation5 + $0x1904] ss:$8 sps:$4 sm:$0xff]   ;;  %v10447_v0 = vld [vmem:[#allocation5 + $0x1800] ss:$8 sps:$4 sm:$0xff]  }
 0x32a   :  { %7588 = vmatpush2.bf16.msra.mxu0 %v10386_v31  ;;  %v10455_v31 = vld [vmem:[#allocation5 + $0x18f4] ss:$8 sps:$4 sm:$0xff]  }
 0x32b   :  { %7629 = vmatpush2.bf16.msra.mxu1 %v10389_v3  ;;  %7589 = vmatprep.subr.bf16.mxu0 %v10394_v4  ;;  %v10458_v3 = vld [vmem:[#allocation5 + $0x19f4] ss:$8 sps:$4 sm:$0xff]   ;;  %v10453_v4 = vld [vmem:[#allocation5 + $0x18f0] ss:$8 sps:$4 sm:$0xff]  }
 0x32c   :  { %7630 = vmatprep.subr.bf16.mxu1 %v10397_v20  ;;  %v10456_v20 = vld [vmem:[#allocation5 + $0x19f0] ss:$8 sps:$4 sm:$0xff]  }
 0x32e   :  { %7590 = vmatpush2.bf16.msra.mxu0 %v10392_v18  ;;  %v10464_v18 = vld [vmem:[#allocation5 + $0x19e4] ss:$8 sps:$4 sm:$0xff]  }
 0x32f   :  { %7631 = vmatpush2.bf16.msra.mxu1 %v10395_v19  ;;  %7591 = vmatprep.subr.bf16.mxu0 %v10400_v38  ;;  %v10459_v19 = vld [vmem:[#allocation5 + $0x18e0] ss:$8 sps:$4 sm:$0xff]  }
 0x330   :  { %7632 = vmatprep.subr.bf16.mxu1 %v10403_v5  ;;  %v10462_v38 = vld [vmem:[#allocation5 + $0x19e0] ss:$8 sps:$4 sm:$0xff]   ;;  %v10467_v5 = vld [vmem:[#allocation5 + $0x18d4] ss:$8 sps:$4 sm:$0xff]  }
 0x332   :  { %7592 = vmatpush2.bf16.msra.mxu0 %v10398_v11  ;;  %v10470_v11 = vld [vmem:[#allocation5 + $0x19d4] ss:$8 sps:$4 sm:$0xff]  }
 0x333   :  { %7633 = vmatpush2.bf16.msra.mxu1 %v10401_v46  ;;  %7643 = vmatprep.subr.bf16.mxu0 %v10407_v12  ;;  %v10465_v46 = vld [vmem:[#allocation5 + $0x18d0] ss:$8 sps:$4 sm:$0xff]  }
 0x334   :  { %7684 = vmatprep.subr.bf16.mxu1 %v10410_v41  ;;  %v10468_v12 = vld [vmem:[#allocation5 + $0x19d0] ss:$8 sps:$4 sm:$0xff]   ;;  %v10473_v41 = vld [vmem:[#allocation5 + $0x18c4] ss:$8 sps:$4 sm:$0xff]  }
 0x335   :  { %v7349_v60 = vpop.f32.mrf.mxu0  ;;  %7594 = vmatmul.mubr.bf16.vlgmr.msra.gmra.mxu0 %v483_v32  ;;  %v10474_v32 = vld [vmem:[#allocation5 + $0x19c0] ss:$8 sps:$4 sm:$0xff]  }
 0x336   :  { %v7390_v27 = vpop.f32.mrf.mxu1  ;;  %7635 = vmatmul.mubr.bf16.vlgmr.msra.gmra.mxu1 %v485_v33  ;;  %v7350_v28 = vadd.f32 %v7349_v60, %v11169_v43  ;;  %7644 = vmatpush1.bf16.msra.mxu0 %v10405_v17  ;;  %v10417_v43 = vld [vmem:[#allocation5 + $0x1850] ss:$8 sps:$4 sm:$0xff]   ;;  %v10479_v33 = vld [vmem:[#allocation5 + $0x18b4] ss:$8 sps:$4 sm:$0xff]   ;;  %v10483_v60 = vld [vmem:[#allocation5 + $0x18a0] ss:$8 sps:$4 sm:$0xff]  }
 0x337   :  { %7685 = vmatpush1.bf16.msra.mxu1 %v10408_v54  ;;  %v7351_v48 = vpop.f32.mrf.mxu0  ;;  %7645 = vmatprep.subr.bf16.mxu0 %v10413_v15  ;;  %v10482_v17 = vld [vmem:[#allocation5 + $0x19b4] ss:$8 sps:$4 sm:$0xff]   ;;  %v10477_v54 = vld [vmem:[#allocation5 + $0x18b0] ss:$8 sps:$4 sm:$0xff]  }
 0x338   :  { %v7392_v50 = vpop.f32.mrf.mxu1  ;;  %7686 = vmatprep.subr.bf16.mxu1 %v10416_v22  ;;  %v11189_v30 = vadd.f32 %v7390_v27, %v7350_v28  ;;  %v7352_v34 = vadd.f32 %v7351_v48, %v11172_v47  ;;  %7675 = vmatprep.mubr.bf16.mxu0 %v488_v24  ;;  %v10426_v47 = vld [vmem:[#allocation5 + $0x1940] ss:$8 sps:$4 sm:$0xff]   ;;  %v10480_v15 = vld [vmem:[#allocation5 + $0x19b0] ss:$8 sps:$4 sm:$0xff]   ;;  %v10485_v22 = vld [vmem:[#allocation5 + $0x18a4] ss:$8 sps:$4 sm:$0xff]  }
 0x339   :  { %7716 = vmatprep.mubr.bf16.mxu1 %v490_v25  ;;  %v7353_v36 = vpop.f32.mrf.mxu0  ;;  %v10488_v24 = vld [vmem:[#allocation5 + $0x19a4] ss:$8 sps:$4 sm:$0xff]   ;;  %v10486_v27 = vld [vmem:[#allocation5 + $0x19a0] ss:$8 sps:$4 sm:$0xff]   ;;  %v10491_v28 = vld [vmem:[#allocation5 + $0x1894] ss:$8 sps:$4 sm:$0xff]  }
 0x33a   :  { %v7394_v37 = vpop.f32.mrf.mxu1  ;;  %v11192_v6 = vadd.f32 %v7392_v50, %v7352_v34  ;;  %7646 = vmatpush1.bf16.msra.mxu0 %v10411_v51  ;;  %v84_v25 = vld [vmem:[#allocation2 + $0x68] sm:$0xff]  ;;  %v10494_v51 = vld [vmem:[#allocation5 + $0x1994] ss:$8 sps:$4 sm:$0xff]   ;;  %v10489_v48 = vld [vmem:[#allocation5 + $0x1890] ss:$8 sps:$4 sm:$0xff]  }
 0x33b   :  { %7687 = vmatpush1.bf16.msra.mxu1 %v10414_v52  ;;  %v7354_v44 = vpop.f32.mrf.mxu0  ;;  %7647 = vmatprep.subr.bf16.mxu0 %v10419_v2  ;;  %v324_v52 = vcombine.high %v84_v25, %v84_v25  ;;  %v10492_v50 = vld [vmem:[#allocation5 + $0x1990] ss:$8 sps:$4 sm:$0xff]   ;;  %v10497_v2 = vld [vmem:[#allocation5 + $0x1884] ss:$8 sps:$4 sm:$0xff]   ;;  %v11195_v34 = vrot.slane %v84_v25, %v10972_v49  ;;  %v10495_v37 = vld [vmem:[#allocation5 + $0x1880] ss:$8 sps:$4 sm:$0xff]  }
 0x33c   :  { %v7395_v61 = vpop.f32.mrf.mxu1  ;;  %7688 = vmatprep.subr.bf16.mxu1 %v10422_v29  ;;  %v10500_v29 = vld [vmem:[#allocation5 + $0x1984] ss:$8 sps:$4 sm:$0xff]   ;;  %v10507_v44 = vld [vmem:[#allocation5 + $0x1b74] ss:$8 sps:$4 sm:$0xff]   ;;  %v10547_v25 = vld [vmem:[#allocation5 + $0x1b00] ss:$8 sps:$4 sm:$0xff]  }
 0x33d   :  { %v11198_v36 = vrot.slane %v324_v52, %v10972_v49  ;;  %v339_v61 = vcombine.high %v11195_v34, %v11195_v34  ;;  %v10558_v52 = vld [vmem:[#allocation5 + $0x1ae4] ss:$8 sps:$4 sm:$0xff]  }
 0x33e   :  { %7648 = vmatpush1.bf16.msra.mxu0 %v10417_v43  ;;  %v10498_v43 = vld [vmem:[#allocation5 + $0x1980] ss:$8 sps:$4 sm:$0xff]  }
 0x33f   :  { %7689 = vmatpush1.bf16.msra.mxu1 %v10420_v42  ;;  %7649 = vmatprep.subr.bf16.mxu0 %v10425_v62  ;;  %v10504_v42 = vld [vmem:[#allocation5 + $0x1a74] ss:$8 sps:$4 sm:$0xff]   ;;  %v340_v62 = vcombine.high %v11198_v36, %v11198_v36 }
 0x340   :  { %7690 = vmatprep.subr.bf16.mxu1 %v10428_v56  ;;  %v487_v56 = vpack.c.bf16 %v11175_v9, %v11175_v9  ;;  %v10508_v9 = vld [vmem:[#allocation5 + $0x1a60] ss:$8 sps:$4 sm:$0xff]  }
 0x342   :  { %7650 = vmatpush1.bf16.msra.mxu0 %v10423_v57  ;;  %v489_v57 = vpack.c.bf16 %v11178_v10, %v11178_v10  ;;  %v10511_v10 = vld [vmem:[#allocation5 + $0x1b60] ss:$8 sps:$4 sm:$0xff]  }
 0x343   :  { %7691 = vmatpush1.bf16.msra.mxu1 %v10426_v47  ;;  %7651 = vmatprep.subr.bf16.mxu0 %v10431_v40  ;;  %v10502_v47 = vld [vmem:[#allocation5 + $0x1a70] ss:$8 sps:$4 sm:$0xff]  }
 0x344   :  { %7692 = vmatprep.subr.bf16.mxu1 %v10434_v45  ;;  %v10505_v40 = vld [vmem:[#allocation5 + $0x1b70] ss:$8 sps:$4 sm:$0xff]   ;;  %v10510_v45 = vld [vmem:[#allocation5 + $0x1a64] ss:$8 sps:$4 sm:$0xff]  }
 0x346   :  { %7652 = vmatpush1.bf16.msra.mxu0 %v10429_v53  ;;  %v10513_v53 = vld [vmem:[#allocation5 + $0x1b64] ss:$8 sps:$4 sm:$0xff]  }
 0x347   :  { %7693 = vmatpush1.bf16.msra.mxu1 %v10432_v16  ;;  %7653 = vmatprep.subr.bf16.mxu0 %v10437_v55  ;;  %v492_v16 = vpack.c.bf16 %v339_v61, %v339_v61  ;;  %v494_v55 = vpack.c.bf16 %v340_v62, %v340_v62  ;;  %v10573_v61 = vld [vmem:[#allocation5 + $0x1bc4] ss:$8 sps:$4 sm:$0xff]   ;;  %v10568_v62 = vld [vmem:[#allocation5 + $0x1ac0] ss:$8 sps:$4 sm:$0xff]  }
 0x348   :  { %7694 = vmatprep.subr.bf16.mxu1 %v10440_v58 }
 0x34a   :  { %7654 = vmatpush1.bf16.msra.mxu0 %v10435_v59 }
 0x34b   :  { %7695 = vmatpush1.bf16.msra.mxu1 %v10438_v35  ;;  %7655 = vmatprep.subr.bf16.mxu0 %v10443_v7 }
 0x34c   :  { %7696 = vmatprep.subr.bf16.mxu1 %v10446_v8 }
 0x34e   :  { %7656 = vmatpush1.bf16.msra.mxu0 %v10441_v26  ;;  %v10516_v26 = vld [vmem:[#allocation5 + $0x1a54] ss:$8 sps:$4 sm:$0xff]  }
 0x34f   :  { %7697 = vmatpush1.bf16.msra.mxu1 %v10444_v23  ;;  %7657 = vmatprep.subr.bf16.mxu0 %v10449_v39  ;;  %v10519_v23 = vld [vmem:[#allocation5 + $0x1b54] ss:$8 sps:$4 sm:$0xff]  }
 0x350   :  { %7698 = vmatprep.subr.bf16.mxu1 %v10452_v63 }
 0x352   :  { %7658 = vmatpush1.bf16.msra.mxu0 %v10447_v0 }
 0x353   :  { %7699 = vmatpush1.bf16.msra.mxu1 %v10450_v1  ;;  %7659 = vmatprep.subr.bf16.mxu0 %v10455_v31 }
 0x354   :  { %7700 = vmatprep.subr.bf16.mxu1 %v10458_v3  ;;  %v10517_v3 = vld [vmem:[#allocation5 + $0x1b50] ss:$8 sps:$4 sm:$0xff]  }
 0x356   :  { %7660 = vmatpush2.bf16.msra.mxu0 %v10453_v4 }
 0x357   :  { %7701 = vmatpush2.bf16.msra.mxu1 %v10456_v20  ;;  %7661 = vmatprep.subr.bf16.mxu0 %v10461_v21  ;;  %v10522_v21 = vld [vmem:[#allocation5 + $0x1a44] ss:$8 sps:$4 sm:$0xff]  }
 0x358   :  { %7702 = vmatprep.subr.bf16.mxu1 %v10464_v18  ;;  %v10525_v18 = vld [vmem:[#allocation5 + $0x1b44] ss:$8 sps:$4 sm:$0xff]  }
 0x35a   :  { %7662 = vmatpush2.bf16.msra.mxu0 %v10459_v19  ;;  %v10520_v19 = vld [vmem:[#allocation5 + $0x1a40] ss:$8 sps:$4 sm:$0xff]  }
 0x35b   :  { %7703 = vmatpush2.bf16.msra.mxu1 %v10462_v38  ;;  %7663 = vmatprep.subr.bf16.mxu0 %v10467_v5  ;;  %v10528_v38 = vld [vmem:[#allocation5 + $0x1a34] ss:$8 sps:$4 sm:$0xff]  }
 0x35c   :  { %7704 = vmatprep.subr.bf16.mxu1 %v10470_v11  ;;  %v10531_v5 = vld [vmem:[#allocation5 + $0x1b34] ss:$8 sps:$4 sm:$0xff]   ;;  %v10526_v11 = vld [vmem:[#allocation5 + $0x1a30] ss:$8 sps:$4 sm:$0xff]  }
 0x35e   :  { %7664 = vmatpush2.bf16.msra.mxu0 %v10465_v46  ;;  %v10529_v46 = vld [vmem:[#allocation5 + $0x1b30] ss:$8 sps:$4 sm:$0xff]  }
 0x35f   :  { %7705 = vmatpush2.bf16.msra.mxu1 %v10468_v12  ;;  %7665 = vmatprep.subr.bf16.mxu0 %v10473_v41  ;;  %v10534_v12 = vld [vmem:[#allocation5 + $0x1a24] ss:$8 sps:$4 sm:$0xff]  }
 0x360   :  { %7706 = vmatprep.subr.bf16.mxu1 %v10476_v13  ;;  %v10537_v41 = vld [vmem:[#allocation5 + $0x1b24] ss:$8 sps:$4 sm:$0xff]   ;;  %v10532_v13 = vld [vmem:[#allocation5 + $0x1a20] ss:$8 sps:$4 sm:$0xff]  }
 0x362   :  { %7666 = vmatpush2.bf16.msra.mxu0 %v10471_v14  ;;  %v10535_v14 = vld [vmem:[#allocation5 + $0x1b20] ss:$8 sps:$4 sm:$0xff]  }
 0x363   :  { %7707 = vmatpush2.bf16.msra.mxu1 %v10474_v32  ;;  %7667 = vmatprep.subr.bf16.mxu0 %v10479_v33  ;;  %v10540_v32 = vld [vmem:[#allocation5 + $0x1a14] ss:$8 sps:$4 sm:$0xff]  }
 0x364   :  { %7708 = vmatprep.subr.bf16.mxu1 %v10482_v17  ;;  %v10543_v33 = vld [vmem:[#allocation5 + $0x1b14] ss:$8 sps:$4 sm:$0xff]   ;;  %v10538_v17 = vld [vmem:[#allocation5 + $0x1a10] ss:$8 sps:$4 sm:$0xff]  }
 0x366   :  { %7668 = vmatpush2.bf16.msra.mxu0 %v10477_v54  ;;  %v10541_v54 = vld [vmem:[#allocation5 + $0x1b10] ss:$8 sps:$4 sm:$0xff]  }
 0x367   :  { %7709 = vmatpush2.bf16.msra.mxu1 %v10480_v15  ;;  %7669 = vmatprep.subr.bf16.mxu0 %v10485_v22  ;;  %v10546_v15 = vld [vmem:[#allocation5 + $0x1a04] ss:$8 sps:$4 sm:$0xff]  }
 0x368   :  { %7710 = vmatprep.subr.bf16.mxu1 %v10488_v24  ;;  %v10549_v22 = vld [vmem:[#allocation5 + $0x1b04] ss:$8 sps:$4 sm:$0xff]   ;;  %v10544_v24 = vld [vmem:[#allocation5 + $0x1a00] ss:$8 sps:$4 sm:$0xff]  }
 0x36a   :  { %7670 = vmatpush2.bf16.msra.mxu0 %v10483_v60  ;;  %v10552_v60 = vld [vmem:[#allocation5 + $0x1af4] ss:$8 sps:$4 sm:$0xff]  }
 0x36b   :  { %7711 = vmatpush2.bf16.msra.mxu1 %v10486_v27  ;;  %7671 = vmatprep.subr.bf16.mxu0 %v10491_v28  ;;  %v10555_v27 = vld [vmem:[#allocation5 + $0x1bf4] ss:$8 sps:$4 sm:$0xff]   ;;  %v10550_v28 = vld [vmem:[#allocation5 + $0x1af0] ss:$8 sps:$4 sm:$0xff]  }
 0x36c   :  { %7712 = vmatprep.subr.bf16.mxu1 %v10494_v51  ;;  %v10553_v51 = vld [vmem:[#allocation5 + $0x1bf0] ss:$8 sps:$4 sm:$0xff]  }
 0x36e   :  { %7672 = vmatpush2.bf16.msra.mxu0 %v10489_v48  ;;  %v10561_v48 = vld [vmem:[#allocation5 + $0x1be4] ss:$8 sps:$4 sm:$0xff]  }
 0x36f   :  { %7713 = vmatpush2.bf16.msra.mxu1 %v10492_v50  ;;  %7673 = vmatprep.subr.bf16.mxu0 %v10497_v2  ;;  %v10556_v50 = vld [vmem:[#allocation5 + $0x1ae0] ss:$8 sps:$4 sm:$0xff]  }
 0x370   :  { %7714 = vmatprep.subr.bf16.mxu1 %v10500_v29  ;;  %v10559_v2 = vld [vmem:[#allocation5 + $0x1be0] ss:$8 sps:$4 sm:$0xff]   ;;  %v10564_v29 = vld [vmem:[#allocation5 + $0x1ad4] ss:$8 sps:$4 sm:$0xff]  }
 0x372   :  { %7674 = vmatpush2.bf16.msra.mxu0 %v10495_v37  ;;  %v10567_v37 = vld [vmem:[#allocation5 + $0x1bd4] ss:$8 sps:$4 sm:$0xff]  }
 0x373   :  { %7715 = vmatpush2.bf16.msra.mxu1 %v10498_v43  ;;  %7725 = vmatprep.subr.bf16.mxu0 %v10504_v42  ;;  %v10562_v43 = vld [vmem:[#allocation5 + $0x1ad0] ss:$8 sps:$4 sm:$0xff]  }
 0x374   :  { %7766 = vmatprep.subr.bf16.mxu1 %v10507_v44  ;;  %v10565_v42 = vld [vmem:[#allocation5 + $0x1bd0] ss:$8 sps:$4 sm:$0xff]   ;;  %v10570_v44 = vld [vmem:[#allocation5 + $0x1ac4] ss:$8 sps:$4 sm:$0xff]  }
 0x375   :  { %v7431_v58 = vpop.f32.mrf.mxu0  ;;  %7676 = vmatmul.mubr.bf16.vlgmr.msra.gmra.mxu0 %v487_v56  ;;  %v10571_v56 = vld [vmem:[#allocation5 + $0x1bc0] ss:$8 sps:$4 sm:$0xff]  }
 0x376   :  { %v7472_v59 = vpop.f32.mrf.mxu1  ;;  %7717 = vmatmul.mubr.bf16.vlgmr.msra.gmra.mxu1 %v489_v57  ;;  %v7432_v35 = vadd.f32 %v7431_v58, %v11189_v30  ;;  %7726 = vmatpush1.bf16.msra.mxu0 %v10502_v47  ;;  %v10514_v30 = vld [vmem:[#allocation5 + $0x1a50] ss:$8 sps:$4 sm:$0xff]   ;;  %v10576_v57 = vld [vmem:[#allocation5 + $0x1ab4] ss:$8 sps:$4 sm:$0xff]   ;;  %v10580_v58 = vld [vmem:[#allocation5 + $0x1aa0] ss:$8 sps:$4 sm:$0xff]  }
 0x377   :  { %7767 = vmatpush1.bf16.msra.mxu1 %v10505_v40  ;;  %v7433_v7 = vpop.f32.mrf.mxu0  ;;  %7727 = vmatprep.subr.bf16.mxu0 %v10510_v45  ;;  %v10579_v47 = vld [vmem:[#allocation5 + $0x1bb4] ss:$8 sps:$4 sm:$0xff]   ;;  %v10574_v40 = vld [vmem:[#allocation5 + $0x1ab0] ss:$8 sps:$4 sm:$0xff]  }
 0x378   :  { %v7474_v8 = vpop.f32.mrf.mxu1  ;;  %7768 = vmatprep.subr.bf16.mxu1 %v10513_v53  ;;  %v11209_v39 = vadd.f32 %v7472_v59, %v7432_v35  ;;  %v7434_v63 = vadd.f32 %v7433_v7, %v11192_v6  ;;  %7757 = vmatprep.mubr.bf16.mxu0 %v492_v16  ;;  %v10523_v6 = vld [vmem:[#allocation5 + $0x1b40] ss:$8 sps:$4 sm:$0xff]   ;;  %v10577_v45 = vld [vmem:[#allocation5 + $0x1bb0] ss:$8 sps:$4 sm:$0xff]   ;;  %v10582_v53 = vld [vmem:[#allocation5 + $0x1aa4] ss:$8 sps:$4 sm:$0xff]  }
 0x379   :  { %7798 = vmatprep.mubr.bf16.mxu1 %v494_v55  ;;  %v7435_v0 = vpop.f32.mrf.mxu0  ;;  %v10585_v16 = vld [vmem:[#allocation5 + $0x1ba4] ss:$8 sps:$4 sm:$0xff]   ;;  %v85_v55 = vld [vmem:[#allocation2 + $0x70] sm:$0xff]  ;;  %v10583_v59 = vld [vmem:[#allocation5 + $0x1ba0] ss:$8 sps:$4 sm:$0xff]  }
 0x37a   :  { %v7476_v1 = vpop.f32.mrf.mxu1  ;;  %v11212_v31 = vadd.f32 %v7474_v8, %v7434_v63  ;;  %7728 = vmatpush1.bf16.msra.mxu0 %v10508_v9  ;;  %v10588_v35 = vld [vmem:[#allocation5 + $0x1a94] ss:$8 sps:$4 sm:$0xff]   ;;  %v10586_v7 = vld [vmem:[#allocation5 + $0x1a90] ss:$8 sps:$4 sm:$0xff]   ;;  %v11215_v63 = vrot.slane %v85_v55, %v10972_v49 }
 0x37b   :  { %7769 = vmatpush1.bf16.msra.mxu1 %v10511_v10  ;;  %v7436_v4 = vpop.f32.mrf.mxu0  ;;  %7729 = vmatprep.subr.bf16.mxu0 %v10516_v26  ;;  %v10591_v9 = vld [vmem:[#allocation5 + $0x1b94] ss:$8 sps:$4 sm:$0xff]   ;;  %v341_v10 = vcombine.high %v85_v55, %v85_v55  ;;  %v10589_v8 = vld [vmem:[#allocation5 + $0x1b90] ss:$8 sps:$4 sm:$0xff]   ;;  %v10594_v26 = vld [vmem:[#allocation5 + $0x1a84] ss:$8 sps:$4 sm:$0xff]  }
 0x37c   :  { %v7477_v20 = vpop.f32.mrf.mxu1  ;;  %7770 = vmatprep.subr.bf16.mxu1 %v10519_v23  ;;  %v10597_v23 = vld [vmem:[#allocation5 + $0x1b84] ss:$8 sps:$4 sm:$0xff]   ;;  %v10592_v1 = vld [vmem:[#allocation5 + $0x1a80] ss:$8 sps:$4 sm:$0xff]   ;;  %v10604_v4 = vld [vmem:[#allocation5 + $0x1d74] ss:$8 sps:$4 sm:$0xff]  }
 0x37d   :  { %v11218_v0 = vrot.slane %v341_v10, %v10972_v49  ;;  %v356_v20 = vcombine.high %v11215_v63, %v11215_v63  ;;  %v10644_v55 = vld [vmem:[#allocation5 + $0x1d00] ss:$8 sps:$4 sm:$0xff]   ;;  %v10655_v10 = vld [vmem:[#allocation5 + $0x1ce4] ss:$8 sps:$4 sm:$0xff]  }
 0x37e   :  { %7730 = vmatpush1.bf16.msra.mxu0 %v10514_v30  ;;  %v10595_v30 = vld [vmem:[#allocation5 + $0x1b80] ss:$8 sps:$4 sm:$0xff]  }
 0x37f   :  { %7771 = vmatpush1.bf16.msra.mxu1 %v10517_v3  ;;  %7731 = vmatprep.subr.bf16.mxu0 %v10522_v21  ;;  %v10601_v3 = vld [vmem:[#allocation5 + $0x1c74] ss:$8 sps:$4 sm:$0xff]   ;;  %v357_v21 = vcombine.high %v11218_v0, %v11218_v0 }
 0x380   :  { %7772 = vmatprep.subr.bf16.mxu1 %v10525_v18  ;;  %v491_v18 = vpack.c.bf16 %v11195_v34, %v11195_v34  ;;  %v10605_v34 = vld [vmem:[#allocation5 + $0x1c60] ss:$8 sps:$4 sm:$0xff]  }
 0x382   :  { %7732 = vmatpush1.bf16.msra.mxu0 %v10520_v19  ;;  %v493_v19 = vpack.c.bf16 %v11198_v36, %v11198_v36  ;;  %v10608_v36 = vld [vmem:[#allocation5 + $0x1d60] ss:$8 sps:$4 sm:$0xff]  }
 0x383   :  { %7773 = vmatpush1.bf16.msra.mxu1 %v10523_v6  ;;  %7733 = vmatprep.subr.bf16.mxu0 %v10528_v38  ;;  %v10599_v6 = vld [vmem:[#allocation5 + $0x1c70] ss:$8 sps:$4 sm:$0xff]  }
 0x384   :  { %7774 = vmatprep.subr.bf16.mxu1 %v10531_v5  ;;  %v10602_v38 = vld [vmem:[#allocation5 + $0x1d70] ss:$8 sps:$4 sm:$0xff]   ;;  %v10607_v5 = vld [vmem:[#allocation5 + $0x1c64] ss:$8 sps:$4 sm:$0xff]  }
 0x386   :  { %7734 = vmatpush1.bf16.msra.mxu0 %v10526_v11  ;;  %v10610_v11 = vld [vmem:[#allocation5 + $0x1d64] ss:$8 sps:$4 sm:$0xff]  }
 0x387   :  { %7775 = vmatpush1.bf16.msra.mxu1 %v10529_v46  ;;  %7735 = vmatprep.subr.bf16.mxu0 %v10534_v12  ;;  %v496_v46 = vpack.c.bf16 %v356_v20, %v356_v20  ;;  %v498_v12 = vpack.c.bf16 %v357_v21, %v357_v21  ;;  %v10670_v20 = vld [vmem:[#allocation5 + $0x1dc4] ss:$8 sps:$4 sm:$0xff]   ;;  %v10665_v21 = vld [vmem:[#allocation5 + $0x1cc0] ss:$8 sps:$4 sm:$0xff]  }
 0x388   :  { %7776 = vmatprep.subr.bf16.mxu1 %v10537_v41 }
 0x38a   :  { %7736 = vmatpush1.bf16.msra.mxu0 %v10532_v13 }
 0x38b   :  { %7777 = vmatpush1.bf16.msra.mxu1 %v10535_v14  ;;  %7737 = vmatprep.subr.bf16.mxu0 %v10540_v32 }
 0x38c   :  { %7778 = vmatprep.subr.bf16.mxu1 %v10543_v33 }
 0x38e   :  { %7738 = vmatpush1.bf16.msra.mxu0 %v10538_v17  ;;  %v10613_v17 = vld [vmem:[#allocation5 + $0x1c54] ss:$8 sps:$4 sm:$0xff]  }
 0x38f   :  { %7779 = vmatpush1.bf16.msra.mxu1 %v10541_v54  ;;  %7739 = vmatprep.subr.bf16.mxu0 %v10546_v15  ;;  %v10616_v54 = vld [vmem:[#allocation5 + $0x1d54] ss:$8 sps:$4 sm:$0xff]  }
 0x390   :  { %7780 = vmatprep.subr.bf16.mxu1 %v10549_v22 }
 0x392   :  { %7740 = vmatpush1.bf16.msra.mxu0 %v10544_v24 }
 0x393   :  { %7781 = vmatpush1.bf16.msra.mxu1 %v10547_v25  ;;  %7741 = vmatprep.subr.bf16.mxu0 %v10552_v60 }
 0x394   :  { %7782 = vmatprep.subr.bf16.mxu1 %v10555_v27  ;;  %v10614_v27 = vld [vmem:[#allocation5 + $0x1d50] ss:$8 sps:$4 sm:$0xff]  }
 0x396   :  { %7742 = vmatpush2.bf16.msra.mxu0 %v10550_v28 }
 0x397   :  { %7783 = vmatpush2.bf16.msra.mxu1 %v10553_v51  ;;  %7743 = vmatprep.subr.bf16.mxu0 %v10558_v52  ;;  %v10619_v52 = vld [vmem:[#allocation5 + $0x1c44] ss:$8 sps:$4 sm:$0xff]  }
 0x398   :  { %7784 = vmatprep.subr.bf16.mxu1 %v10561_v48  ;;  %v10622_v48 = vld [vmem:[#allocation5 + $0x1d44] ss:$8 sps:$4 sm:$0xff]  }
 0x39a   :  { %7744 = vmatpush2.bf16.msra.mxu0 %v10556_v50  ;;  %v10617_v50 = vld [vmem:[#allocation5 + $0x1c40] ss:$8 sps:$4 sm:$0xff]  }
 0x39b   :  { %7785 = vmatpush2.bf16.msra.mxu1 %v10559_v2  ;;  %7745 = vmatprep.subr.bf16.mxu0 %v10564_v29  ;;  %v10625_v2 = vld [vmem:[#allocation5 + $0x1c34] ss:$8 sps:$4 sm:$0xff]  }
 0x39c   :  { %7786 = vmatprep.subr.bf16.mxu1 %v10567_v37  ;;  %v10628_v29 = vld [vmem:[#allocation5 + $0x1d34] ss:$8 sps:$4 sm:$0xff]   ;;  %v10623_v37 = vld [vmem:[#allocation5 + $0x1c30] ss:$8 sps:$4 sm:$0xff]  }
 0x39e   :  { %7746 = vmatpush2.bf16.msra.mxu0 %v10562_v43  ;;  %v10626_v43 = vld [vmem:[#allocation5 + $0x1d30] ss:$8 sps:$4 sm:$0xff]  }
 0x39f   :  { %7787 = vmatpush2.bf16.msra.mxu1 %v10565_v42  ;;  %7747 = vmatprep.subr.bf16.mxu0 %v10570_v44  ;;  %v10631_v42 = vld [vmem:[#allocation5 + $0x1c24] ss:$8 sps:$4 sm:$0xff]  }
 0x3a0   :  { %7788 = vmatprep.subr.bf16.mxu1 %v10573_v61  ;;  %v10634_v44 = vld [vmem:[#allocation5 + $0x1d24] ss:$8 sps:$4 sm:$0xff]   ;;  %v10629_v61 = vld [vmem:[#allocation5 + $0x1c20] ss:$8 sps:$4 sm:$0xff]  }
 0x3a2   :  { %7748 = vmatpush2.bf16.msra.mxu0 %v10568_v62  ;;  %v10632_v62 = vld [vmem:[#allocation5 + $0x1d20] ss:$8 sps:$4 sm:$0xff]  }
 0x3a3   :  { %7789 = vmatpush2.bf16.msra.mxu1 %v10571_v56  ;;  %7749 = vmatprep.subr.bf16.mxu0 %v10576_v57  ;;  %v10637_v56 = vld [vmem:[#allocation5 + $0x1c14] ss:$8 sps:$4 sm:$0xff]  }
 0x3a4   :  { %7790 = vmatprep.subr.bf16.mxu1 %v10579_v47  ;;  %v10640_v57 = vld [vmem:[#allocation5 + $0x1d14] ss:$8 sps:$4 sm:$0xff]   ;;  %v10635_v47 = vld [vmem:[#allocation5 + $0x1c10] ss:$8 sps:$4 sm:$0xff]  }
 0x3a6   :  { %7750 = vmatpush2.bf16.msra.mxu0 %v10574_v40  ;;  %v10638_v40 = vld [vmem:[#allocation5 + $0x1d10] ss:$8 sps:$4 sm:$0xff]  }
 0x3a7   :  { %7791 = vmatpush2.bf16.msra.mxu1 %v10577_v45  ;;  %7751 = vmatprep.subr.bf16.mxu0 %v10582_v53  ;;  %v10643_v45 = vld [vmem:[#allocation5 + $0x1c04] ss:$8 sps:$4 sm:$0xff]  }
 0x3a8   :  { %7792 = vmatprep.subr.bf16.mxu1 %v10585_v16  ;;  %v10646_v53 = vld [vmem:[#allocation5 + $0x1d04] ss:$8 sps:$4 sm:$0xff]   ;;  %v10641_v16 = vld [vmem:[#allocation5 + $0x1c00] ss:$8 sps:$4 sm:$0xff]  }
 0x3aa   :  { %7752 = vmatpush2.bf16.msra.mxu0 %v10580_v58  ;;  %v10649_v58 = vld [vmem:[#allocation5 + $0x1cf4] ss:$8 sps:$4 sm:$0xff]  }
 0x3ab   :  { %7793 = vmatpush2.bf16.msra.mxu1 %v10583_v59  ;;  %7753 = vmatprep.subr.bf16.mxu0 %v10588_v35  ;;  %v10652_v59 = vld [vmem:[#allocation5 + $0x1df4] ss:$8 sps:$4 sm:$0xff]   ;;  %v10647_v35 = vld [vmem:[#allocation5 + $0x1cf0] ss:$8 sps:$4 sm:$0xff]  }
 0x3ac   :  { %7794 = vmatprep.subr.bf16.mxu1 %v10591_v9  ;;  %v10650_v9 = vld [vmem:[#allocation5 + $0x1df0] ss:$8 sps:$4 sm:$0xff]  }
 0x3ae   :  { %7754 = vmatpush2.bf16.msra.mxu0 %v10586_v7  ;;  %v10658_v7 = vld [vmem:[#allocation5 + $0x1de4] ss:$8 sps:$4 sm:$0xff]  }
 0x3af   :  { %7795 = vmatpush2.bf16.msra.mxu1 %v10589_v8  ;;  %7755 = vmatprep.subr.bf16.mxu0 %v10594_v26  ;;  %v10653_v8 = vld [vmem:[#allocation5 + $0x1ce0] ss:$8 sps:$4 sm:$0xff]  }
 0x3b0   :  { %7796 = vmatprep.subr.bf16.mxu1 %v10597_v23  ;;  %v10656_v26 = vld [vmem:[#allocation5 + $0x1de0] ss:$8 sps:$4 sm:$0xff]   ;;  %v10661_v23 = vld [vmem:[#allocation5 + $0x1cd4] ss:$8 sps:$4 sm:$0xff]  }
 0x3b2   :  { %7756 = vmatpush2.bf16.msra.mxu0 %v10592_v1  ;;  %v10664_v1 = vld [vmem:[#allocation5 + $0x1dd4] ss:$8 sps:$4 sm:$0xff]  }
 0x3b3   :  { %7797 = vmatpush2.bf16.msra.mxu1 %v10595_v30  ;;  %7807 = vmatprep.subr.bf16.mxu0 %v10601_v3  ;;  %v10659_v30 = vld [vmem:[#allocation5 + $0x1cd0] ss:$8 sps:$4 sm:$0xff]  }
 0x3b4   :  { %7848 = vmatprep.subr.bf16.mxu1 %v10604_v4  ;;  %v10662_v3 = vld [vmem:[#allocation5 + $0x1dd0] ss:$8 sps:$4 sm:$0xff]   ;;  %v10667_v4 = vld [vmem:[#allocation5 + $0x1cc4] ss:$8 sps:$4 sm:$0xff]  }
 0x3b5   :  { %v7513_v41 = vpop.f32.mrf.mxu0  ;;  %7758 = vmatmul.mubr.bf16.vlgmr.msra.gmra.mxu0 %v491_v18  ;;  %v10668_v18 = vld [vmem:[#allocation5 + $0x1dc0] ss:$8 sps:$4 sm:$0xff]  }
 0x3b6   :  { %v7554_v13 = vpop.f32.mrf.mxu1  ;;  %7799 = vmatmul.mubr.bf16.vlgmr.msra.gmra.mxu1 %v493_v19  ;;  %v7514_v14 = vadd.f32 %v7513_v41, %v11209_v39  ;;  %7808 = vmatpush1.bf16.msra.mxu0 %v10599_v6  ;;  %v10611_v39 = vld [vmem:[#allocation5 + $0x1c50] ss:$8 sps:$4 sm:$0xff]   ;;  %v10673_v19 = vld [vmem:[#allocation5 + $0x1cb4] ss:$8 sps:$4 sm:$0xff]   ;;  %v10677_v41 = vld [vmem:[#allocation5 + $0x1ca0] ss:$8 sps:$4 sm:$0xff]  }
 0x3b7   :  { %7849 = vmatpush1.bf16.msra.mxu1 %v10602_v38  ;;  %v7515_v32 = vpop.f32.mrf.mxu0  ;;  %7809 = vmatprep.subr.bf16.mxu0 %v10607_v5  ;;  %v10676_v6 = vld [vmem:[#allocation5 + $0x1db4] ss:$8 sps:$4 sm:$0xff]   ;;  %v10671_v38 = vld [vmem:[#allocation5 + $0x1cb0] ss:$8 sps:$4 sm:$0xff]  }
 0x3b8   :  { %v7556_v33 = vpop.f32.mrf.mxu1  ;;  %7850 = vmatprep.subr.bf16.mxu1 %v10610_v11  ;;  %v11229_v15 = vadd.f32 %v7554_v13, %v7514_v14  ;;  %v7516_v22 = vadd.f32 %v7515_v32, %v11212_v31  ;;  %7839 = vmatprep.mubr.bf16.mxu0 %v496_v46  ;;  %v10620_v31 = vld [vmem:[#allocation5 + $0x1d40] ss:$8 sps:$4 sm:$0xff]   ;;  %v10674_v5 = vld [vmem:[#allocation5 + $0x1db0] ss:$8 sps:$4 sm:$0xff]   ;;  %v10679_v11 = vld [vmem:[#allocation5 + $0x1ca4] ss:$8 sps:$4 sm:$0xff]  }
 0x3b9   :  { %7880 = vmatprep.mubr.bf16.mxu1 %v498_v12  ;;  %v7517_v24 = vpop.f32.mrf.mxu0  ;;  %v10682_v46 = vld [vmem:[#allocation5 + $0x1da4] ss:$8 sps:$4 sm:$0xff]   ;;  %v86_v12 = vld [vmem:[#allocation2 + $0x78] sm:$0xff]  ;;  %v10680_v13 = vld [vmem:[#allocation5 + $0x1da0] ss:$8 sps:$4 sm:$0xff]  }
 0x3ba   :  { %v7558_v25 = vpop.f32.mrf.mxu1  ;;  %v11232_v60 = vadd.f32 %v7556_v33, %v7516_v22  ;;  %7810 = vmatpush1.bf16.msra.mxu0 %v10605_v34  ;;  %v10685_v14 = vld [vmem:[#allocation5 + $0x1c94] ss:$8 sps:$4 sm:$0xff]   ;;  %v10683_v32 = vld [vmem:[#allocation5 + $0x1c90] ss:$8 sps:$4 sm:$0xff]   ;;  %v11235_v22 = vrot.slane %v86_v12, %v10972_v49 }
 0x3bb   :  { %7851 = vmatpush1.bf16.msra.mxu1 %v10608_v36  ;;  %v7518_v28 = vpop.f32.mrf.mxu0  ;;  %7811 = vmatprep.subr.bf16.mxu0 %v10613_v17  ;;  %v10688_v34 = vld [vmem:[#allocation5 + $0x1d94] ss:$8 sps:$4 sm:$0xff]   ;;  %v358_v36 = vcombine.high %v86_v12, %v86_v12  ;;  %v10686_v33 = vld [vmem:[#allocation5 + $0x1d90] ss:$8 sps:$4 sm:$0xff]   ;;  %v10691_v17 = vld [vmem:[#allocation5 + $0x1c84] ss:$8 sps:$4 sm:$0xff]  }
 0x3bc   :  { %v7559_v51 = vpop.f32.mrf.mxu1  ;;  %7852 = vmatprep.subr.bf16.mxu1 %v10616_v54  ;;  %v10694_v54 = vld [vmem:[#allocation5 + $0x1d84] ss:$8 sps:$4 sm:$0xff]   ;;  %v10689_v25 = vld [vmem:[#allocation5 + $0x1c80] ss:$8 sps:$4 sm:$0xff]   ;;  %v10701_v28 = vld [vmem:[#allocation5 + $0x1f74] ss:$8 sps:$4 sm:$0xff]  }
 0x3bd   :  { %v11238_v24 = vrot.slane %v358_v36, %v10972_v49  ;;  %v373_v51 = vcombine.high %v11235_v22, %v11235_v22  ;;  %v497_v49 = vpack.c.bf16 %v11218_v0, %v11218_v0  ;;  %v10705_v0 = vld [vmem:[#allocation5 + $0x1f60] ss:$8 sps:$4 sm:$0xff]   ;;  %v10746_v12 = vld [vmem:[#allocation5 + $0x1ef4] ss:$8 sps:$4 sm:$0xff]   ;;  %v10755_v36 = vld [vmem:[#allocation5 + $0x1fe4] ss:$8 sps:$4 sm:$0xff]  }
 0x3be   :  { %7812 = vmatpush1.bf16.msra.mxu0 %v10611_v39  ;;  %v10692_v39 = vld [vmem:[#allocation5 + $0x1d80] ss:$8 sps:$4 sm:$0xff]  }
 0x3bf   :  { %7853 = vmatpush1.bf16.msra.mxu1 %v10614_v27  ;;  %7813 = vmatprep.subr.bf16.mxu0 %v10619_v52  ;;  %v10698_v27 = vld [vmem:[#allocation5 + $0x1e74] ss:$8 sps:$4 sm:$0xff]   ;;  %v374_v52 = vcombine.high %v11238_v24, %v11238_v24 }
 0x3c0   :  { %7854 = vmatprep.subr.bf16.mxu1 %v10622_v48  ;;  %v495_v48 = vpack.c.bf16 %v11215_v63, %v11215_v63  ;;  %v10702_v63 = vld [vmem:[#allocation5 + $0x1e60] ss:$8 sps:$4 sm:$0xff]  }
 0x3c2   :  { %7814 = vmatpush1.bf16.msra.mxu0 %v10617_v50  ;;  %v10696_v50 = vld [vmem:[#allocation5 + $0x1e70] ss:$8 sps:$4 sm:$0xff]  }
 0x3c3   :  { %7855 = vmatpush1.bf16.msra.mxu1 %v10620_v31  ;;  %7815 = vmatprep.subr.bf16.mxu0 %v10625_v2  ;;  %v10699_v31 = vld [vmem:[#allocation5 + $0x1f70] ss:$8 sps:$4 sm:$0xff]   ;;  %v10704_v2 = vld [vmem:[#allocation5 + $0x1e64] ss:$8 sps:$4 sm:$0xff]  }
 0x3c4   :  { %7856 = vmatprep.subr.bf16.mxu1 %v10628_v29  ;;  %v10707_v29 = vld [vmem:[#allocation5 + $0x1f64] ss:$8 sps:$4 sm:$0xff]  }
 0x3c6   :  { %7816 = vmatpush1.bf16.msra.mxu0 %v10623_v37  ;;  %v500_v37 = vpack.c.bf16 %v373_v51, %v373_v51  ;;  %v10762_v51 = vld [vmem:[#allocation5 + $0x1ec0] ss:$8 sps:$4 sm:$0xff]  }
 0x3c7   :  { %7857 = vmatpush1.bf16.msra.mxu1 %v10626_v43  ;;  %7817 = vmatprep.subr.bf16.mxu0 %v10631_v42  ;;  %v502_v43 = vpack.c.bf16 %v374_v52, %v374_v52  ;;  %v10765_v52 = vld [vmem:[#allocation5 + $0x1fc0] ss:$8 sps:$4 sm:$0xff]  }
 0x3c8   :  { %7858 = vmatprep.subr.bf16.mxu1 %v10634_v44 }
 0x3ca   :  { %7818 = vmatpush1.bf16.msra.mxu0 %v10629_v61 }
 0x3cb   :  { %7859 = vmatpush1.bf16.msra.mxu1 %v10632_v62  ;;  %7819 = vmatprep.subr.bf16.mxu0 %v10637_v56 }
 0x3cc   :  { %7860 = vmatprep.subr.bf16.mxu1 %v10640_v57  ;;  %v10710_v57 = vld [vmem:[#allocation5 + $0x1e54] ss:$8 sps:$4 sm:$0xff]  }
 0x3ce   :  { %7820 = vmatpush1.bf16.msra.mxu0 %v10635_v47  ;;  %v10713_v47 = vld [vmem:[#allocation5 + $0x1f54] ss:$8 sps:$4 sm:$0xff]  }
 0x3cf   :  { %7861 = vmatpush1.bf16.msra.mxu1 %v10638_v40  ;;  %7821 = vmatprep.subr.bf16.mxu0 %v10643_v45 }
 0x3d0   :  { %7862 = vmatprep.subr.bf16.mxu1 %v10646_v53 }
 0x3d2   :  { %7822 = vmatpush1.bf16.msra.mxu0 %v10641_v16 }
 0x3d3   :  { %7863 = vmatpush1.bf16.msra.mxu1 %v10644_v55  ;;  %7823 = vmatprep.subr.bf16.mxu0 %v10649_v58  ;;  %v10711_v58 = vld [vmem:[#allocation5 + $0x1f50] ss:$8 sps:$4 sm:$0xff]  }
 0x3d4   :  { %7864 = vmatprep.subr.bf16.mxu1 %v10652_v59 }
 0x3d6   :  { %7824 = vmatpush2.bf16.msra.mxu0 %v10647_v35 }
 0x3d7   :  { %7865 = vmatpush2.bf16.msra.mxu1 %v10650_v9  ;;  %7825 = vmatprep.subr.bf16.mxu0 %v10655_v10  ;;  %v10716_v9 = vld [vmem:[#allocation5 + $0x1e44] ss:$8 sps:$4 sm:$0xff]  }
 0x3d8   :  { %7866 = vmatprep.subr.bf16.mxu1 %v10658_v7  ;;  %v10719_v10 = vld [vmem:[#allocation5 + $0x1f44] ss:$8 sps:$4 sm:$0xff]   ;;  %v10714_v7 = vld [vmem:[#allocation5 + $0x1e40] ss:$8 sps:$4 sm:$0xff]  }
 0x3da   :  { %7826 = vmatpush2.bf16.msra.mxu0 %v10653_v8  ;;  %v10722_v8 = vld [vmem:[#allocation5 + $0x1e34] ss:$8 sps:$4 sm:$0xff]  }
 0x3db   :  { %7867 = vmatpush2.bf16.msra.mxu1 %v10656_v26  ;;  %7827 = vmatprep.subr.bf16.mxu0 %v10661_v23  ;;  %v10725_v26 = vld [vmem:[#allocation5 + $0x1f34] ss:$8 sps:$4 sm:$0xff]   ;;  %v10720_v23 = vld [vmem:[#allocation5 + $0x1e30] ss:$8 sps:$4 sm:$0xff]  }
 0x3dc   :  { %7868 = vmatprep.subr.bf16.mxu1 %v10664_v1  ;;  %v10723_v1 = vld [vmem:[#allocation5 + $0x1f30] ss:$8 sps:$4 sm:$0xff]  }
 0x3de   :  { %7828 = vmatpush2.bf16.msra.mxu0 %v10659_v30  ;;  %v10728_v30 = vld [vmem:[#allocation5 + $0x1e24] ss:$8 sps:$4 sm:$0xff]  }
 0x3df   :  { %7869 = vmatpush2.bf16.msra.mxu1 %v10662_v3  ;;  %7829 = vmatprep.subr.bf16.mxu0 %v10667_v4  ;;  %v10731_v3 = vld [vmem:[#allocation5 + $0x1f24] ss:$8 sps:$4 sm:$0xff]   ;;  %v10726_v4 = vld [vmem:[#allocation5 + $0x1e20] ss:$8 sps:$4 sm:$0xff]  }
 0x3e0   :  { %7870 = vmatprep.subr.bf16.mxu1 %v10670_v20  ;;  %v10729_v20 = vld [vmem:[#allocation5 + $0x1f20] ss:$8 sps:$4 sm:$0xff]  }
 0x3e2   :  { %7830 = vmatpush2.bf16.msra.mxu0 %v10665_v21  ;;  %v10734_v21 = vld [vmem:[#allocation5 + $0x1e14] ss:$8 sps:$4 sm:$0xff]  }
 0x3e3   :  { %7871 = vmatpush2.bf16.msra.mxu1 %v10668_v18  ;;  %7831 = vmatprep.subr.bf16.mxu0 %v10673_v19  ;;  %v10737_v18 = vld [vmem:[#allocation5 + $0x1f14] ss:$8 sps:$4 sm:$0xff]   ;;  %v10732_v19 = vld [vmem:[#allocation5 + $0x1e10] ss:$8 sps:$4 sm:$0xff]  }
 0x3e4   :  { %7872 = vmatprep.subr.bf16.mxu1 %v10676_v6  ;;  %v10735_v6 = vld [vmem:[#allocation5 + $0x1f10] ss:$8 sps:$4 sm:$0xff]  }
 0x3e6   :  { %7832 = vmatpush2.bf16.msra.mxu0 %v10671_v38  ;;  %v10740_v38 = vld [vmem:[#allocation5 + $0x1e04] ss:$8 sps:$4 sm:$0xff]  }
 0x3e7   :  { %7873 = vmatpush2.bf16.msra.mxu1 %v10674_v5  ;;  %7833 = vmatprep.subr.bf16.mxu0 %v10679_v11  ;;  %v10743_v5 = vld [vmem:[#allocation5 + $0x1f04] ss:$8 sps:$4 sm:$0xff]   ;;  %v10738_v11 = vld [vmem:[#allocation5 + $0x1e00] ss:$8 sps:$4 sm:$0xff]  }
 0x3e8   :  { %7874 = vmatprep.subr.bf16.mxu1 %v10682_v46  ;;  %v10741_v46 = vld [vmem:[#allocation5 + $0x1f00] ss:$8 sps:$4 sm:$0xff]  }
 0x3ea   :  { %7834 = vmatpush2.bf16.msra.mxu0 %v10677_v41  ;;  %v10749_v41 = vld [vmem:[#allocation5 + $0x1ff4] ss:$8 sps:$4 sm:$0xff]  }
 0x3eb   :  { %7875 = vmatpush2.bf16.msra.mxu1 %v10680_v13  ;;  %7835 = vmatprep.subr.bf16.mxu0 %v10685_v14  ;;  %v10744_v13 = vld [vmem:[#allocation5 + $0x1ef0] ss:$8 sps:$4 sm:$0xff]  }
 0x3ec   :  { %7876 = vmatprep.subr.bf16.mxu1 %v10688_v34  ;;  %v10747_v14 = vld [vmem:[#allocation5 + $0x1ff0] ss:$8 sps:$4 sm:$0xff]   ;;  %v10752_v34 = vld [vmem:[#allocation5 + $0x1ee4] ss:$8 sps:$4 sm:$0xff]  }
 0x3ee   :  { %7836 = vmatpush2.bf16.msra.mxu0 %v10683_v32  ;;  %v10750_v32 = vld [vmem:[#allocation5 + $0x1ee0] ss:$8 sps:$4 sm:$0xff]  }
 0x3ef   :  { %7877 = vmatpush2.bf16.msra.mxu1 %v10686_v33  ;;  %7837 = vmatprep.subr.bf16.mxu0 %v10691_v17  ;;  %v10753_v33 = vld [vmem:[#allocation5 + $0x1fe0] ss:$8 sps:$4 sm:$0xff]   ;;  %v10758_v17 = vld [vmem:[#allocation5 + $0x1ed4] ss:$8 sps:$4 sm:$0xff]  }
 0x3f0   :  { %7878 = vmatprep.subr.bf16.mxu1 %v10694_v54  ;;  %v10761_v54 = vld [vmem:[#allocation5 + $0x1fd4] ss:$8 sps:$4 sm:$0xff]  }
 0x3f2   :  { %7838 = vmatpush2.bf16.msra.mxu0 %v10689_v25  ;;  %v10756_v25 = vld [vmem:[#allocation5 + $0x1ed0] ss:$8 sps:$4 sm:$0xff]  }
 0x3f3   :  { %7879 = vmatpush2.bf16.msra.mxu1 %v10692_v39  ;;  %7889 = vmatprep.subr.bf16.mxu0 %v10698_v27  ;;  %v10759_v39 = vld [vmem:[#allocation5 + $0x1fd0] ss:$8 sps:$4 sm:$0xff]   ;;  %v10764_v27 = vld [vmem:[#allocation5 + $0x1ec4] ss:$8 sps:$4 sm:$0xff]  }
 0x3f4   :  { %7930 = vmatprep.subr.bf16.mxu1 %v10701_v28  ;;  %v10767_v28 = vld [vmem:[#allocation5 + $0x1fc4] ss:$8 sps:$4 sm:$0xff]  }
 0x3f5   :  { %v7595_v42 = vpop.f32.mrf.mxu0  ;;  %7840 = vmatmul.mubr.bf16.vlgmr.msra.gmra.mxu0 %v495_v48  ;;  %v10770_v48 = vld [vmem:[#allocation5 + $0x1eb4] ss:$8 sps:$4 sm:$0xff]  }
 0x3f6   :  { %v7636_v44 = vpop.f32.mrf.mxu1  ;;  %7881 = vmatmul.mubr.bf16.vlgmr.msra.gmra.mxu1 %v497_v49  ;;  %v7596_v61 = vadd.f32 %v7595_v42, %v11229_v15  ;;  %7890 = vmatpush1.bf16.msra.mxu0 %v10696_v50  ;;  %v10708_v15 = vld [vmem:[#allocation5 + $0x1e50] ss:$8 sps:$4 sm:$0xff]   ;;  %v10773_v49 = vld [vmem:[#allocation5 + $0x1fb4] ss:$8 sps:$4 sm:$0xff]  }
 0x3f7   :  { %7931 = vmatpush1.bf16.msra.mxu1 %v10699_v31  ;;  %v7597_v62 = vpop.f32.mrf.mxu0  ;;  %7891 = vmatprep.subr.bf16.mxu0 %v10704_v2  ;;  %v10768_v50 = vld [vmem:[#allocation5 + $0x1eb0] ss:$8 sps:$4 sm:$0xff]   ;;  %v10776_v2 = vld [vmem:[#allocation5 + $0x1ea4] ss:$8 sps:$4 sm:$0xff]   ;;  %v10782_v42 = vld [vmem:[#allocation5 + $0x1e94] ss:$8 sps:$4 sm:$0xff]  }
 0x3f8   :  { %v7638_v56 = vpop.f32.mrf.mxu1  ;;  %7932 = vmatprep.subr.bf16.mxu1 %v10707_v29  ;;  %v11249_v40 = vadd.f32 %v7636_v44, %v7596_v61  ;;  %v7598_v45 = vadd.f32 %v7597_v62, %v11232_v60  ;;  %7921 = vmatprep.mubr.bf16.mxu0 %v500_v37  ;;  %v10717_v60 = vld [vmem:[#allocation5 + $0x1f40] ss:$8 sps:$4 sm:$0xff]   ;;  %v10771_v31 = vld [vmem:[#allocation5 + $0x1fb0] ss:$8 sps:$4 sm:$0xff]   ;;  %v10779_v29 = vld [vmem:[#allocation5 + $0x1fa4] ss:$8 sps:$4 sm:$0xff]  }
 0x3f9   :  { %7962 = vmatprep.mubr.bf16.mxu1 %v502_v43  ;;  %v7599_v53 = vpop.f32.mrf.mxu0  ;;  %v10774_v37 = vld [vmem:[#allocation5 + $0x1ea0] ss:$8 sps:$4 sm:$0xff]   ;;  %v10785_v44 = vld [vmem:[#allocation5 + $0x1f94] ss:$8 sps:$4 sm:$0xff]   ;;  %v10780_v61 = vld [vmem:[#allocation5 + $0x1e90] ss:$8 sps:$4 sm:$0xff]  }
 0x3fa   :  { %v7640_v16 = vpop.f32.mrf.mxu1  ;;  %v11252_v55 = vadd.f32 %v7638_v56, %v7598_v45  ;;  %7892 = vmatpush1.bf16.msra.mxu0 %v10702_v63  ;;  %v10777_v43 = vld [vmem:[#allocation5 + $0x1fa0] ss:$8 sps:$4 sm:$0xff]   ;;  %v10783_v63 = vld [vmem:[#allocation5 + $0x1f90] ss:$8 sps:$4 sm:$0xff]   ;;  %v10791_v62 = vld [vmem:[#allocation5 + $0x1f84] ss:$8 sps:$4 sm:$0xff]   ;;  %v501_v45 = vpack.c.bf16 %v11238_v24, %v11238_v24 }
 0x3fb   :  { %7933 = vmatpush1.bf16.msra.mxu1 %v10705_v0  ;;  %v7600_v59 = vpop.f32.mrf.mxu0  ;;  %7893 = vmatprep.subr.bf16.mxu0 %v10710_v57  ;;  %v10788_v0 = vld [vmem:[#allocation5 + $0x1e84] ss:$8 sps:$4 sm:$0xff]   ;;  %v10786_v56 = vld [vmem:[#allocation5 + $0x1e80] ss:$8 sps:$4 sm:$0xff]   ;;  %v10793_v24 = vld [vmem:[%s11314_s3 + $0x78] sm:$0xff]  }
 0x3fc   :  { %v7641_v35 = vpop.f32.mrf.mxu1  ;;  %7934 = vmatprep.subr.bf16.mxu1 %v10713_v47  ;;  %v10789_v57 = vld [vmem:[#allocation5 + $0x1f80] ss:$8 sps:$4 sm:$0xff]   ;;  %v499_v47 = vpack.c.bf16 %v11235_v22, %v11235_v22 }
 0x3fe   :  { %7894 = vmatpush1.bf16.msra.mxu0 %v10708_v15 }
 0x3ff   :  { %7935 = vmatpush1.bf16.msra.mxu1 %v10711_v58  ;;  %7895 = vmatprep.subr.bf16.mxu0 %v10716_v9 }
 0x400   :  { %7936 = vmatprep.subr.bf16.mxu1 %v10719_v10 }
 0x402   :  { %7896 = vmatpush1.bf16.msra.mxu0 %v10714_v7 }
 0x403   :  { %7937 = vmatpush1.bf16.msra.mxu1 %v10717_v60  ;;  %7897 = vmatprep.subr.bf16.mxu0 %v10722_v8 }
 0x404   :  { %7938 = vmatprep.subr.bf16.mxu1 %v10725_v26  ;;  %v10794_v26 = vld [vmem:[%s11314_s3 + $0x38] sm:$0xff]  }
 0x406   :  { %7898 = vmatpush1.bf16.msra.mxu0 %v10720_v23  ;;  %v10797_v23 = vld [vmem:[%s11314_s3 + $0x68] sm:$0xff]  }
 0x407   :  { %7939 = vmatpush1.bf16.msra.mxu1 %v10723_v1  ;;  %7899 = vmatprep.subr.bf16.mxu0 %v10728_v30  ;;  %v10798_v1 = vld [vmem:[%s11314_s3 + $0x28] sm:$0xff]   ;;  %v10799_v30 = vld [vmem:[%s11314_s3 + $0x60] sm:$0xff]  }
 0x408   :  { %7940 = vmatprep.subr.bf16.mxu1 %v10731_v3  ;;  %v10800_v3 = vld [vmem:[%s11314_s3 + $0x20] sm:$0xff]  }
 0x40a   :  { %7900 = vmatpush1.bf16.msra.mxu0 %v10726_v4  ;;  %v10801_v4 = vld [vmem:[%s11314_s3 + $0x58] sm:$0xff]  }
 0x40b   :  { %7941 = vmatpush1.bf16.msra.mxu1 %v10729_v20  ;;  %7901 = vmatprep.subr.bf16.mxu0 %v10734_v21  ;;  %v10802_v20 = vld [vmem:[%s11314_s3 + $0x18] sm:$0xff]   ;;  %v10803_v21 = vld [vmem:[%s11314_s3 + $0x50] sm:$0xff]  }
 0x40c   :  { %7942 = vmatprep.subr.bf16.mxu1 %v10737_v18  ;;  %v10804_v18 = vld [vmem:[%s11314_s3 + $0x10] sm:$0xff]  }
 0x40e   :  { %7902 = vmatpush1.bf16.msra.mxu0 %v10732_v19 }
 0x40f   :  { %7943 = vmatpush1.bf16.msra.mxu1 %v10735_v6  ;;  %7903 = vmatprep.subr.bf16.mxu0 %v10740_v38 }
 0x410   :  { %7944 = vmatprep.subr.bf16.mxu1 %v10743_v5 }
 0x412   :  { %7904 = vmatpush1.bf16.msra.mxu0 %v10738_v11 }
 0x413   :  { %7945 = vmatpush1.bf16.msra.mxu1 %v10741_v46  ;;  %7905 = vmatprep.subr.bf16.mxu0 %v10746_v12  ;;  %v10805_v46 = vld [vmem:[%s11314_s3 + $0x48] sm:$0xff]  }
 0x414   :  { %7946 = vmatprep.subr.bf16.mxu1 %v10749_v41 }
 0x416   :  { %7906 = vmatpush2.bf16.msra.mxu0 %v10744_v13  ;;  %v10806_v13 = vld [vmem:[%s11314_s3 + $0x8] sm:$0xff]  }
 0x417   :  { %7947 = vmatpush2.bf16.msra.mxu1 %v10747_v14  ;;  %7907 = vmatprep.subr.bf16.mxu0 %v10752_v34 }
 0x418   :  { %7948 = vmatprep.subr.bf16.mxu1 %v10755_v36 }
 0x41a   :  { %7908 = vmatpush2.bf16.msra.mxu0 %v10750_v32 }
 0x41b   :  { %7949 = vmatpush2.bf16.msra.mxu1 %v10753_v33  ;;  %7909 = vmatprep.subr.bf16.mxu0 %v10758_v17  ;;  %v10807_v17 = vld [vmem:[%s11314_s3 + $0x40] sm:$0xff]  }
 0x41c   :  { %7950 = vmatprep.subr.bf16.mxu1 %v10761_v54  ;;  %v10808_v54 = vld [vmem:[%s11314_s3] sm:$0xff]  }
 0x41e   :  { %7910 = vmatpush2.bf16.msra.mxu0 %v10756_v25 }
 0x41f   :  { %7951 = vmatpush2.bf16.msra.mxu1 %v10759_v39  ;;  %7911 = vmatprep.subr.bf16.mxu0 %v10764_v27 }
 0x420   :  { %7952 = vmatprep.subr.bf16.mxu1 %v10767_v28 }
 0x422   :  { %7912 = vmatpush2.bf16.msra.mxu0 %v10762_v51 }
 0x423   :  { %7953 = vmatpush2.bf16.msra.mxu1 %v10765_v52  ;;  %7913 = vmatprep.subr.bf16.mxu0 %v10770_v48 }
 0x424   :  { %7954 = vmatprep.subr.bf16.mxu1 %v10773_v49 }
 0x426   :  { %7914 = vmatpush2.bf16.msra.mxu0 %v10768_v50 }
 0x427   :  { %7955 = vmatpush2.bf16.msra.mxu1 %v10771_v31  ;;  %7915 = vmatprep.subr.bf16.mxu0 %v10776_v2 }
 0x428   :  { %7956 = vmatprep.subr.bf16.mxu1 %v10779_v29 }
 0x42a   :  { %7916 = vmatpush2.bf16.msra.mxu0 %v10774_v37 }
 0x42b   :  { %7957 = vmatpush2.bf16.msra.mxu1 %v10777_v43  ;;  %7917 = vmatprep.subr.bf16.mxu0 %v10782_v42 }
 0x42c   :  { %7958 = vmatprep.subr.bf16.mxu1 %v10785_v44 }
 0x42e   :  { %7918 = vmatpush2.bf16.msra.mxu0 %v10780_v61 }
 0x42f   :  { %7959 = vmatpush2.bf16.msra.mxu1 %v10783_v63  ;;  %7919 = vmatprep.subr.bf16.mxu0 %v10788_v0 }
 0x430   :  { %7960 = vmatprep.subr.bf16.mxu1 %v10791_v62 }
 0x432   :  { %7920 = vmatpush2.bf16.msra.mxu0 %v10786_v56 }
 0x433   :  { %7961 = vmatpush2.bf16.msra.mxu1 %v10789_v57  ;;  %9211 = vmatprep.subr.bf16.mxu0 %v10793_v24 }
 0x435   :  { %v7677_v53 = vpop.f32.mrf.mxu0  ;;  %7922 = vmatmul.mubr.bf16.vlgmr.msra.gmra.mxu0 %v499_v47 }
 0x436   :  { %v7718_v16 = vpop.f32.mrf.mxu1  ;;  %7963 = vmatmul.mubr.bf16.vlgmr.msra.gmra.mxu1 %v501_v45  ;;  %v7678_v15 = vadd.f32 %v7677_v53, %v11249_v40  ;;  %v10795_v40 = vld [vmem:[%s11314_s3 + $0x70] sm:$0xff]   ;;  %9212 = vmatpush3.bf16.msra.mxu0 %v10794_v26 }
 0x437   :  { %v7679_v58 = vpop.f32.mrf.mxu0  ;;  %9213 = vmatprep.subr.bf16.mxu0 %v10795_v40 }
 0x438   :  { %v7720_v59 = vpop.f32.mrf.mxu1  ;;  %v7719_v35 = vadd.f32 %v7718_v16, %v7678_v15  ;;  %v7680_v9 = vadd.f32 %v7679_v58, %v11252_v55  ;;  %v10796_v55 = vld [vmem:[%s11314_s3 + $0x30] sm:$0xff]   ;;  %s10926_s3 = smov [#allocation10]  }
 0x439   :  { %v7681_v10 = vpop.f32.mrf.mxu0  ;;  %s8159_s15 = sshll.u32 %s10926_s3, 4  ;;  %s8160_s15 = int_to_ptr.vmem [resolvable:$true] %s8159_s15 }
 0x43a   :  { %v7722_v7 = vpop.f32.mrf.mxu1  ;;  %v7721_v60 = vadd.f32 %v7720_v59, %v7680_v9  ;;  %9214 = vmatpush3.bf16.msra.mxu0 %v10796_v55  ;;  %s10891_s16 = scalar_lea.vmem %s8160_s15, 32  ;;  %p10896_p7 = scmp.lt.s32.totalorder %s8160_s15, %s8160_s15 }
 0x43b   :  { %v7682_v22 = vpop.f32.mrf.mxu0  ;;  %9215 = vmatprep.subr.bf16.mxu0 %v10797_v23  ;;  %p10892_p6 = scmp.ne.s32.totalorder %s8160_s15, %s10891_s16  ;;  %p10897_p8 = scmp.lt.s32.totalorder %s10891_s16, %s10891_s16 }
 0x43c   :  { %v7723_v8 = vpop.f32.mrf.mxu1 }
 0x43d   :  { %p10898_p9 = por %p10897_p8, %p10896_p7 }
 0x43e   :  { %9216 = vmatpush3.bf16.msra.mxu0 %v10798_v1 }
 0x43f   :  { %9217 = vmatprep.subr.bf16.mxu0 %v10799_v30  ;;  %p10899_p10 = pnand %p10898_p9, %p10892_p6 }
 0x442   :  { %9218 = vmatpush3.bf16.msra.mxu0 %v10800_v3 }
 0x443   :  { %9219 = vmatprep.subr.bf16.mxu0 %v10801_v4 }
 0x446   :  { %9220 = vmatpush3.bf16.msra.mxu0 %v10802_v20 }
 0x447   :  { %9221 = vmatprep.subr.bf16.mxu0 %v10803_v21 }
 0x44a   :  { %9222 = vmatpush3.bf16.msra.mxu0 %v10804_v18 }
 0x44b   :  { %9223 = vmatprep.subr.bf16.mxu0 %v10805_v46 }
 0x44e   :  { %9224 = vmatpush3.bf16.msra.mxu0 %v10806_v13 }
 0x44f   :  { %9225 = vmatprep.subr.bf16.mxu0 %v10807_v17 }
 0x452   :  { %9226 = vmatpush3.bf16.msra.mxu0 %v10808_v54 }
 0x475   :  { %v7759_v19 = vpop.f32.mrf.mxu0 }
 0x476   :  { %v7800_v6 = vpop.f32.mrf.mxu1  ;;  %v7760_v38 = vadd.f32 %v7759_v19, %v7719_v35  ;;  %v9194_v35 = vld [vmem:[#allocation8] ss:$0 sm:$0xff] }
 0x477   :  { %v7761_v5 = vpop.f32.mrf.mxu0 }
 0x478   :  { %v7802_v11 = vpop.f32.mrf.mxu1  ;;  %v7801_v12 = vadd.f32 %v7800_v6, %v7760_v38  ;;  %v7762_v41 = vadd.f32 %v7761_v5, %v7721_v60 }
 0x479   :  { %v7763_v14 = vpop.f32.mrf.mxu0 }
 0x47a   :  { %v7804_v34 = vpop.f32.mrf.mxu1  ;;  %v7803_v36 = vadd.f32 %v7802_v11, %v7762_v41 }
 0x47b   :  { %v7764_v32 = vpop.f32.mrf.mxu0 }
 0x47c   :  { %v7805_v33 = vpop.f32.mrf.mxu1 }
 0x4b5   :  { %v7841_v25 = vpop.f32.mrf.mxu0 }
 0x4b6   :  { %v7882_v39 = vpop.f32.mrf.mxu1  ;;  %v7842_v27 = vadd.f32 %v7841_v25, %v7801_v12 }
 0x4b7   :  { %v7843_v28 = vpop.f32.mrf.mxu0 }
 0x4b8   :  { %v7884_v51 = vpop.f32.mrf.mxu1  ;;  %v7883_v52 = vadd.f32 %v7882_v39, %v7842_v27  ;;  %v7844_v2 = vadd.f32 %v7843_v28, %v7803_v36 }
 0x4b9   :  { %v7845_v48 = vpop.f32.mrf.mxu0 }
 0x4ba   :  { %v7886_v49 = vpop.f32.mrf.mxu1  ;;  %v7885_v43 = vadd.f32 %v7884_v51, %v7844_v2 }
 0x4bb   :  { %v7846_v50 = vpop.f32.mrf.mxu0 }
 0x4bc   :  { %v7887_v31 = vpop.f32.mrf.mxu1 }
 0x4f5   :  { %v7923_v29 = vpop.f32.mrf.mxu0 }
 0x4f6   :  { %v7964_v37 = vpop.f32.mrf.mxu1  ;;  %v7924_v42 = vadd.f32 %v7923_v29, %v7883_v52 }
 0x4f7   :  { %v7925_v44 = vpop.f32.mrf.mxu0 }
 0x4f8   :  { %v7966_v61 = vpop.f32.mrf.mxu1  ;;  %v7965_v63 = vadd.f32 %v7964_v37, %v7924_v42  ;;  %v7926_v0 = vadd.f32 %v7925_v44, %v7885_v43 }
 0x4f9   :  { %v7927_v62 = vpop.f32.mrf.mxu0 }
 0x4fa   :  { %v7968_v56 = vpop.f32.mrf.mxu1  ;;  %v7967_v57 = vadd.f32 %v7966_v61, %v7926_v0  ;;  %v7971_v47 = vmax.f32 %v7965_v63, 0.0 }
 0x4fb   :  { %v7928_v45 = vpop.f32.mrf.mxu0 }
 0x4fc   :  { %v7969_v53 = vpop.f32.mrf.mxu1  ;;  %v7972_v16 = vmax.f32 %v7967_v57, 0.0  ;;  %v7973_v58 = vpack.c.bf16 %v7971_v47, %v7971_v47 }
 0x4fe   :  { %v7974_v15 = vpack.c.bf16 %v7972_v16, %v7972_v16 }
 0x500   :  { %8142 = vmatprep.mubr.bf16.mxu0 %v7974_v15 }
 0x501   :  { %8143 = vmatmul.mubr.bf16.vlgmr.msra.gmra.mxu0 %v7973_v58 }
 0x5c1   :  { %v9227_v59 = vpop.f32.mrf.mxu0 }
 0x5c3   :  { %v9228_v9 = vpop.f32.mrf.mxu0 }
 0x5c4   :  { %v9229_v10 = vadd.f32 %v9228_v9, %v9227_v59 }
 0x5c5   :  { %v9230_v7 = vpop.f32.mrf.mxu0 }
 0x5c6   :  { %v8145_v60 = vadd.f32 %v9229_v10, %v9194_v35 }
 0x5c7   :  { %v9231_v22 = vpop.f32.mrf.mxu0 }
 0x5c8   :  { %10809 = vtanh.f32 %v8145_v60 }
 0x5d5   :  { %v10810_v8 = vpop.eup %10809 }
 0x5d6   :  { %8152 = vst.msk [vmem:[#allocation10] sm:$0x3] %vm8151_vm0, %v10810_v8 }
 0x5d7   :  { %10902 = shalt.err (!%p10899_p10)
}
 0x5d8   :  { %8162 = dma.vmem_to_hbm [thread:$0]  %s8160_s15, 32, %s11316_s5, [#allocation4]  }
 0x5d9   :  { %10917 = dma.done.wait [#allocation4], 32  }
 0x5da   :  { %10918 = vsyncadd [#allocation4], 4294967264 }
 0x5db   :  { %8166 = vsyncpa [#allocation3], 1 }
 0x5dc   :  { %8167 = vsyncpa [#allocation6], 1 }
 0x5dd   :  { %8168 = vsyncpa [#allocation9], 1 }
 0x5de   :  { %8169 = vsyncpa [#allocation4], 1 }

</bundles_post_ra>
